<compile_context>
chip_gen: v5e
topology: v5e:2x2
jax: 0.10.0
libtpu: 0.0.40
codegen_flags: <defaults>
</compile_context>

<pallas_src>
import functools
import math

import jax
import jax.numpy as jnp
from jax import lax
from jax.experimental import pallas as pl
from jax.experimental.pallas import tpu as pltpu

EPS = 1e-5


# --------------------------------------------------------------------------------------------
# trace-time helpers (all static ints)
# --------------------------------------------------------------------------------------------
def _roundup(x, m):
    return ((x + m - 1) // m) * m


def _padded_tile_bytes(shape, itemsize):
    """VMEM footprint of one block: minor dim padded to 128 lanes, second-minor padded to the
    sublane granule (8 rows for 32-bit, 16 for 16-bit packed dtypes)."""
    shape = tuple(shape)
    if len(shape) == 1:
        shape = (1,) + shape
    *lead, sub, lane = shape
    sub_g = 8 * max(1, 4 // itemsize)
    return int(math.prod(lead) * _roundup(sub, sub_g) * _roundup(lane, 128) * itemsize)


def _vmem_config():
    """Per-generation scoped-VMEM limit and per-step block budgets."""
    phys = 64 * 1024 * 1024
    try:
        info_fn = getattr(pltpu, "get_tpu_info", None)
        if info_fn is not None:
            phys = int(info_fn().vmem_capacity_bytes)
    except Exception:                       # best-effort hardware query; stay conservative
        pass
    if phys >= 128 * 1024 * 1024:           # v5e / v6e: 128 MiB physical VMEM
        return {"limit": 64 << 20, "conv_budget": 12 << 20, "row_budget": 6 << 20}
    return {"limit": 32 << 20, "conv_budget": 6 << 20, "row_budget": 3 << 20}   # v7x: 64 MiB


def _pick_batch_tile(n, per_img_bytes, fixed_bytes, rows_per_img, budget, override=None):
    """Largest batch tile whose (lane/sublane-padded) blocks fit the per-step budget and whose
    y-block row count satisfies the (8, 128) second-minor constraint."""
    def ok(d):
        return n % d == 0 and (d == n or (d * rows_per_img) % 8 == 0)

    if override is not None:
        assert ok(override), (n, override, rows_per_img)
        return override
    avail = max(budget - fixed_bytes, per_img_bytes)
    cap = int(max(1, min(n, avail // max(per_img_bytes, 1))))
    for d in range(cap, 0, -1):
        if ok(d):
            return d
    for d in range(cap + 1, n + 1):         # smallest valid tile above the cap (least overshoot)
        if ok(d):
            return d
    return n


def _pick_row_tile(rows, bytes_per_row, budget):
    cap = int(max(1, min(rows, budget // max(bytes_per_row, 1))))
    if cap >= rows:
        return rows
    for d in range(cap, 7, -1):
        if rows % d == 0 and d % 8 == 0:
            return d
    for d in range(cap + 1, rows):          # least overshoot instead of silently going full
        if rows % d == 0 and d % 8 == 0:
            return d
    return rows


def _pick_lanes(h, w, c, budget):
    """Widest multiple-of-128 suffix of (h, w, c) for the lane-dense BN/ReLU view."""
    for lanes in (h * w * c, w * c, c):
        if lanes % 128 == 0 and 8 * _roundup(lanes, 128) * 4 * 6 <= budget:
            return lanes
    return w * c  # may be lane-sparse for odd shapes but still correct


# --------------------------------------------------------------------------------------------
# Pallas kernels
# --------------------------------------------------------------------------------------------
def _make_conv_stats_kernel(stride, tn, ho, wo, cin, cout, n_planes):
    """3x3 conv (input pre zero-padded) as one K=9*Cin matmul + per-tile BN partial stats.

    Grid: 1-D over batch tiles, fully "parallel" (every output block is indexed by the tile).
    """
    m_tile = tn * ho * wo

    def kernel(*refs):
        plane_refs = refs[:n_planes]
        w_ref = refs[n_planes]
        y_ref, sum_ref, ssq_ref = refs[n_planes + 1:n_planes + 4]
        patch_ref = refs[n_planes + 4]      # VMEM scratch (tn, ho, wo, 9*cin), conv_dtype

        # Gather the 9 taps into a single K = 9*Cin im2col block that never leaves VMEM.
        # Inputs stay in conv_dtype (bf16 goes straight to the MXU); only acc/stats are f32.
        for ki in range(3):
            for kj in range(3):
                if stride == 1:
                    xs = plane_refs[0][:, ki:ki + ho, kj:kj + wo, :]
                else:  # stride == 2: (row, col) parity planes -> unit-stride windows only
                    xs = plane_refs[(ki % 2) * 2 + (kj % 2)][
                        :, ki // 2:ki // 2 + ho, kj // 2:kj // 2 + wo, :]
                t = ki * 3 + kj
                patch_ref[:, :, :, t * cin:(t + 1) * cin] = xs

        patches = patch_ref[...].reshape(m_tile, 9 * cin)
        acc = jnp.dot(patches, w_ref[...], preferred_element_type=jnp.float32)

        y_ref[...] = acc.astype(y_ref.dtype)
        # per-tile partial BatchNorm statistics (combined in the wrapper -> "parallel" grid)
        sum_ref[...] = jnp.sum(acc, axis=0, keepdims=True).reshape(1, 1, cout)
        ssq_ref[...] = jnp.sum(acc * acc, axis=0, keepdims=True).reshape(1, 1, cout)

    return kernel


def _bn_act_kernel(y_ref, scale_ref, shift_ref, o_ref):
    y = y_ref[...].astype(jnp.float32)
    o_ref[...] = jnp.maximum(y * scale_ref[...] + shift_ref[...], 0.0).astype(o_ref.dtype)


def _bn_add_act_kernel(y_ref, sc_ref, scale_ref, shift_ref, o_ref):
    y = y_ref[...].astype(jnp.float32)
    o_ref[...] = jnp.maximum(
        y * scale_ref[...] + shift_ref[...] + sc_ref[...].astype(jnp.float32),
        0.0).astype(o_ref.dtype)


# --------------------------------------------------------------------------------------------
# pallas_call wrappers
# --------------------------------------------------------------------------------------------
def _conv3x3_stats_call(x_planes, w_mat, stride, tn, n, ho, wo, cin, cout,
                        conv_dtype, vmem_limit):
    num_tiles = n // tn
    m = n * ho * wo
    m_tile = tn * ho * wo
    kernel = _make_conv_stats_kernel(stride, tn, ho, wo, cin, cout, len(x_planes))

    in_specs = [pl.BlockSpec((tn,) + tuple(p.shape[1:]), lambda i: (i, 0, 0, 0))
                for p in x_planes]
    in_specs.append(pl.BlockSpec((9 * cin, cout), lambda i: (0, 0)))

    out_specs = (pl.BlockSpec((m_tile, cout), lambda i: (i, 0)),
                 pl.BlockSpec((1, 1, cout), lambda i: (i, 0, 0)),
                 pl.BlockSpec((1, 1, cout), lambda i: (i, 0, 0)))
    out_shape = (jax.ShapeDtypeStruct((m, cout), conv_dtype),
                 jax.ShapeDtypeStruct((num_tiles, 1, cout), jnp.float32),
                 jax.ShapeDtypeStruct((num_tiles, 1, cout), jnp.float32))

    item = jnp.dtype(conv_dtype).itemsize
    in_bytes = sum(math.prod(p.shape) * item for p in x_planes)
    cost = pl.CostEstimate(
        flops=int(2 * m * 9 * cin * cout),
        transcendentals=0,
        bytes_accessed=int(in_bytes + 9 * cin * cout * item + m * cout * item
                           + 2 * num_tiles * cout * 4))

    # TODO(synk): lane-dense (tn*ho, wo*cout) y store (needs a minor-dim-merging in-kernel
    # reshape; pending Mosaic reshape support validation on all targeted generations).
    return pl.pallas_call(
        kernel,
        grid=(num_tiles,),
        in_specs=in_specs,
        out_specs=out_specs,
        out_shape=out_shape,
        scratch_shapes=[pltpu.VMEM((tn, ho, wo, 9 * cin), conv_dtype)],
        compiler_params=pltpu.CompilerParams(
            dimension_semantics=("parallel",),   # per-tile partial stats -> independent tiles
            vmem_limit_bytes=vmem_limit),
        cost_estimate=cost,
    )(*x_planes, w_mat)


def _bn_act_call(y2d, scale_row, shift_row, sc2d, out_dtype, tr, vmem_limit):
    rows, lanes = y2d.shape
    kernel = _bn_act_kernel if sc2d is None else _bn_add_act_kernel

    in_specs = [pl.BlockSpec((tr, lanes), lambda i: (i, 0))]
    args = [y2d]
    if sc2d is not None:
        in_specs.append(pl.BlockSpec((tr, lanes), lambda i: (i, 0)))
        args.append(sc2d)
    in_specs += [pl.BlockSpec((1, lanes), lambda i: (0, 0)),
                 pl.BlockSpec((1, lanes), lambda i: (0, 0))]
    args += [scale_row, shift_row]

    return pl.pallas_call(
        kernel,
        grid=(rows // tr,),
        in_specs=in_specs,
        out_specs=pl.BlockSpec((tr, lanes), lambda i: (i, 0)),
        out_shape=jax.ShapeDtypeStruct((rows, lanes), out_dtype),
        compiler_params=pltpu.CompilerParams(
            dimension_semantics=("parallel",),
            vmem_limit_bytes=vmem_limit),
    )(*args)


# --------------------------------------------------------------------------------------------
# fused conv -> BN(train) -> (+shortcut) -> ReLU
# --------------------------------------------------------------------------------------------
def _conv_bn_act(x_nhwc, w_oihw, gamma, beta, *, stride, shortcut, conv_dtype,
                 out_dtype, cfg, batch_tile=None):
    n, h, w, cin = x_nhwc.shape
    cout = w_oihw.shape[0]
    assert w_oihw.shape == (cout, cin, 3, 3)

    if stride == 1:
        ho, wo = h, w
    elif stride == 2:
        # TODO(synk): odd spatial sizes with stride 2 (needs unequal parity planes).
        assert h % 2 == 0 and w % 2 == 0
        ho, wo = h // 2, w // 2
    else:
        raise NotImplementedError("TODO(synk): only stride in {1, 2} is supported")

    # zero-pad once, in conv_dtype (bf16 halves the HBM bytes of the dominant operand)
    xp = jnp.pad(x_nhwc.astype(conv_dtype), ((0, 0), (1, 1), (1, 1), (0, 0)))
    if stride == 1:
        x_planes = (xp,)
    else:
        # four (row, col) parity planes: same total bytes as xp, unit-stride in-kernel windows
        x_planes = tuple(xp[:, pi::2, pj::2, :] for pi in (0, 1) for pj in (0, 1))

    # (Cout, Cin, 3, 3) -> (9*Cin, Cout); row index = (ki*3 + kj)*Cin + c, matching the kernel
    w_mat = jnp.transpose(w_oihw, (2, 3, 1, 0)).reshape(9 * cin, cout).astype(conv_dtype)

    # lane/sublane-padding-aware per-step VMEM accounting (inputs + y double-buffered)
    item_in = jnp.dtype(conv_dtype).itemsize
    plane_img = sum(_padded_tile_bytes(p.shape[1:], item_in) for p in x_planes)
    y_img = _padded_tile_bytes((ho * wo, cout), item_in)
    patch_img = _padded_tile_bytes((ho, wo, 9 * cin), item_in)
    per_img = 2 * (plane_img + y_img) + patch_img
    fixed = (2 * _padded_tile_bytes((9 * cin, cout), item_in)
             + 4 * _padded_tile_bytes((1, cout), 4))
    tn = _pick_batch_tile(n, per_img, fixed, ho * wo, cfg["conv_budget"], override=batch_tile)

    y2d, psum, pssq = _conv3x3_stats_call(
        x_planes, w_mat, stride, tn, n, ho, wo, cin, cout, conv_dtype, cfg["limit"])

    # BatchNorm (training mode): combine per-tile partial moments (equal-sized tiles) into the
    # global batch mean / biased variance -> per-channel scale/shift.
    # TODO(synk): a centered two-pass / Welford kernel would fully remove E[x^2]-E[x]^2
    # cancellation for very large N*Ho*Wo; per-tile partials already bound it per tile.
    m = n * ho * wo
    m_tile = float(tn * ho * wo)
    mean_t = psum[:, 0, :] / m_tile                      # (num_tiles, cout)
    ex2_t = pssq[:, 0, :] / m_tile
    mean = jnp.mean(mean_t, axis=0)
    var = jnp.mean(jnp.maximum(ex2_t - mean_t * mean_t, 0.0) + (mean_t - mean) ** 2, axis=0)
    scale_c = gamma.astype(jnp.float32) * lax.rsqrt(var + EPS)
    shift_c = beta.astype(jnp.float32) - mean * scale_c

    # lane-dense 2-D view for the memory-bound BN/(+residual)/ReLU pass
    lanes = _pick_lanes(ho, wo, cout, cfg["row_budget"])
    rows = (m * cout) // lanes
    reps = lanes // cout
    scale_row = jnp.tile(scale_c, reps).reshape(1, lanes)
    shift_row = jnp.tile(shift_c, reps).reshape(1, lanes)

    sc2d = None
    sc_bytes = 0
    if shortcut is not None:
        assert shortcut.shape == (n, ho, wo, cout), (
            f"shortcut shape {shortcut.shape} != conv output {(n, ho, wo, cout)}")
        sc2d = shortcut.astype(jnp.float32).reshape(rows, lanes)
        sc_bytes = 4

    out_item = jnp.dtype(out_dtype).itemsize
    row_bytes = 2 * _roundup(lanes, 128) * (item_in + out_item + sc_bytes)
    tr = _pick_row_tile(rows, row_bytes, cfg["row_budget"])

    out = _bn_act_call(y2d.reshape(rows, lanes), scale_row, shift_row, sc2d,
                       out_dtype, tr, cfg["limit"])
    return out.reshape(n, ho, wo, cout)


def basic_block_forward(x_nchw, params, stride=1, option="A",
                        conv_dtype=jnp.float32, batch_tile=None):
    n, in_planes, h, w = x_nchw.shape
    planes = params["w1"].shape[0]
    cfg = _vmem_config()
    x_nhwc = jnp.transpose(x_nchw, (0, 2, 3, 1)).astype(jnp.float32)

    # conv1 -> bn1 -> relu; out1 lands in HBM already in conv_dtype (bf16 halves the round trip)
    out1 = _conv_bn_act(x_nhwc, params["w1"], params["g1"], params["b1"],
                        stride=stride, shortcut=None, conv_dtype=conv_dtype,
                        out_dtype=conv_dtype, cfg=cfg, batch_tile=batch_tile)
    # TODO(synk): fuse bn1/relu + zero-pad into conv2's tile load (keep the out1 tile + halo in
    # VMEM) to also remove the out1 HBM round trip and the separate jnp.pad pass.

    # shortcut branch (PyTorch option 'A': hardcoded ::2 subsample + planes//4 zero-pad)
    if stride != 1 or in_planes != planes:
        if option == "A":
            pad = planes // 4
            sc = jnp.pad(x_nhwc[:, ::2, ::2, :],
                         ((0, 0), (0, 0), (0, 0), (pad, pad)))
        elif option == "B":
            # TODO(synk): option 'B' shortcut (1x1 conv + BatchNorm) not implemented.
            raise NotImplementedError("option='B' shortcut is not implemented")
        else:
            raise ValueError(f"unknown option {option!r}")
    else:
        sc = x_nhwc

    # conv2 -> bn2 -> (+shortcut) -> relu   (final output back in f32)
    out2 = _conv_bn_act(out1, params["w2"], params["g2"], params["b2"],
                        stride=1, shortcut=sc, conv_dtype=conv_dtype,
                        out_dtype=jnp.float32, cfg=cfg, batch_tile=batch_tile)
    return jnp.transpose(out2, (0, 3, 1, 2))  # back to NCHW


# --------------------------------------------------------------------------------------------
# pure-JAX reference
# --------------------------------------------------------------------------------------------
def _bn_train_ref(y, gamma, beta):
    mean = jnp.mean(y, axis=(0, 2, 3), keepdims=True)
    var = jnp.mean((y - mean) ** 2, axis=(0, 2, 3), keepdims=True)
    return ((y - mean) * lax.rsqrt(var + EPS) * gamma.reshape(1, -1, 1, 1)
            + beta.reshape(1, -1, 1, 1))


def reference_forward(x, params, stride=1):
    dn = ("NCHW", "OIHW", "NCHW")
    in_planes, planes = x.shape[1], params["w1"].shape[0]
    y = lax.conv_general_dilated(x, params["w1"], (stride, stride),
                                 ((1, 1), (1, 1)), dimension_numbers=dn)
    y = jax.nn.relu(_bn_train_ref(y, params["g1"], params["b1"]))
    y2 = lax.conv_general_dilated(y, params["w2"], (1, 1),
                                  ((1, 1), (1, 1)), dimension_numbers=dn)
    y2 = _bn_train_ref(y2, params["g2"], params["b2"])
    if stride != 1 or in_planes != planes:
        pad = planes // 4
        sc = jnp.pad(x[:, :, ::2, ::2], ((0, 0), (pad, pad), (0, 0), (0, 0)))
    else:
        sc = x
    return jax.nn.relu(y2 + sc)


# --------------------------------------------------------------------------------------------
# main
# --------------------------------------------------------------------------------------------
def _make_params(key, in_planes, planes):
    k1, k2, k3, k4, k5, k6 = jax.random.split(key, 6)
    return {
        "w1": 0.1 * jax.random.normal(k1, (planes, in_planes, 3, 3), jnp.float32),
        "g1": 1.0 + 0.1 * jax.random.normal(k2, (planes,), jnp.float32),
        "b1": 0.05 * jax.random.normal(k3, (planes,), jnp.float32),
        "w2": 0.1 * jax.random.normal(k4, (planes, planes, 3, 3), jnp.float32),
        "g2": 1.0 + 0.1 * jax.random.normal(k5, (planes,), jnp.float32),
        "b2": 0.05 * jax.random.normal(k6, (planes,), jnp.float32),
    }


if __name__ == "__main__":
    key = jax.random.PRNGKey(0)
    k_a, k_b, k_pa, k_pb = jax.random.split(key, 4)

    # case 1: identity shortcut (stride=1, in_planes == planes).  batch_tile=1 forces a
    # multi-step "parallel" grid so the per-tile BatchNorm partial-stat combine is exercised.
    N, C, H, W = 2, 8, 16, 16
    x1 = jax.random.normal(k_a, (N, C, H, W), jnp.float32)
    p1 = _make_params(k_pa, C, C)
    fwd1 = jax.jit(functools.partial(basic_block_forward, stride=1, batch_tile=1))
    out1 = jax.block_until_ready(fwd1(x1, p1))
    ref1 = jax.block_until_ready(reference_forward(x1, p1, stride=1))
    assert out1.shape == (N, C, H, W), out1.shape
    assert jnp.allclose(out1, ref1, atol=1e-3, rtol=1e-3), float(jnp.max(jnp.abs(out1 - ref1)))

    # case 2: downsampling block (stride=2, option 'A' shortcut), multi-step grid.
    in_planes, planes = 4, 8
    x2 = jax.random.normal(k_b, (N, in_planes, H, W), jnp.float32)
    p2 = _make_params(k_pb, in_planes, planes)
    fwd2 = jax.jit(functools.partial(basic_block_forward, stride=2, batch_tile=1))
    out2 = jax.block_until_ready(fwd2(x2, p2))
    ref2 = jax.block_until_ready(reference_forward(x2, p2, stride=2))
    assert out2.shape == (N, planes, H // 2, W // 2), out2.shape
    assert jnp.allclose(out2, ref2, atol=1e-3, rtol=1e-3), float(jnp.max(jnp.abs(out2 - ref2)))

    # case 3: bf16 activations end-to-end between kernels (halves HBM traffic); loose tolerance
    # vs the f32 reference because conv inputs and inter-kernel activations are bf16-quantized.
    fwd3 = jax.jit(functools.partial(basic_block_forward, stride=2,
                                     conv_dtype=jnp.bfloat16))
    out3 = jax.block_until_ready(fwd3(x2, p2))
    assert out3.shape == (N, planes, H // 2, W // 2), out3.shape
    assert jnp.allclose(out3, ref2, atol=0.25, rtol=0.05), float(jnp.max(jnp.abs(out3 - ref2)))

    print("KERNEL_OK")
</pallas_src>

<mosaic_0001>
module attributes {stable_mosaic.version = 11 : i64} {
  func.func @_bn_act_kernel(%arg0: i32, %arg1: memref<2x2048xf32, #tpu.memory_space<vmem>>, %arg2: memref<1x2048xf32, #tpu.memory_space<vmem>>, %arg3: memref<1x2048xf32, #tpu.memory_space<vmem>>, %arg4: memref<2x2048xf32, #tpu.memory_space<vmem>>) attributes {dimension_semantics = [#tpu.dimension_semantics<parallel>], iteration_bounds = array<i64: 1>, scalar_prefetch = 0 : i64, scratch_operands = 0 : i64, tpu.core_type = #tpu.core_type<tc>, window_params = [{transform_indices = @transform_0, window_bounds = array<i64: 2, 2048>}, {pipeline_mode = #tpu.pipeline_mode<synchronous>, transform_indices = @transform_1, window_bounds = array<i64: 1, 2048>}, {pipeline_mode = #tpu.pipeline_mode<synchronous>, transform_indices = @transform_2, window_bounds = array<i64: 1, 2048>}, {transform_indices = @transform_3, window_bounds = array<i64: 2, 2048>}]} {
    %c0 = arith.constant 0 : index
    %c0_0 = arith.constant 0 : index
    %0 = vector.load %arg1[%c0, %c0_0] : memref<2x2048xf32, #tpu.memory_space<vmem>>, vector<2x2048xf32>
    %c0_1 = arith.constant 0 : index
    %c0_2 = arith.constant 0 : index
    %1 = vector.load %arg2[%c0_1, %c0_2] : memref<1x2048xf32, #tpu.memory_space<vmem>>, vector<1x2048xf32>
    %2 = vector.broadcast %1 : vector<1x2048xf32> to vector<2x2048xf32>
    %3 = arith.mulf %0, %2 : vector<2x2048xf32>
    %c0_3 = arith.constant 0 : index
    %c0_4 = arith.constant 0 : index
    %4 = vector.load %arg3[%c0_3, %c0_4] : memref<1x2048xf32, #tpu.memory_space<vmem>>, vector<1x2048xf32>
    %5 = vector.broadcast %4 : vector<1x2048xf32> to vector<2x2048xf32>
    %6 = arith.addf %3, %5 : vector<2x2048xf32>
    %cst = arith.constant 0.000000e+00 : f32
    %7 = vector.broadcast %cst : f32 to vector<2x2048xf32>
    %8 = arith.maximumf %6, %7 : vector<2x2048xf32>
    %c0_5 = arith.constant 0 : index
    %c0_6 = arith.constant 0 : index
    %9 = vector.load %arg4[%c0_5, %c0_6] : memref<2x2048xf32, #tpu.memory_space<vmem>>, vector<2x2048xf32>
    tpu.vector_store %arg4[%c0_5, %c0_6], %8 {strides = array<i32>} : memref<2x2048xf32, #tpu.memory_space<vmem>>, vector<2x2048xf32>,
    return
  }
  func.func @transform_0(%arg0: i32) -> (i32, i32) {
    %c0_i32 = arith.constant 0 : i32
    %c0_i32_0 = arith.constant 0 : i32
    return %arg0, %c0_i32 : i32, i32
  }
  func.func @transform_1(%arg0: i32) -> (i32, i32) {
    %c0_i32 = arith.constant 0 : i32
    %c0_i32_0 = arith.constant 0 : i32
    %c0_i32_1 = arith.constant 0 : i32
    return %c0_i32, %c0_i32_0 : i32, i32
  }
  func.func @transform_2(%arg0: i32) -> (i32, i32) {
    %c0_i32 = arith.constant 0 : i32
    %c0_i32_0 = arith.constant 0 : i32
    %c0_i32_1 = arith.constant 0 : i32
    return %c0_i32, %c0_i32_0 : i32, i32
  }
  func.func @transform_3(%arg0: i32) -> (i32, i32) {
    %c0_i32 = arith.constant 0 : i32
    %c0_i32_0 = arith.constant 0 : i32
    return %arg0, %c0_i32 : i32, i32
  }
}

module attributes {stable_mosaic.version = 11 : i64} {
  func.func @kernel(%arg0: i32, %arg1: memref<1x18x18x8xf32, #tpu.memory_space<vmem>>, %arg2: memref<72x8xf32, #tpu.memory_space<vmem>>, %arg3: memref<256x8xf32, #tpu.memory_space<vmem>>, %arg4: memref<1x1x8xf32, #tpu.memory_space<vmem>>, %arg5: memref<1x1x8xf32, #tpu.memory_space<vmem>>, %arg6: memref<1x16x16x72xf32, #tpu.memory_space<vmem>>) attributes {dimension_semantics = [#tpu.dimension_semantics<parallel>], iteration_bounds = array<i64: 2>, scalar_prefetch = 0 : i64, scratch_operands = 1 : i64, tpu.core_type = #tpu.core_type<tc>, window_params = [{transform_indices = @transform_0, window_bounds = array<i64: 1, 18, 18, 8>}, {pipeline_mode = #tpu.pipeline_mode<synchronous>, transform_indices = @transform_1, window_bounds = array<i64: 72, 8>}, {transform_indices = @transform_2, window_bounds = array<i64: 256, 8>}, {transform_indices = @transform_3, window_bounds = array<i64: 1, 1, 8>}, {transform_indices = @transform_4, window_bounds = array<i64: 1, 1, 8>}]} {
    %c0 = arith.constant 0 : index
    %c0_0 = arith.constant 0 : index
    %c0_1 = arith.constant 0 : index
    %c0_2 = arith.constant 0 : index
    %0 = vector.load %arg1[%c0, %c0_0, %c0_1, %c0_2] : memref<1x18x18x8xf32, #tpu.memory_space<vmem>>, vector<1x16x16x8xf32>
    %c0_3 = arith.constant 0 : index
    %c0_4 = arith.constant 0 : index
    %c0_5 = arith.constant 0 : index
    %c0_6 = arith.constant 0 : index
    %1 = vector.load %arg6[%c0_3, %c0_4, %c0_5, %c0_6] : memref<1x16x16x72xf32, #tpu.memory_space<vmem>>, vector<1x16x16x8xf32>
    tpu.vector_store %arg6[%c0_3, %c0_4, %c0_5, %c0_6], %0 {strides = array<i32>} : memref<1x16x16x72xf32, #tpu.memory_space<vmem>>, vector<1x16x16x8xf32>,
    %c0_7 = arith.constant 0 : index
    %c0_8 = arith.constant 0 : index
    %c1 = arith.constant 1 : index
    %c0_9 = arith.constant 0 : index
    %2 = vector.load %arg1[%c0_7, %c0_8, %c1, %c0_9] : memref<1x18x18x8xf32, #tpu.memory_space<vmem>>, vector<1x16x16x8xf32>
    %c0_10 = arith.constant 0 : index
    %c0_11 = arith.constant 0 : index
    %c0_12 = arith.constant 0 : index
    %c8 = arith.constant 8 : index
    %3 = vector.load %arg6[%c0_10, %c0_11, %c0_12, %c8] : memref<1x16x16x72xf32, #tpu.memory_space<vmem>>, vector<1x16x16x8xf32>
    tpu.vector_store %arg6[%c0_10, %c0_11, %c0_12, %c8], %2 {strides = array<i32>} : memref<1x16x16x72xf32, #tpu.memory_space<vmem>>, vector<1x16x16x8xf32>,
    %c0_13 = arith.constant 0 : index
    %c0_14 = arith.constant 0 : index
    %c2 = arith.constant 2 : index
    %c0_15 = arith.constant 0 : index
    %4 = vector.load %arg1[%c0_13, %c0_14, %c2, %c0_15] : memref<1x18x18x8xf32, #tpu.memory_space<vmem>>, vector<1x16x16x8xf32>
    %c0_16 = arith.constant 0 : index
    %c0_17 = arith.constant 0 : index
    %c0_18 = arith.constant 0 : index
    %c16 = arith.constant 16 : index
    %5 = vector.load %arg6[%c0_16, %c0_17, %c0_18, %c16] : memref<1x16x16x72xf32, #tpu.memory_space<vmem>>, vector<1x16x16x8xf32>
    tpu.vector_store %arg6[%c0_16, %c0_17, %c0_18, %c16], %4 {strides = array<i32>} : memref<1x16x16x72xf32, #tpu.memory_space<vmem>>, vector<1x16x16x8xf32>,
    %c0_19 = arith.constant 0 : index
    %c1_20 = arith.constant 1 : index
    %c0_21 = arith.constant 0 : index
    %c0_22 = arith.constant 0 : index
    %6 = vector.load %arg1[%c0_19, %c1_20, %c0_21, %c0_22] : memref<1x18x18x8xf32, #tpu.memory_space<vmem>>, vector<1x16x16x8xf32>
    %c0_23 = arith.constant 0 : index
    %c0_24 = arith.constant 0 : index
    %c0_25 = arith.constant 0 : index
    %c24 = arith.constant 24 : index
    %7 = vector.load %arg6[%c0_23, %c0_24, %c0_25, %c24] : memref<1x16x16x72xf32, #tpu.memory_space<vmem>>, vector<1x16x16x8xf32>
    tpu.vector_store %arg6[%c0_23, %c0_24, %c0_25, %c24], %6 {strides = array<i32>} : memref<1x16x16x72xf32, #tpu.memory_space<vmem>>, vector<1x16x16x8xf32>,
    %c0_26 = arith.constant 0 : index
    %c1_27 = arith.constant 1 : index
    %c1_28 = arith.constant 1 : index
    %c0_29 = arith.constant 0 : index
    %8 = vector.load %arg1[%c0_26, %c1_27, %c1_28, %c0_29] : memref<1x18x18x8xf32, #tpu.memory_space<vmem>>, vector<1x16x16x8xf32>
    %c0_30 = arith.constant 0 : index
    %c0_31 = arith.constant 0 : index
    %c0_32 = arith.constant 0 : index
    %c32 = arith.constant 32 : index
    %9 = vector.load %arg6[%c0_30, %c0_31, %c0_32, %c32] : memref<1x16x16x72xf32, #tpu.memory_space<vmem>>, vector<1x16x16x8xf32>
    tpu.vector_store %arg6[%c0_30, %c0_31, %c0_32, %c32], %8 {strides = array<i32>} : memref<1x16x16x72xf32, #tpu.memory_space<vmem>>, vector<1x16x16x8xf32>,
    %c0_33 = arith.constant 0 : index
    %c1_34 = arith.constant 1 : index
    %c2_35 = arith.constant 2 : index
    %c0_36 = arith.constant 0 : index
    %10 = vector.load %arg1[%c0_33, %c1_34, %c2_35, %c0_36] : memref<1x18x18x8xf32, #tpu.memory_space<vmem>>, vector<1x16x16x8xf32>
    %c0_37 = arith.constant 0 : index
    %c0_38 = arith.constant 0 : index
    %c0_39 = arith.constant 0 : index
    %c40 = arith.constant 40 : index
    %11 = vector.load %arg6[%c0_37, %c0_38, %c0_39, %c40] : memref<1x16x16x72xf32, #tpu.memory_space<vmem>>, vector<1x16x16x8xf32>
    tpu.vector_store %arg6[%c0_37, %c0_38, %c0_39, %c40], %10 {strides = array<i32>} : memref<1x16x16x72xf32, #tpu.memory_space<vmem>>, vector<1x16x16x8xf32>,
    %c0_40 = arith.constant 0 : index
    %c2_41 = arith.constant 2 : index
    %c0_42 = arith.constant 0 : index
    %c0_43 = arith.constant 0 : index
    %12 = vector.load %arg1[%c0_40, %c2_41, %c0_42, %c0_43] : memref<1x18x18x8xf32, #tpu.memory_space<vmem>>, vector<1x16x16x8xf32>
    %c0_44 = arith.constant 0 : index
    %c0_45 = arith.constant 0 : index
    %c0_46 = arith.constant 0 : index
    %c48 = arith.constant 48 : index
    %13 = vector.load %arg6[%c0_44, %c0_45, %c0_46, %c48] : memref<1x16x16x72xf32, #tpu.memory_space<vmem>>, vector<1x16x16x8xf32>
    tpu.vector_store %arg6[%c0_44, %c0_45, %c0_46, %c48], %12 {strides = array<i32>} : memref<1x16x16x72xf32, #tpu.memory_space<vmem>>, vector<1x16x16x8xf32>,
    %c0_47 = arith.constant 0 : index
    %c2_48 = arith.constant 2 : index
    %c1_49 = arith.constant 1 : index
    %c0_50 = arith.constant 0 : index
    %14 = vector.load %arg1[%c0_47, %c2_48, %c1_49, %c0_50] : memref<1x18x18x8xf32, #tpu.memory_space<vmem>>, vector<1x16x16x8xf32>
    %c0_51 = arith.constant 0 : index
    %c0_52 = arith.constant 0 : index
    %c0_53 = arith.constant 0 : index
    %c56 = arith.constant 56 : index
    %15 = vector.load %arg6[%c0_51, %c0_52, %c0_53, %c56] : memref<1x16x16x72xf32, #tpu.memory_space<vmem>>, vector<1x16x16x8xf32>
    tpu.vector_store %arg6[%c0_51, %c0_52, %c0_53, %c56], %14 {strides = array<i32>} : memref<1x16x16x72xf32, #tpu.memory_space<vmem>>, vector<1x16x16x8xf32>,
    %c0_54 = arith.constant 0 : index
    %c2_55 = arith.constant 2 : index
    %c2_56 = arith.constant 2 : index
    %c0_57 = arith.constant 0 : index
    %16 = vector.load %arg1[%c0_54, %c2_55, %c2_56, %c0_57] : memref<1x18x18x8xf32, #tpu.memory_space<vmem>>, vector<1x16x16x8xf32>
    %c0_58 = arith.constant 0 : index
    %c0_59 = arith.constant 0 : index
    %c0_60 = arith.constant 0 : index
    %c64 = arith.constant 64 : index
    %17 = vector.load %arg6[%c0_58, %c0_59, %c0_60, %c64] : memref<1x16x16x72xf32, #tpu.memory_space<vmem>>, vector<1x16x16x8xf32>
    tpu.vector_store %arg6[%c0_58, %c0_59, %c0_60, %c64], %16 {strides = array<i32>} : memref<1x16x16x72xf32, #tpu.memory_space<vmem>>, vector<1x16x16x8xf32>,
    %c0_61 = arith.constant 0 : index
    %c0_62 = arith.constant 0 : index
    %c0_63 = arith.constant 0 : index
    %c0_64 = arith.constant 0 : index
    %18 = vector.load %arg6[%c0_61, %c0_62, %c0_63, %c0_64] : memref<1x16x16x72xf32, #tpu.memory_space<vmem>>, vector<1x16x16x72xf32>
    %19 = vector.shape_cast %18 : vector<1x16x16x72xf32> to vector<256x72xf32>
    %c0_65 = arith.constant 0 : index
    %c0_66 = arith.constant 0 : index
    %20 = vector.load %arg2[%c0_65, %c0_66] : memref<72x8xf32, #tpu.memory_space<vmem>>, vector<72x8xf32>
    %cst = arith.constant dense<0.000000e+00> : vector<256x8xf32>
    %21 = tpu.matmul %19, %20, %cst {dimension_numbers = #tpu.dot_dimension_numbers<[1], [0], [0], [1], [0, 0, 1, 1], [], []>} : vector<256x72xf32>, vector<72x8xf32>, vector<256x8xf32> -> vector<256x8xf32>
    %c0_67 = arith.constant 0 : index
    %c0_68 = arith.constant 0 : index
    %22 = vector.load %arg3[%c0_67, %c0_68] : memref<256x8xf32, #tpu.memory_space<vmem>>, vector<256x8xf32>
    tpu.vector_store %arg3[%c0_67, %c0_68], %21 {strides = array<i32>} : memref<256x8xf32, #tpu.memory_space<vmem>>, vector<256x8xf32>,
    %cst_69 = arith.constant dense<0.000000e+00> : vector<8xf32>
    %23 = vector.multi_reduction <add>, %21, %cst_69 [0] : vector<256x8xf32> to vector<8xf32>
    %24 = vector.shape_cast %23 : vector<8xf32> to vector<1x8xf32>
    %25 = vector.shape_cast %24 : vector<1x8xf32> to vector<1x1x8xf32>
    %c0_70 = arith.constant 0 : index
    %c0_71 = arith.constant 0 : index
    %c0_72 = arith.constant 0 : index
    %26 = vector.load %arg4[%c0_70, %c0_71, %c0_72] : memref<1x1x8xf32, #tpu.memory_space<vmem>>, vector<1x1x8xf32>
    tpu.vector_store %arg4[%c0_70, %c0_71, %c0_72], %25 {strides = array<i32>} : memref<1x1x8xf32, #tpu.memory_space<vmem>>, vector<1x1x8xf32>,
    %27 = arith.mulf %21, %21 : vector<256x8xf32>
    %cst_73 = arith.constant dense<0.000000e+00> : vector<8xf32>
    %28 = vector.multi_reduction <add>, %27, %cst_73 [0] : vector<256x8xf32> to vector<8xf32>
    %29 = vector.shape_cast %28 : vector<8xf32> to vector<1x8xf32>
    %30 = vector.shape_cast %29 : vector<1x8xf32> to vector<1x1x8xf32>
    %c0_74 = arith.constant 0 : index
    %c0_75 = arith.constant 0 : index
    %c0_76 = arith.constant 0 : index
    %31 = vector.load %arg5[%c0_74, %c0_75, %c0_76] : memref<1x1x8xf32, #tpu.memory_space<vmem>>, vector<1x1x8xf32>
    tpu.vector_store %arg5[%c0_74, %c0_75, %c0_76], %30 {strides = array<i32>} : memref<1x1x8xf32, #tpu.memory_space<vmem>>, vector<1x1x8xf32>,
    return
  }
  func.func @transform_0(%arg0: i32) -> (i32, i32, i32, i32) {
    %c0_i32 = arith.constant 0 : i32
    %c0_i32_0 = arith.constant 0 : i32
    %c0_i32_1 = arith.constant 0 : i32
    %c0_i32_2 = arith.constant 0 : i32
    return %arg0, %c0_i32, %c0_i32_0, %c0_i32_1 : i32, i32, i32, i32
  }
  func.func @transform_1(%arg0: i32) -> (i32, i32) {
    %c0_i32 = arith.constant 0 : i32
    %c0_i32_0 = arith.constant 0 : i32
    %c0_i32_1 = arith.constant 0 : i32
    return %c0_i32, %c0_i32_0 : i32, i32
  }
  func.func @transform_2(%arg0: i32) -> (i32, i32) {
    %c0_i32 = arith.constant 0 : i32
    %c0_i32_0 = arith.constant 0 : i32
    return %arg0, %c0_i32 : i32, i32
  }
  func.func @transform_3(%arg0: i32) -> (i32, i32, i32) {
    %c0_i32 = arith.constant 0 : i32
    %c0_i32_0 = arith.constant 0 : i32
    %c0_i32_1 = arith.constant 0 : i32
    return %arg0, %c0_i32, %c0_i32_0 : i32, i32, i32
  }
  func.func @transform_4(%arg0: i32) -> (i32, i32, i32) {
    %c0_i32 = arith.constant 0 : i32
    %c0_i32_0 = arith.constant 0 : i32
    %c0_i32_1 = arith.constant 0 : i32
    return %arg0, %c0_i32, %c0_i32_0 : i32, i32, i32
  }
}

module attributes {stable_mosaic.version = 11 : i64} {
  func.func @_bn_add_act_kernel(%arg0: i32, %arg1: memref<2x2048xf32, #tpu.memory_space<vmem>>, %arg2: memref<2x2048xf32, #tpu.memory_space<vmem>>, %arg3: memref<1x2048xf32, #tpu.memory_space<vmem>>, %arg4: memref<1x2048xf32, #tpu.memory_space<vmem>>, %arg5: memref<2x2048xf32, #tpu.memory_space<vmem>>) attributes {dimension_semantics = [#tpu.dimension_semantics<parallel>], iteration_bounds = array<i64: 1>, scalar_prefetch = 0 : i64, scratch_operands = 0 : i64, tpu.core_type = #tpu.core_type<tc>, window_params = [{transform_indices = @transform_0, window_bounds = array<i64: 2, 2048>}, {transform_indices = @transform_1, window_bounds = array<i64: 2, 2048>}, {pipeline_mode = #tpu.pipeline_mode<synchronous>, transform_indices = @transform_2, window_bounds = array<i64: 1, 2048>}, {pipeline_mode = #tpu.pipeline_mode<synchronous>, transform_indices = @transform_3, window_bounds = array<i64: 1, 2048>}, {transform_indices = @transform_4, window_bounds = array<i64: 2, 2048>}]} {
    %c0 = arith.constant 0 : index
    %c0_0 = arith.constant 0 : index
    %0 = vector.load %arg1[%c0, %c0_0] : memref<2x2048xf32, #tpu.memory_space<vmem>>, vector<2x2048xf32>
    %c0_1 = arith.constant 0 : index
    %c0_2 = arith.constant 0 : index
    %1 = vector.load %arg3[%c0_1, %c0_2] : memref<1x2048xf32, #tpu.memory_space<vmem>>, vector<1x2048xf32>
    %2 = vector.broadcast %1 : vector<1x2048xf32> to vector<2x2048xf32>
    %3 = arith.mulf %0, %2 : vector<2x2048xf32>
    %c0_3 = arith.constant 0 : index
    %c0_4 = arith.constant 0 : index
    %4 = vector.load %arg4[%c0_3, %c0_4] : memref<1x2048xf32, #tpu.memory_space<vmem>>, vector<1x2048xf32>
    %5 = vector.broadcast %4 : vector<1x2048xf32> to vector<2x2048xf32>
    %6 = arith.addf %3, %5 : vector<2x2048xf32>
    %c0_5 = arith.constant 0 : index
    %c0_6 = arith.constant 0 : index
    %7 = vector.load %arg2[%c0_5, %c0_6] : memref<2x2048xf32, #tpu.memory_space<vmem>>, vector<2x2048xf32>
    %8 = arith.addf %6, %7 : vector<2x2048xf32>
    %cst = arith.constant 0.000000e+00 : f32
    %9 = vector.broadcast %cst : f32 to vector<2x2048xf32>
    %10 = arith.maximumf %8, %9 : vector<2x2048xf32>
    %c0_7 = arith.constant 0 : index
    %c0_8 = arith.constant 0 : index
    %11 = vector.load %arg5[%c0_7, %c0_8] : memref<2x2048xf32, #tpu.memory_space<vmem>>, vector<2x2048xf32>
    tpu.vector_store %arg5[%c0_7, %c0_8], %10 {strides = array<i32>} : memref<2x2048xf32, #tpu.memory_space<vmem>>, vector<2x2048xf32>,
    return
  }
  func.func @transform_0(%arg0: i32) -> (i32, i32) {
    %c0_i32 = arith.constant 0 : i32
    %c0_i32_0 = arith.constant 0 : i32
    return %arg0, %c0_i32 : i32, i32
  }
  func.func @transform_1(%arg0: i32) -> (i32, i32) {
    %c0_i32 = arith.constant 0 : i32
    %c0_i32_0 = arith.constant 0 : i32
    return %arg0, %c0_i32 : i32, i32
  }
  func.func @transform_2(%arg0: i32) -> (i32, i32) {
    %c0_i32 = arith.constant 0 : i32
    %c0_i32_0 = arith.constant 0 : i32
    %c0_i32_1 = arith.constant 0 : i32
    return %c0_i32, %c0_i32_0 : i32, i32
  }
  func.func @transform_3(%arg0: i32) -> (i32, i32) {
    %c0_i32 = arith.constant 0 : i32
    %c0_i32_0 = arith.constant 0 : i32
    %c0_i32_1 = arith.constant 0 : i32
    return %c0_i32, %c0_i32_0 : i32, i32
  }
  func.func @transform_4(%arg0: i32) -> (i32, i32) {
    %c0_i32 = arith.constant 0 : i32
    %c0_i32_0 = arith.constant 0 : i32
    return %arg0, %c0_i32 : i32, i32
  }
}

</mosaic_0001>

<bundles_post_ra>
// kernel: tile.28
= control target key start
LH: loop header
LB: loop body
LE: loop exit
PB: predicated region body
PF: predicated region fallthrough
CT: control target
= control target key end

     0   :  { %s208_s0 = inlined_call_operand.vmem [shape: f32[8], index: 0, kind: input, shape index: {}]   ;;  %s209_s1 = inlined_call_operand.vmem [shape: f32[256,8], index: 1, kind: output, shape index: {}]  }
   0x1   :  { %v4_v0 = vld [vmem:[%s208_s0] ss:$0 sm:$0xff] }
   0x2   :  { %5 = vst [vmem:[%s209_s1] sm:$0xff] %v4_v0 }
   0x3   :  { %68 = vst [vmem:[%s209_s1 + $0x8] sm:$0xff] %v4_v0 }
   0x4   :  { %69 = vst [vmem:[%s209_s1 + $0x10] sm:$0xff] %v4_v0 }
   0x5   :  { %70 = vst [vmem:[%s209_s1 + $0x18] sm:$0xff] %v4_v0 }
   0x6   :  { %71 = vst [vmem:[%s209_s1 + $0x20] sm:$0xff] %v4_v0 }
   0x7   :  { %72 = vst [vmem:[%s209_s1 + $0x28] sm:$0xff] %v4_v0 }
   0x8   :  { %73 = vst [vmem:[%s209_s1 + $0x30] sm:$0xff] %v4_v0 }
   0x9   :  { %74 = vst [vmem:[%s209_s1 + $0x38] sm:$0xff] %v4_v0 }
   0xa   :  { %75 = vst [vmem:[%s209_s1 + $0x40] sm:$0xff] %v4_v0 }
   0xb   :  { %76 = vst [vmem:[%s209_s1 + $0x48] sm:$0xff] %v4_v0 }
   0xc   :  { %77 = vst [vmem:[%s209_s1 + $0x50] sm:$0xff] %v4_v0 }
   0xd   :  { %78 = vst [vmem:[%s209_s1 + $0x58] sm:$0xff] %v4_v0 }
   0xe   :  { %79 = vst [vmem:[%s209_s1 + $0x60] sm:$0xff] %v4_v0 }
   0xf   :  { %80 = vst [vmem:[%s209_s1 + $0x68] sm:$0xff] %v4_v0 }
  0x10   :  { %81 = vst [vmem:[%s209_s1 + $0x70] sm:$0xff] %v4_v0 }
  0x11   :  { %82 = vst [vmem:[%s209_s1 + $0x78] sm:$0xff] %v4_v0 }
  0x12   :  { %83 = vst [vmem:[%s209_s1 + $0x80] sm:$0xff] %v4_v0 }
  0x13   :  { %84 = vst [vmem:[%s209_s1 + $0x88] sm:$0xff] %v4_v0 }
  0x14   :  { %85 = vst [vmem:[%s209_s1 + $0x90] sm:$0xff] %v4_v0 }
  0x15   :  { %86 = vst [vmem:[%s209_s1 + $0x98] sm:$0xff] %v4_v0 }
  0x16   :  { %87 = vst [vmem:[%s209_s1 + $0xa0] sm:$0xff] %v4_v0 }
  0x17   :  { %88 = vst [vmem:[%s209_s1 + $0xa8] sm:$0xff] %v4_v0 }
  0x18   :  { %89 = vst [vmem:[%s209_s1 + $0xb0] sm:$0xff] %v4_v0 }
  0x19   :  { %90 = vst [vmem:[%s209_s1 + $0xb8] sm:$0xff] %v4_v0 }
  0x1a   :  { %91 = vst [vmem:[%s209_s1 + $0xc0] sm:$0xff] %v4_v0 }
  0x1b   :  { %92 = vst [vmem:[%s209_s1 + $0xc8] sm:$0xff] %v4_v0 }
  0x1c   :  { %93 = vst [vmem:[%s209_s1 + $0xd0] sm:$0xff] %v4_v0 }
  0x1d   :  { %94 = vst [vmem:[%s209_s1 + $0xd8] sm:$0xff] %v4_v0 }
  0x1e   :  { %95 = vst [vmem:[%s209_s1 + $0xe0] sm:$0xff] %v4_v0 }
  0x1f   :  { %96 = vst [vmem:[%s209_s1 + $0xe8] sm:$0xff] %v4_v0 }
  0x20   :  { %97 = vst [vmem:[%s209_s1 + $0xf0] sm:$0xff] %v4_v0 }
  0x21   :  { %98 = vst [vmem:[%s209_s1 + $0xf8] sm:$0xff] %v4_v0 }

// kernel: tile.29
= control target key start
LH: loop header
LB: loop body
LE: loop exit
PB: predicated region body
PF: predicated region fallthrough
CT: control target
= control target key end

     0   :  { %vm6_vm0 = vcmask 1043458   ;;  %vm10_vm1 = vcmask 1045508   ;;  %vm14_vm2 = vcmask 1047558   ;;  %s43_s6 = smov 3  ;;  %s46_s7 = smov 12  ;;  %vm16_vm3 = vcmask 64512   ;;  %s1589_s0 = inlined_call_operand.vmem [shape: f32[256,8], index: 0, kind: input, shape index: {}]   ;;  %s1590_s1 = inlined_call_operand.vmem [shape: f32[1,2048], index: 1, kind: output, shape index: {}]  }
   0x1   :  { %v862_v0 = vld [vmem:[%s1589_s0 + $0xf] ss:$16 sm:%s43_s6]   ;;  %s51_s12 = smov 48  ;;  %s56_s13 = smov 192  ;;  %vm62_vm4 = vcmask 1048512   ;;  %vm110_vm5 = vcmask 982912  }
   0x2   :  { %v863_v1 = vld [vmem:[%s1589_s0 + $0xf] ss:$16 sm:%s46_s7]   ;;  %s91_s18 = smov 3  ;;  %s94_s21 = smov 12  ;;  %vm158_vm6 = vcmask 917312   ;;  %vm206_vm7 = vcmask 851712  }
   0x3   :  { %v49_v2 = vsel %vm6_vm0, %v863_v1, %v862_v0  ;;  %v864_v3 = vld [vmem:[%s1589_s0 + $0xf] ss:$16 sm:%s51_s12]   ;;  %v870_v6 = vld [vmem:[%s1589_s0 + $0xe] ss:$16 sm:%s91_s18]   ;;  %s99_s22 = smov 48  ;;  %s104_s27 = smov 192 }
   0x4   :  { %v865_v4 = vld [vmem:[%s1589_s0 + $0xf] ss:$16 sm:%s56_s13]   ;;  %v54_v5 = vsel %vm10_vm1, %v864_v3, %v49_v2  ;;  %v871_v8 = vld [vmem:[%s1589_s0 + $0xe] ss:$16 sm:%s94_s21]   ;;  %s1012_s28 = smov 120   ;;  %s66_s2 = smov 3 }
   0x5   :  { %v59_v7 = vsel %vm14_vm2, %v865_v4, %v54_v5  ;;  %v872_v9 = vld [vmem:[%s1589_s0 + $0xe] ss:$16 sm:%s99_s22]   ;;  %v97_v10 = vsel %vm6_vm0, %v871_v8, %v870_v6  ;;  %s69_s3 = smov 12  ;;  %v866_v13 = vld [vmem:[%s1589_s0 + $0x8f] ss:$16 sm:%s66_s2]   ;;  %s74_s8 = smov 48 }
   0x6   :  { %60 = vrot.lane.b32.xlu0 %v59_v7, %s1012_s28  ;;  %v873_v11 = vld [vmem:[%s1589_s0 + $0xe] ss:$16 sm:%s104_s27]   ;;  %v102_v12 = vsel %vm10_vm1, %v872_v9, %v97_v10  ;;  %s79_s9 = smov 192  ;;  %s114_s14 = smov 3  ;;  %vm254_vm8 = vcmask 786112   ;;  %vm302_vm9 = vcmask 720512  }
   0x7   :  { %v867_v14 = vld [vmem:[%s1589_s0 + $0x8f] ss:$16 sm:%s69_s3]   ;;  %v107_v15 = vsel %vm14_vm2, %v873_v11, %v102_v12  ;;  %s117_s15 = smov 12  ;;  %s1013_s16 = smov 112   ;;  %v874_v20 = vld [vmem:[%s1589_s0 + $0x8e] ss:$16 sm:%s114_s14]  }
   0x8   :  { %v72_v16 = vsel %vm6_vm0, %v867_v14, %v866_v13  ;;  %v868_v17 = vld [vmem:[%s1589_s0 + $0x8f] ss:$16 sm:%s74_s8]   ;;  %108 = vrot.lane.b32.xlu1 %v107_v15, %s1013_s16  ;;  %s122_s19 = smov 48  ;;  %s127_s20 = smov 192  ;;  %vm350_vm10 = vcmask 654912   ;;  %vm398_vm11 = vcmask 589312  }
   0x9   :  { %v869_v18 = vld [vmem:[%s1589_s0 + $0x8f] ss:$16 sm:%s79_s9]   ;;  %v77_v19 = vsel %vm10_vm1, %v868_v17, %v72_v16  ;;  %v875_v21 = vld [vmem:[%s1589_s0 + $0x8e] ss:$16 sm:%s117_s15]   ;;  %s187_s25 = smov 3  ;;  %s190_s26 = smov 12 }
   0xa   :  { %v876_v22 = vld [vmem:[%s1589_s0 + $0x8e] ss:$16 sm:%s122_s19]   ;;  %v82_v23 = vsel %vm14_vm2, %v869_v18, %v77_v19  ;;  %v120_v24 = vsel %vm6_vm0, %v875_v21, %v874_v20  ;;  %v886_v26 = vld [vmem:[%s1589_s0 + $0xc] ss:$16 sm:%s187_s25]   ;;  %s195_s3 = smov 48  ;;  %s200_s6 = smov 192 }
   0xb   :  { %v877_v25 = vld [vmem:[%s1589_s0 + $0x8e] ss:$16 sm:%s127_s20]   ;;  %v125_v27 = vsel %vm10_vm1, %v876_v22, %v120_v24  ;;  %v887_v28 = vld [vmem:[%s1589_s0 + $0xc] ss:$16 sm:%s190_s26]   ;;  %s210_s7 = smov 3  ;;  %s213_s12 = smov 12 }
   0xc   :  { %v193_v29 = vsel %vm6_vm0, %v887_v28, %v886_v26  ;;  %v888_v30 = vld [vmem:[%s1589_s0 + $0xc] ss:$16 sm:%s195_s3]   ;;  %s218_s13 = smov 48  ;;  %v130_v32 = vsel %vm14_vm2, %v877_v25, %v125_v27  ;;  %s223_s15 = smov 192  ;;  %vm446_vm12 = vcmask 523712   ;;  %vm494_vm13 = vcmask 458112  }
   0xd   :  { %v890_v31 = vld [vmem:[%s1589_s0 + $0x8c] ss:$16 sm:%s210_s7]   ;;  %s258_s17 = smov 3  ;;  %s261_s18 = smov 12  ;;  %v198_v34 = vsel %vm10_vm1, %v888_v30, %v193_v29  ;;  %vm542_vm14 = vcmask 392512   ;;  %vm590_vm15 = vcmask 326912  }
   0xe   :  { %83 = vrot.lane.b32.xlu0 %v82_v23, %s1012_s28  ;;  %v891_v33 = vld [vmem:[%s1589_s0 + $0x8c] ss:$16 sm:%s213_s12]   ;;  %s266_s23 = smov 48  ;;  %s139_s27 = smov 3 }
   0xf   :  { %v889_v35 = vld [vmem:[%s1589_s0 + $0xc] ss:$16 sm:%s200_s6]   ;;  %v216_v36 = vsel %vm6_vm0, %v891_v33, %v890_v31  ;;  %v898_v39 = vld [vmem:[%s1589_s0 + $0x8b] ss:$16 sm:%s258_s17]   ;;  %s142_s29 = smov 12  ;;  %s147_s5 = smov 48 }
  0x10   :  { %v892_v37 = vld [vmem:[%s1589_s0 + $0x8c] ss:$16 sm:%s218_s13]   ;;  %131 = vrot.lane.b32.xlu1 %v130_v32, %s1013_s16  ;;  %s152_s6 = smov 192  ;;  %v203_v42 = vsel %vm14_vm2, %v889_v35, %v198_v34  ;;  %s271_s7 = smov 192 }
  0x11   :  { %v893_v38 = vld [vmem:[%s1589_s0 + $0x8c] ss:$16 sm:%s223_s15]   ;;  %v899_v40 = vld [vmem:[%s1589_s0 + $0x8b] ss:$16 sm:%s261_s18]   ;;  %v221_v43 = vsel %vm10_vm1, %v892_v37, %v216_v36  ;;  %s283_s12 = smov 3  ;;  %s286_s17 = smov 12 }
  0x12   :  { %v878_v41 = vld [vmem:[%s1589_s0 + $0xd] ss:$16 sm:%s139_s27]   ;;  %v900_v46 = vld [vmem:[%s1589_s0 + $0x8b] ss:$16 sm:%s266_s23]   ;;  %v264_v49 = vsel %vm6_vm0, %v899_v40, %v898_v39  ;;  %s291_s22 = smov 48  ;;  %s296_s23 = smov 192  ;;  %v226_v53 = vsel %vm14_vm2, %v893_v38, %v221_v43 }
  0x13   :  { %v879_v44 = vld [vmem:[%s1589_s0 + $0xd] ss:$16 sm:%s142_s29]   ;;  %v902_v51 = vld [vmem:[%s1589_s0 + $0xa] ss:$16 sm:%s283_s12]   ;;  %s1014_s16 = smov 96   ;;  %s331_s24 = smov 3  ;;  %v269_v56 = vsel %vm10_vm1, %v900_v46, %v264_v49 }
  0x14   :  { %v880_v45 = vld [vmem:[%s1589_s0 + $0xd] ss:$16 sm:%s147_s5]   ;;  %v145_v47 = vsel %vm6_vm0, %v879_v44, %v878_v41  ;;  %v903_v52 = vld [vmem:[%s1589_s0 + $0xa] ss:$16 sm:%s286_s17]   ;;  %s334_s25 = smov 12  ;;  %s1015_s29 = smov 104  }
  0x15   :  { %v881_v48 = vld [vmem:[%s1589_s0 + $0xd] ss:$16 sm:%s152_s6]   ;;  %v150_v50 = vsel %vm10_vm1, %v880_v45, %v145_v47  ;;  %v901_v55 = vld [vmem:[%s1589_s0 + $0x8b] ss:$16 sm:%s271_s7]   ;;  %v289_v57 = vsel %vm6_vm0, %v903_v52, %v902_v51  ;;  %s339_s5 = smov 48  ;;  %s162_s6 = smov 3 }
  0x16   :  { %204 = vrot.lane.b32.xlu0 %v203_v42, %s1014_s16  ;;  %v155_v54 = vsel %vm14_vm2, %v881_v48, %v150_v50  ;;  %v904_v58 = vld [vmem:[%s1589_s0 + $0xa] ss:$16 sm:%s291_s22]   ;;  %s165_s11 = smov 12  ;;  %s170_s12 = smov 48  ;;  %v274_v0 = vsel %vm14_vm2, %v901_v55, %v269_v56 }
  0x17   :  { %156 = vrot.lane.b32.xlu2 %v155_v54, %s1015_s29  ;;  %v910_v59 = vld [vmem:[%s1589_s0 + $0x9] ss:$16 sm:%s331_s24]   ;;  %s175_s17 = smov 192  ;;  %s354_s18 = smov 3  ;;  %v294_v1 = vsel %vm10_vm1, %v904_v58, %v289_v57 }
  0x18   :  { %227 = vrot.lane.b32.xlu1 %v226_v53, %s1014_s16  ;;  %v905_v60 = vld [vmem:[%s1589_s0 + $0xa] ss:$16 sm:%s296_s23]   ;;  %s344_s19 = smov 192  ;;  %s357_s16 = smov 12 }
  0x19   :  { %v911_v61 = vld [vmem:[%s1589_s0 + $0x9] ss:$16 sm:%s334_s25]   ;;  %v882_v62 = vld [vmem:[%s1589_s0 + $0x8d] ss:$16 sm:%s162_s6]   ;;  %s362_s26 = smov 48  ;;  %s402_s4 = smov 3  ;;  %v299_v11 = vsel %vm14_vm2, %v905_v60, %v294_v1 }
  0x1a   :  { %v883_v63 = vld [vmem:[%s1589_s0 + $0x8d] ss:$16 sm:%s165_s11]   ;;  %v912_v5 = vld [vmem:[%s1589_s0 + $0x9] ss:$16 sm:%s339_s5]   ;;  %v337_v7 = vsel %vm6_vm0, %v911_v61, %v910_v59  ;;  %s405_s5 = smov 12  ;;  %s1016_s6 = smov 88  }
  0x1b   :  { %v168_v2 = vsel %vm6_vm0, %v883_v63, %v882_v62  ;;  %v884_v3 = vld [vmem:[%s1589_s0 + $0x8d] ss:$16 sm:%s170_s12]   ;;  %v914_v9 = vld [vmem:[%s1589_s0 + $0x89] ss:$16 sm:%s354_s18]   ;;  %s367_s9 = smov 192  ;;  %s235_s11 = smov 3  ;;  %v342_v14 = vsel %vm10_vm1, %v912_v5, %v337_v7 }
  0x1c   :  { %v885_v4 = vld [vmem:[%s1589_s0 + $0x8d] ss:$16 sm:%s175_s17]   ;;  %v173_v6 = vsel %vm10_vm1, %v884_v3, %v168_v2  ;;  %v915_v10 = vld [vmem:[%s1589_s0 + $0x89] ss:$16 sm:%s357_s16]   ;;  %s238_s12 = smov 12  ;;  %s243_s17 = smov 48 }
  0x1d   :  { %v178_v8 = vsel %vm14_vm2, %v885_v4, %v173_v6  ;;  %v913_v12 = vld [vmem:[%s1589_s0 + $0x9] ss:$16 sm:%s344_s19]   ;;  %v360_v15 = vsel %vm6_vm0, %v915_v10, %v914_v9  ;;  %v922_v16 = vld [vmem:[%s1589_s0 + $0x88] ss:$16 sm:%s402_s4]   ;;  %s248_s18 = smov 192  ;;  %s1017_s19 = smov 80  }
  0x1e   :  { %275 = vrot.lane.b32.xlu0 %v274_v0, %s1016_s6  ;;  %v916_v13 = vld [vmem:[%s1589_s0 + $0x89] ss:$16 sm:%s362_s26]   ;;  %s410_s20 = smov 48  ;;  %s427_s26 = smov 3  ;;  %v347_v21 = vsel %vm14_vm2, %v913_v12, %v342_v14 }
  0x1f   :  { %179 = vrot.lane.b32.xlu2 %v178_v8, %s1015_s29  ;;  %v923_v17 = vld [vmem:[%s1589_s0 + $0x88] ss:$16 sm:%s405_s5]   ;;  %s430_s27 = smov 12  ;;  %v365_v22 = vsel %vm10_vm1, %v916_v13, %v360_v15  ;;  %s415_s3 = smov 192 }
  0x20   :  { %300 = vrot.lane.b32.xlu1 %v299_v11, %s1017_s19  ;;  %v894_v18 = vld [vmem:[%s1589_s0 + $0xb] ss:$16 sm:%s235_s11]   ;;  %v408_v28 = vsel %vm6_vm0, %v923_v17, %v922_v16  ;;  %s475_s13 = smov 3  ;;  %s478_s28 = smov 12 }
  0x21   :  { %v895_v19 = vld [vmem:[%s1589_s0 + $0xb] ss:$16 sm:%s238_s12]   ;;  %v917_v23 = vld [vmem:[%s1589_s0 + $0x89] ss:$16 sm:%s367_s9]   ;;  %s435_s9 = smov 48  ;;  %s1018_s14 = smov 72  }
  0x22   :  { %v896_v20 = vld [vmem:[%s1589_s0 + $0xb] ss:$16 sm:%s243_s17]   ;;  %v241_v24 = vsel %vm6_vm0, %v895_v19, %v894_v18  ;;  %v924_v26 = vld [vmem:[%s1589_s0 + $0x88] ss:$16 sm:%s410_s20]   ;;  %v370_v32 = vsel %vm14_vm2, %v917_v23, %v365_v22  ;;  %s309_s20 = smov 12  ;;  %s314_s22 = smov 48 }
  0x23   :  { %v897_v25 = vld [vmem:[%s1589_s0 + $0xb] ss:$16 sm:%s248_s18]   ;;  %v246_v27 = vsel %vm10_vm1, %v896_v20, %v241_v24  ;;  %v926_v30 = vld [vmem:[%s1589_s0 + $0x7] ss:$16 sm:%s427_s26]   ;;  %s306_s18 = smov 3  ;;  %s319_s23 = smov 192  ;;  %v413_v35 = vsel %vm10_vm1, %v924_v26, %v408_v28 }
  0x24   :  { %v251_v29 = vsel %vm14_vm2, %v897_v25, %v246_v27  ;;  %v927_v31 = vld [vmem:[%s1589_s0 + $0x7] ss:$16 sm:%s430_s27]   ;;  %v925_v33 = vld [vmem:[%s1589_s0 + $0x88] ss:$16 sm:%s415_s3]   ;;  %s440_s16 = smov 192  ;;  %s483_s3 = smov 48 }
  0x25   :  { %v928_v34 = vld [vmem:[%s1589_s0 + $0x7] ss:$16 sm:%s435_s9]   ;;  %v433_v36 = vsel %vm6_vm0, %v927_v31, %v926_v30  ;;  %v934_v37 = vld [vmem:[%s1589_s0 + $0x6] ss:$16 sm:%s475_s13]   ;;  %s498_s10 = smov 3  ;;  %s501_s11 = smov 12  ;;  %v418_v44 = vsel %vm14_vm2, %v925_v33, %v413_v35 }
  0x26   :  { %348 = vrot.lane.b32.xlu0 %v347_v21, %s1018_s14  ;;  %v935_v38 = vld [vmem:[%s1589_s0 + $0x6] ss:$16 sm:%s478_s28]   ;;  %v438_v45 = vsel %vm10_vm1, %v928_v34, %v433_v36  ;;  %s488_s28 = smov 192  ;;  %s506_s17 = smov 48 }
  0x27   :  { %252 = vrot.lane.b32.xlu2 %v251_v29, %s1016_s6  ;;  %v906_v39 = vld [vmem:[%s1589_s0 + $0x8a] ss:$16 sm:%s306_s18]   ;;  %s546_s18 = smov 3  ;;  %v481_v50 = vsel %vm6_vm0, %v935_v38, %v934_v37  ;;  %s1019_s24 = smov 64  }
  0x28   :  { %371 = vrot.lane.b32.xlu1 %v370_v32, %s1018_s14  ;;  %v907_v40 = vld [vmem:[%s1589_s0 + $0x8a] ss:$16 sm:%s309_s20]   ;;  %s387_s27 = smov 48  ;;  %s549_s2 = smov 12 }
  0x29   :  { %v312_v41 = vsel %vm6_vm0, %v907_v40, %v906_v39  ;;  %v908_v42 = vld [vmem:[%s1589_s0 + $0x8a] ss:$16 sm:%s314_s22]   ;;  %v929_v46 = vld [vmem:[%s1589_s0 + $0x7] ss:$16 sm:%s440_s16]   ;;  %s382_s16 = smov 12  ;;  %s511_s4 = smov 192 }
  0x2a   :  { %v909_v43 = vld [vmem:[%s1589_s0 + $0x8a] ss:$16 sm:%s319_s23]   ;;  %v317_v47 = vsel %vm10_vm1, %v908_v42, %v312_v41  ;;  %v936_v48 = vld [vmem:[%s1589_s0 + $0x6] ss:$16 sm:%s483_s3]   ;;  %s379_s23 = smov 3  ;;  %v443_v53 = vsel %vm14_vm2, %v929_v46, %v438_v45  ;;  %s392_s3 = smov 192 }
  0x2b   :  { %v322_v49 = vsel %vm14_vm2, %v909_v43, %v317_v47  ;;  %v938_v51 = vld [vmem:[%s1589_s0 + $0x86] ss:$16 sm:%s498_s10]   ;;  %v486_v56 = vsel %vm10_vm1, %v936_v48, %v481_v50  ;;  %v946_v58 = vld [vmem:[%s1589_s0 + $0x85] ss:$16 sm:%s546_s18]   ;;  %s554_s12 = smov 48  ;;  %s571_s20 = smov 3 }
  0x2c   :  { %v939_v52 = vld [vmem:[%s1589_s0 + $0x86] ss:$16 sm:%s501_s11]   ;;  %v918_v59 = vld [vmem:[%s1589_s0 + $0x8] ss:$16 sm:%s379_s23]   ;;  %s1020_s11 = smov 56   ;;  %s574_s6 = smov 12 }
  0x2d   :  { %v937_v54 = vld [vmem:[%s1589_s0 + $0x6] ss:$16 sm:%s488_s28]   ;;  %v504_v57 = vsel %vm6_vm0, %v939_v52, %v938_v51  ;;  %v919_v60 = vld [vmem:[%s1589_s0 + $0x8] ss:$16 sm:%s382_s16]   ;;  %s559_s23 = smov 192  ;;  %s579_s16 = smov 48 }
  0x2e   :  { %419 = vrot.lane.b32.xlu0 %v418_v44, %s1019_s24  ;;  %v940_v55 = vld [vmem:[%s1589_s0 + $0x86] ss:$16 sm:%s506_s17]   ;;  %v385_v61 = vsel %vm6_vm0, %v919_v60, %v918_v59  ;;  %v491_v2 = vsel %vm14_vm2, %v937_v54, %v486_v56  ;;  %s458_s5 = smov 48  ;;  %s1021_s7 = smov 48  }
  0x2f   :  { %323 = vrot.lane.b32.xlu2 %v322_v49, %s1017_s19  ;;  %v920_v62 = vld [vmem:[%s1589_s0 + $0x8] ss:$16 sm:%s387_s27]   ;;  %v509_v3 = vsel %vm10_vm1, %v940_v55, %v504_v57  ;;  %s450_s27 = smov 3  ;;  %s622_s13 = smov 12 }
  0x30   :  { %444 = vrot.lane.b32.xlu1 %v443_v53, %s1020_s11  ;;  %v947_v63 = vld [vmem:[%s1589_s0 + $0x85] ss:$16 sm:%s549_s2]   ;;  %v390_v0 = vsel %vm10_vm1, %v920_v62, %v385_v61  ;;  %s584_s15 = smov 192  ;;  %s627_s21 = smov 48 }
  0x31   :  { %v921_v1 = vld [vmem:[%s1589_s0 + $0x8] ss:$16 sm:%s392_s3]   ;;  %v941_v4 = vld [vmem:[%s1589_s0 + $0x86] ss:$16 sm:%s511_s4]   ;;  %v552_v7 = vsel %vm6_vm0, %v947_v63, %v946_v58  ;;  %s453_s4 = smov 12  ;;  %s642_s19 = smov 3 }
  0x32   :  { %v948_v5 = vld [vmem:[%s1589_s0 + $0x85] ss:$16 sm:%s554_s12]   ;;  %v395_v6 = vsel %vm14_vm2, %v921_v1, %v390_v0  ;;  %v950_v8 = vld [vmem:[%s1589_s0 + $0x4] ss:$16 sm:%s571_s20]   ;;  %v514_v10 = vsel %vm14_vm2, %v941_v4, %v509_v3  ;;  %s463_s12 = smov 192  ;;  %s645_s30 = smov 12 }
  0x33   :  { %v951_v9 = vld [vmem:[%s1589_s0 + $0x4] ss:$16 sm:%s574_s6]   ;;  %v949_v11 = vld [vmem:[%s1589_s0 + $0x85] ss:$16 sm:%s559_s23]   ;;  %v557_v14 = vsel %vm10_vm1, %v948_v5, %v552_v7  ;;  %s526_s9 = smov 12  ;;  %s531_s28 = smov 48 }
  0x34   :  { %v952_v12 = vld [vmem:[%s1589_s0 + $0x4] ss:$16 sm:%s579_s16]   ;;  %v930_v13 = vld [vmem:[%s1589_s0 + $0x87] ss:$16 sm:%s450_s27]   ;;  %v577_v15 = vsel %vm6_vm0, %v951_v9, %v950_v8  ;;  %v562_v23 = vsel %vm14_vm2, %v949_v11, %v557_v14  ;;  %s1022_s14 = smov 40   ;;  %s536_s6 = smov 192 }
  0x35   :  { %v931_v16 = vld [vmem:[%s1589_s0 + $0x87] ss:$16 sm:%s453_s4]   ;;  %v959_v21 = vld [vmem:[%s1589_s0 + $0x3] ss:$16 sm:%s622_s13]   ;;  %v582_v24 = vsel %vm10_vm1, %v952_v12, %v577_v15  ;;  %s632_s4 = smov 192  ;;  %s650_s13 = smov 48 }
  0x36   :  { %492 = vrot.lane.b32.xlu0 %v491_v2, %s1021_s7  ;;  %v932_v17 = vld [vmem:[%s1589_s0 + $0x87] ss:$16 sm:%s458_s5]   ;;  %v456_v18 = vsel %vm6_vm0, %v931_v16, %v930_v13  ;;  %s523_s5 = smov 3  ;;  %s655_s26 = smov 192 }
  0x37   :  { %396 = vrot.lane.b32.xlu2 %v395_v6, %s1019_s24  ;;  %s619_s24 = smov 3  ;;  %v933_v19 = vld [vmem:[%s1589_s0 + $0x87] ss:$16 sm:%s463_s12]   ;;  %v461_v22 = vsel %vm10_vm1, %v932_v17, %v456_v18  ;;  %s1023_s2 = smov 32  }
  0x38   :  { %515 = vrot.lane.b32.xlu1 %v514_v10, %s1021_s7  ;;  %v958_v20 = vld [vmem:[%s1589_s0 + $0x3] ss:$16 sm:%s619_s24]   ;;  %v466_v27 = vsel %vm14_vm2, %v933_v19, %v461_v22  ;;  %s698_s3 = smov 48  ;;  %s597_s7 = smov 12 }
  0x39   :  { %v953_v25 = vld [vmem:[%s1589_s0 + $0x4] ss:$16 sm:%s584_s15]   ;;  %v960_v26 = vld [vmem:[%s1589_s0 + $0x3] ss:$16 sm:%s627_s21]   ;;  %v625_v28 = vsel %vm6_vm0, %v959_v21, %v958_v20  ;;  %s693_s21 = smov 12  ;;  %s715_s12 = smov 3 }
  0x3a   :  { %v962_v29 = vld [vmem:[%s1589_s0 + $0x83] ss:$16 sm:%s642_s19]   ;;  %v587_v31 = vsel %vm14_vm2, %v953_v25, %v582_v24  ;;  %v942_v33 = vld [vmem:[%s1589_s0 + $0x5] ss:$16 sm:%s523_s5]   ;;  %v630_v35 = vsel %vm10_vm1, %v960_v26, %v625_v28  ;;  %s718_s24 = smov 12  ;;  %s602_s18 = smov 48 }
  0x3b   :  { %v963_v30 = vld [vmem:[%s1589_s0 + $0x83] ss:$16 sm:%s645_s30]   ;;  %v943_v34 = vld [vmem:[%s1589_s0 + $0x5] ss:$16 sm:%s526_s9]   ;;  %s594_s30 = smov 3  ;;  %s703_s22 = smov 192 }
  0x3c   :  { %v961_v32 = vld [vmem:[%s1589_s0 + $0x3] ss:$16 sm:%s632_s4]   ;;  %v648_v36 = vsel %vm6_vm0, %v963_v30, %v962_v29  ;;  %v529_v38 = vsel %vm6_vm0, %v943_v34, %v942_v33  ;;  %v944_v39 = vld [vmem:[%s1589_s0 + $0x5] ss:$16 sm:%s531_s28]   ;;  %s723_s27 = smov 48  ;;  %s1024_s19 = smov 24  }
  0x3d   :  { %v964_v37 = vld [vmem:[%s1589_s0 + $0x83] ss:$16 sm:%s650_s13]   ;;  %v534_v40 = vsel %vm10_vm1, %v944_v39, %v529_v38  ;;  %v945_v41 = vld [vmem:[%s1589_s0 + $0x5] ss:$16 sm:%s536_s6]   ;;  %v635_v44 = vsel %vm14_vm2, %v961_v32, %v630_v35  ;;  %s607_s4 = smov 192  ;;  %s667_s29 = smov 3 }
  0x3e   :  { %563 = vrot.lane.b32.xlu0 %v562_v23, %s1022_s14  ;;  %v971_v43 = vld [vmem:[%s1589_s0 + $0x82] ss:$16 sm:%s693_s21]   ;;  %v653_v45 = vsel %vm10_vm1, %v964_v37, %v648_v36  ;;  %v539_v49 = vsel %vm14_vm2, %v945_v41, %v534_v40  ;;  %s670_s10 = smov 12  ;;  %s675_s6 = smov 48 }
  0x3f   :  { %467 = vrot.lane.b32.xlu2 %v466_v27, %s1020_s11  ;;  %s690_s11 = smov 3  ;;  %v965_v46 = vld [vmem:[%s1589_s0 + $0x83] ss:$16 sm:%s655_s26]   ;;  %s680_s23 = smov 192 }
  0x40   :  { %588 = vrot.lane.b32.xlu1 %v587_v31, %s1023_s2  ;;  %v970_v42 = vld [vmem:[%s1589_s0 + $0x82] ss:$16 sm:%s690_s11]   ;;  %v658_v54 = vsel %vm14_vm2, %v965_v46, %v653_v45  ;;  %s1025_s11 = smov 16   ;;  %s741_s16 = smov 12 }
  0x41   :  { %v954_v47 = vld [vmem:[%s1589_s0 + $0x84] ss:$16 sm:%s594_s30]   ;;  %v972_v48 = vld [vmem:[%s1589_s0 + $0x82] ss:$16 sm:%s698_s3]   ;;  %v696_v51 = vsel %vm6_vm0, %v971_v43, %v970_v42  ;;  %s1026_s25 = smov 8   ;;  %s8_s30 = smov 48 }
  0x42   :  { %v955_v50 = vld [vmem:[%s1589_s0 + $0x84] ss:$16 sm:%s597_s7]   ;;  %v974_v52 = vld [vmem:[%s1589_s0 + $0x1] ss:$16 sm:%s715_s12]   ;;  %v701_v57 = vsel %vm10_vm1, %v972_v48, %v696_v51  ;;  %s12_s3 = smov 192  ;;  %s2_s8 = smov 3 }
  0x43   :  { %v975_v53 = vld [vmem:[%s1589_s0 + $0x1] ss:$16 sm:%s718_s24]   ;;  %v600_v55 = vsel %vm6_vm0, %v955_v50, %v954_v47  ;;  %v956_v56 = vld [vmem:[%s1589_s0 + $0x84] ss:$16 sm:%s602_s18]   ;;  %s4_s9 = smov 12  ;;  %s751_s15 = smov 192 }
  0x44   :  { %v973_v58 = vld [vmem:[%s1589_s0 + $0x82] ss:$16 sm:%s703_s22]   ;;  %v721_v59 = vsel %vm6_vm0, %v975_v53, %v974_v52  ;;  %v976_v60 = vld [vmem:[%s1589_s0 + $0x1] ss:$16 sm:%s723_s27]   ;;  %v605_v61 = vsel %vm10_vm1, %v956_v56, %v600_v55  ;;  %s20_s22 = smov 3 }
  0x45   :  { %v957_v62 = vld [vmem:[%s1589_s0 + $0x84] ss:$16 sm:%s607_s4]   ;;  %v706_v0 = vsel %vm14_vm2, %v973_v58, %v701_v57  ;;  %v726_v1 = vsel %vm10_vm1, %v976_v60, %v721_v59  ;;  %v966_v2 = vld [vmem:[%s1589_s0 + $0x2] ss:$16 sm:%s667_s29]  }
  0x46   :  { %636 = vrot.lane.b32.xlu0 %v635_v44, %s1024_s19  ;;  %v967_v3 = vld [vmem:[%s1589_s0 + $0x2] ss:$16 sm:%s670_s10]   ;;  %v610_v4 = vsel %vm14_vm2, %v957_v62, %v605_v61 }
  0x47   :  { %540 = vrot.lane.b32.xlu2 %v539_v49, %s1022_s14  ;;  %s728_s14 = smov 192  ;;  %v673_v6 = vsel %vm6_vm0, %v967_v3, %v966_v2  ;;  %v968_v7 = vld [vmem:[%s1589_s0 + $0x2] ss:$16 sm:%s675_s6]  }
  0x48   :  { %659 = vrot.lane.b32.xlu1 %v658_v54, %s1024_s19  ;;  %v977_v63 = vld [vmem:[%s1589_s0 + $0x1] ss:$16 sm:%s728_s14]   ;;  %v678_v8 = vsel %vm10_vm1, %v968_v7, %v673_v6  ;;  %s746_s19 = smov 48 }
  0x49   :  { %v731_v5 = vsel %vm14_vm2, %v977_v63, %v726_v1  ;;  %v969_v9 = vld [vmem:[%s1589_s0 + $0x2] ss:$16 sm:%s680_s23]   ;;  %v979_v11 = vld [vmem:[%s1589_s0 + $0x81] ss:$16 sm:%s741_s16]   ;;  %s23_s23 = smov 12  ;;  %s33_s16 = smov 192 }
  0x4a   :  { %v683_v12 = vsel %vm14_vm2, %v969_v9, %v678_v8  ;;  %v980_v13 = vld [vmem:[%s1589_s0 + $0x81] ss:$16 sm:%s746_s19]   ;;  %v9_v14 = vld [vmem:[%s1589_s0] ss:$16 sm:%s8_s30]  }
  0x4b   :  { %v13_v15 = vld [vmem:[%s1589_s0] ss:$16 sm:%s12_s3]   ;;  %v981_v22 = vld [vmem:[%s1589_s0 + $0x81] ss:$16 sm:%s751_s15]  }
  0x4c   :  { %v3_v17 = vld [vmem:[%s1589_s0] ss:$16 sm:%s2_s8]  }
  0x4d   :  { %v5_v18 = vld [vmem:[%s1589_s0] ss:$16 sm:%s4_s9]  }
  0x4e   :  { %707 = vrot.lane.b32.xlu0 %v706_v0, %s1025_s11  ;;  %v7_v19 = vsel %vm6_vm0, %v5_v18, %v3_v17  ;;  %v858_v25 = vld [vmem:[%s1589_s0 + $0x80] ss:$16 sm:%s20_s22]  }
  0x4f   :  { %611 = vrot.lane.b32.xlu2 %v610_v4, %s1023_s2  ;;  %s738_s2 = smov 3  ;;  %v11_v20 = vsel %vm10_vm1, %v9_v14, %v7_v19  ;;  %v859_v26 = vld [vmem:[%s1589_s0 + $0x80] ss:$16 sm:%s23_s23]  }
  0x50   :  { %732 = vrot.lane.b32.xlu1 %v731_v5, %s1026_s25  ;;  %v978_v10 = vld [vmem:[%s1589_s0 + $0x81] ss:$16 sm:%s738_s2]   ;;  %v15_v23 = vsel %vm14_vm2, %v13_v15, %v11_v20  ;;  %s28_s2 = smov 48  ;;  %v26_v29 = vsel %vm6_vm0, %v859_v26, %v858_v25 }
  0x51   :  { %v744_v16 = vsel %vm6_vm0, %v979_v11, %v978_v10  ;;  %17 = vst.msk [vmem:[#allocation0] ss:$8 sm:$0xf] %vm16_vm3, %v15_v23   ;;  %v860_v27 = vld [vmem:[%s1589_s0 + $0x80] ss:$16 sm:%s28_s2]   ;;  %vm638_vm0 = vcmask 261312  }
  0x52   :  { %v749_v21 = vsel %vm10_vm1, %v980_v13, %v744_v16  ;;  %18 = vst.msk [vmem:[#allocation0] ss:$8 sm:$0xf0] %vm16_vm3, %v15_v23   ;;  %v861_v28 = vld [vmem:[%s1589_s0 + $0x80] ss:$16 sm:%s33_s16]   ;;  %v31_v30 = vsel %vm10_vm1, %v860_v27, %v26_v29  ;;  %vm686_vm1 = vcmask 195712  }
  0x53   :  { %v754_v24 = vsel %vm14_vm2, %v981_v22, %v749_v21  ;;  %v36_v31 = vsel %vm14_vm2, %v861_v28, %v31_v30  ;;  %vm734_vm2 = vcmask 130112  }
  0x54   :  { %39 = vst.msk [vmem:[#allocation0 + $0x40] ss:$8 sm:$0xf] %vm16_vm3, %v36_v31  }
  0x55   :  { %41 = vst.msk [vmem:[#allocation0 + $0x40] ss:$8 sm:$0xf0] %vm16_vm3, %v36_v31  }
  0x57   :  { %684 = vrot.lane.b32.xlu2 %v683_v12, %s1025_s11 }
  0x5f   :  { %755 = vrot.lane.b32.xlu2 %v754_v24, %s1026_s25 }
  0x71   :  { %v157_v32 = vpop.permute.xlu2 %156  }
  0x78   :  { %v61_v33 = vpop.permute.xlu0 %60  }
  0x79   :  { %63 = vst.msk [vmem:[#allocation0] ss:$8 sm:$0xf] %vm62_vm4, %v61_v33   ;;  %v180_v34 = vpop.permute.xlu2 %179  }
  0x7a   :  { %64 = vst.msk [vmem:[#allocation0] ss:$8 sm:$0xf0] %vm62_vm4, %v61_v33   ;;  %v109_v35 = vpop.permute.xlu1 %108  }
  0x7b   :  { %111 = vst.msk [vmem:[#allocation0] ss:$8 sm:$0xf] %vm110_vm5, %v109_v35  }
  0x7c   :  { %112 = vst.msk [vmem:[#allocation0] ss:$8 sm:$0xf0] %vm110_vm5, %v109_v35  }
  0x7d   :  { %159 = vst.msk [vmem:[#allocation0] ss:$8 sm:$0xf] %vm158_vm6, %v157_v32  }
  0x7e   :  { %160 = vst.msk [vmem:[#allocation0] ss:$8 sm:$0xf0] %vm158_vm6, %v157_v32  }
  0x80   :  { %v84_v36 = vpop.permute.xlu0 %83  }
  0x81   :  { %87 = vst.msk [vmem:[#allocation0 + $0x40] ss:$8 sm:$0xf] %vm62_vm4, %v84_v36   ;;  %v253_v37 = vpop.permute.xlu2 %252  }
  0x82   :  { %89 = vst.msk [vmem:[#allocation0 + $0x40] ss:$8 sm:$0xf0] %vm62_vm4, %v84_v36   ;;  %v132_v38 = vpop.permute.xlu1 %131  }
  0x83   :  { %135 = vst.msk [vmem:[#allocation0 + $0x40] ss:$8 sm:$0xf] %vm110_vm5, %v132_v38  }
  0x84   :  { %137 = vst.msk [vmem:[#allocation0 + $0x40] ss:$8 sm:$0xf0] %vm110_vm5, %v132_v38  }
  0x85   :  { %183 = vst.msk [vmem:[#allocation0 + $0x40] ss:$8 sm:$0xf] %vm158_vm6, %v180_v34  }
  0x86   :  { %185 = vst.msk [vmem:[#allocation0 + $0x40] ss:$8 sm:$0xf0] %vm158_vm6, %v180_v34  }
  0x88   :  { %v205_v39 = vpop.permute.xlu0 %204  }
  0x89   :  { %207 = vst.msk [vmem:[#allocation0] ss:$8 sm:$0xf] %vm206_vm7, %v205_v39   ;;  %v324_v40 = vpop.permute.xlu2 %323  }
  0x8a   :  { %208 = vst.msk [vmem:[#allocation0] ss:$8 sm:$0xf0] %vm206_vm7, %v205_v39   ;;  %v228_v41 = vpop.permute.xlu1 %227  }
  0x8b   :  { %255 = vst.msk [vmem:[#allocation0] ss:$8 sm:$0xf] %vm254_vm8, %v253_v37  }
  0x8c   :  { %256 = vst.msk [vmem:[#allocation0] ss:$8 sm:$0xf0] %vm254_vm8, %v253_v37  }
  0x8d   :  { %231 = vst.msk [vmem:[#allocation0 + $0x40] ss:$8 sm:$0xf] %vm206_vm7, %v228_v41  }
  0x8e   :  { %233 = vst.msk [vmem:[#allocation0 + $0x40] ss:$8 sm:$0xf0] %vm206_vm7, %v228_v41  }
  0x90   :  { %v276_v42 = vpop.permute.xlu0 %275  }
  0x91   :  { %279 = vst.msk [vmem:[#allocation0 + $0x40] ss:$8 sm:$0xf] %vm254_vm8, %v276_v42   ;;  %v397_v43 = vpop.permute.xlu2 %396  }
  0x92   :  { %281 = vst.msk [vmem:[#allocation0 + $0x40] ss:$8 sm:$0xf0] %vm254_vm8, %v276_v42   ;;  %v301_v44 = vpop.permute.xlu1 %300  }
  0x93   :  { %327 = vst.msk [vmem:[#allocation0 + $0x40] ss:$8 sm:$0xf] %vm302_vm9, %v324_v40  }
  0x94   :  { %329 = vst.msk [vmem:[#allocation0 + $0x40] ss:$8 sm:$0xf0] %vm302_vm9, %v324_v40  }
  0x95   :  { %303 = vst.msk [vmem:[#allocation0] ss:$8 sm:$0xf] %vm302_vm9, %v301_v44  }
  0x96   :  { %304 = vst.msk [vmem:[#allocation0] ss:$8 sm:$0xf0] %vm302_vm9, %v301_v44  }
  0x98   :  { %v349_v45 = vpop.permute.xlu0 %348  }
  0x99   :  { %351 = vst.msk [vmem:[#allocation0] ss:$8 sm:$0xf] %vm350_vm10, %v349_v45   ;;  %v468_v46 = vpop.permute.xlu2 %467  }
  0x9a   :  { %352 = vst.msk [vmem:[#allocation0] ss:$8 sm:$0xf0] %vm350_vm10, %v349_v45   ;;  %v372_v47 = vpop.permute.xlu1 %371  }
  0x9b   :  { %399 = vst.msk [vmem:[#allocation0] ss:$8 sm:$0xf] %vm398_vm11, %v397_v43  }
  0x9c   :  { %400 = vst.msk [vmem:[#allocation0] ss:$8 sm:$0xf0] %vm398_vm11, %v397_v43  }
  0x9d   :  { %375 = vst.msk [vmem:[#allocation0 + $0x40] ss:$8 sm:$0xf] %vm350_vm10, %v372_v47  }
  0x9e   :  { %377 = vst.msk [vmem:[#allocation0 + $0x40] ss:$8 sm:$0xf0] %vm350_vm10, %v372_v47  }
  0xa0   :  { %v420_v48 = vpop.permute.xlu0 %419  }
  0xa1   :  { %423 = vst.msk [vmem:[#allocation0 + $0x40] ss:$8 sm:$0xf] %vm398_vm11, %v420_v48   ;;  %v541_v49 = vpop.permute.xlu2 %540  }
  0xa2   :  { %425 = vst.msk [vmem:[#allocation0 + $0x40] ss:$8 sm:$0xf0] %vm398_vm11, %v420_v48   ;;  %v445_v50 = vpop.permute.xlu1 %444  }
  0xa3   :  { %471 = vst.msk [vmem:[#allocation0 + $0x40] ss:$8 sm:$0xf] %vm446_vm12, %v468_v46  }
  0xa4   :  { %473 = vst.msk [vmem:[#allocation0 + $0x40] ss:$8 sm:$0xf0] %vm446_vm12, %v468_v46  }
  0xa5   :  { %447 = vst.msk [vmem:[#allocation0] ss:$8 sm:$0xf] %vm446_vm12, %v445_v50  }
  0xa6   :  { %448 = vst.msk [vmem:[#allocation0] ss:$8 sm:$0xf0] %vm446_vm12, %v445_v50  }
  0xa8   :  { %v493_v51 = vpop.permute.xlu0 %492  }
  0xa9   :  { %495 = vst.msk [vmem:[#allocation0] ss:$8 sm:$0xf] %vm494_vm13, %v493_v51   ;;  %v612_v52 = vpop.permute.xlu2 %611  }
  0xaa   :  { %496 = vst.msk [vmem:[#allocation0] ss:$8 sm:$0xf0] %vm494_vm13, %v493_v51   ;;  %v516_v53 = vpop.permute.xlu1 %515  }
  0xab   :  { %543 = vst.msk [vmem:[#allocation0] ss:$8 sm:$0xf] %vm542_vm14, %v541_v49  }
  0xac   :  { %544 = vst.msk [vmem:[#allocation0] ss:$8 sm:$0xf0] %vm542_vm14, %v541_v49  }
  0xad   :  { %519 = vst.msk [vmem:[#allocation0 + $0x40] ss:$8 sm:$0xf] %vm494_vm13, %v516_v53  }
  0xae   :  { %521 = vst.msk [vmem:[#allocation0 + $0x40] ss:$8 sm:$0xf0] %vm494_vm13, %v516_v53  }
  0xb0   :  { %v564_v54 = vpop.permute.xlu0 %563  }
  0xb1   :  { %567 = vst.msk [vmem:[#allocation0 + $0x40] ss:$8 sm:$0xf] %vm542_vm14, %v564_v54   ;;  %v685_v55 = vpop.permute.xlu2 %684  }
  0xb2   :  { %569 = vst.msk [vmem:[#allocation0 + $0x40] ss:$8 sm:$0xf0] %vm542_vm14, %v564_v54   ;;  %v589_v56 = vpop.permute.xlu1 %588  }
  0xb3   :  { %615 = vst.msk [vmem:[#allocation0 + $0x40] ss:$8 sm:$0xf] %vm590_vm15, %v612_v52  }
  0xb4   :  { %617 = vst.msk [vmem:[#allocation0 + $0x40] ss:$8 sm:$0xf0] %vm590_vm15, %v612_v52  }
  0xb5   :  { %591 = vst.msk [vmem:[#allocation0] ss:$8 sm:$0xf] %vm590_vm15, %v589_v56  }
  0xb6   :  { %592 = vst.msk [vmem:[#allocation0] ss:$8 sm:$0xf0] %vm590_vm15, %v589_v56  }
  0xb8   :  { %v637_v57 = vpop.permute.xlu0 %636  }
  0xb9   :  { %639 = vst.msk [vmem:[#allocation0] ss:$8 sm:$0xf] %vm638_vm0, %v637_v57   ;;  %v756_v58 = vpop.permute.xlu2 %755  }
  0xba   :  { %640 = vst.msk [vmem:[#allocation0] ss:$8 sm:$0xf0] %vm638_vm0, %v637_v57   ;;  %v660_v59 = vpop.permute.xlu1 %659  }
  0xbb   :  { %687 = vst.msk [vmem:[#allocation0] ss:$8 sm:$0xf] %vm686_vm1, %v685_v55  }
  0xbc   :  { %688 = vst.msk [vmem:[#allocation0] ss:$8 sm:$0xf0] %vm686_vm1, %v685_v55  }
  0xbd   :  { %663 = vst.msk [vmem:[#allocation0 + $0x40] ss:$8 sm:$0xf] %vm638_vm0, %v660_v59  }
  0xbe   :  { %665 = vst.msk [vmem:[#allocation0 + $0x40] ss:$8 sm:$0xf0] %vm638_vm0, %v660_v59  }
  0xc0   :  { %v708_v60 = vpop.permute.xlu0 %707  }
  0xc1   :  { %711 = vst.msk [vmem:[#allocation0 + $0x40] ss:$8 sm:$0xf] %vm686_vm1, %v708_v60  }
  0xc2   :  { %713 = vst.msk [vmem:[#allocation0 + $0x40] ss:$8 sm:$0xf0] %vm686_vm1, %v708_v60   ;;  %v733_v61 = vpop.permute.xlu1 %732  }
  0xc3   :  { %759 = vst.msk [vmem:[#allocation0 + $0x40] ss:$8 sm:$0xf] %vm734_vm2, %v756_v58  }
  0xc4   :  { %761 = vst.msk [vmem:[#allocation0 + $0x40] ss:$8 sm:$0xf0] %vm734_vm2, %v756_v58  }
  0xc5   :  { %735 = vst.msk [vmem:[#allocation0] ss:$8 sm:$0xf] %vm734_vm2, %v733_v61  }
  0xc6   :  { %736 = vst.msk [vmem:[#allocation0] ss:$8 sm:$0xf0] %vm734_vm2, %v733_v61  }
  0xca   :  { %v811_v62 = vld [vmem:[#allocation0 + $0x40] sm:$0x1]  ;;  %v817_v63 = vld [vmem:[#allocation0 + $0x48] sm:$0x1]  ;;  %v823_v0 = vld [vmem:[#allocation0 + $0x50] sm:$0x1] }
  0xcb   :  { %989 = vst [vmem:[%s1590_s1 + $0x8] sm:$0x1] %v811_v62  ;;  %v829_v1 = vld [vmem:[#allocation0 + $0x58] sm:$0x1]  ;;  %v835_v2 = vld [vmem:[#allocation0 + $0x60] sm:$0x1] }
  0xcc   :  { %990 = vst [vmem:[%s1590_s1 + $0x9] sm:$0x1] %v817_v63  ;;  %v841_v3 = vld [vmem:[#allocation0 + $0x68] sm:$0x1]  ;;  %v847_v4 = vld [vmem:[#allocation0 + $0x70] sm:$0x1] }
  0xcd   :  { %991 = vst [vmem:[%s1590_s1 + $0xa] sm:$0x1] %v823_v0  ;;  %v853_v5 = vld [vmem:[#allocation0 + $0x78] sm:$0x1]  ;;  %v764_v6 = vld [vmem:[#allocation0] sm:$0x1] }
  0xce   :  { %992 = vst [vmem:[%s1590_s1 + $0xb] sm:$0x1] %v829_v1  ;;  %v769_v7 = vld [vmem:[#allocation0 + $0x8] sm:$0x1]  ;;  %v775_v8 = vld [vmem:[#allocation0 + $0x10] sm:$0x1] }
  0xcf   :  { %993 = vst [vmem:[%s1590_s1 + $0xc] sm:$0x1] %v835_v2  ;;  %v781_v9 = vld [vmem:[#allocation0 + $0x18] sm:$0x1]  ;;  %v787_v10 = vld [vmem:[#allocation0 + $0x20] sm:$0x1] }
  0xd0   :  { %994 = vst [vmem:[%s1590_s1 + $0xd] sm:$0x1] %v841_v3  ;;  %v793_v11 = vld [vmem:[#allocation0 + $0x28] sm:$0x1]  ;;  %v799_v12 = vld [vmem:[#allocation0 + $0x30] sm:$0x1] }
  0xd1   :  { %995 = vst [vmem:[%s1590_s1 + $0xe] sm:$0x1] %v847_v4  ;;  %v805_v13 = vld [vmem:[#allocation0 + $0x38] sm:$0x1] }
  0xd2   :  { %996 = vst [vmem:[%s1590_s1 + $0xf] sm:$0x1] %v853_v5 }
  0xd3   :  { %767 = vst [vmem:[%s1590_s1] sm:$0x1] %v764_v6 }
  0xd4   :  { %982 = vst [vmem:[%s1590_s1 + $0x1] sm:$0x1] %v769_v7 }
  0xd5   :  { %983 = vst [vmem:[%s1590_s1 + $0x2] sm:$0x1] %v775_v8 }
  0xd6   :  { %984 = vst [vmem:[%s1590_s1 + $0x3] sm:$0x1] %v781_v9 }
  0xd7   :  { %985 = vst [vmem:[%s1590_s1 + $0x4] sm:$0x1] %v787_v10 }
  0xd8   :  { %986 = vst [vmem:[%s1590_s1 + $0x5] sm:$0x1] %v793_v11 }
  0xd9   :  { %987 = vst [vmem:[%s1590_s1 + $0x6] sm:$0x1] %v799_v12 }
  0xda   :  { %988 = vst [vmem:[%s1590_s1 + $0x7] sm:$0x1] %v805_v13 }

// kernel: basic_block_forward.5
= control target key start
LH: loop header
LB: loop body
LE: loop exit
PB: predicated region body
PF: predicated region fallthrough
CT: control target
= control target key end

     0   :  { %vm50_vm0 = vcmask 1041408   ;;  %vm52_vm1 = vcmask 1045508   ;;  %vm54_vm2 = vcmask 1043456   ;;  %s217_s1 = inlined_call_operand.vmem [shape: f32[1,2048], index: 1, kind: input, shape index: {}]   ;;  %s218_s2 = inlined_call_operand.vmem [shape: f32[1,2048], index: 2, kind: input, shape index: {}]   ;;  %s219_s0 = inlined_call_operand.vmem [shape: f32[2,2048], index: 0, kind: input, shape index: {}]   ;;  %s220_s3 = inlined_call_operand.vmem [shape: f32[2,2048], index: 3, kind: output, shape index: {}]  }
   0x1   :  { %v18_v0 = vld [vmem:[%s217_s1] sm:$0xff]  ;;  %v19_v31 = vld [vmem:[%s217_s1 + $0x8] sm:$0xff]  ;;  %v16_v63 = vld [vmem:[%s219_s0 + $0x10] sm:$0xff] }
   0x2   :  { %v73_v1 = vld [vmem:[%s218_s2] sm:$0xff]  ;;  %v22_v2 = vperm.slane %v18_v0, 0  ;;  %v23_v3 = vperm.slane %v18_v0, 1  ;;  %v24_v4 = vperm.slane %v18_v0, 2  ;;  %v25_v5 = vperm.slane %v18_v0, 3  ;;  %v15_v32 = vld [vmem:[%s219_s0 + $0x8] sm:$0xff] }
   0x3   :  { %v77_v6 = vperm.slane %v73_v1, 0  ;;  %v78_v7 = vperm.slane %v73_v1, 1  ;;  %v79_v8 = vperm.slane %v73_v1, 2  ;;  %v80_v9 = vperm.slane %v73_v1, 3  ;;  %v14_v14 = vld [vmem:[%s219_s0] sm:$0xff]  ;;  %v74_v45 = vld [vmem:[%s218_s2 + $0x8] sm:$0xff] }
   0x4   :  { %v38_v10 = vrot.slane %v23_v3, 6  ;;  %v39_v11 = vrot.slane %v24_v4, 4  ;;  %v40_v12 = vrot.slane %v25_v5, 2  ;;  %v26_v13 = vperm.slane %v18_v0, 4 }
   0x5   :  { %v93_v15 = vrot.slane %v78_v7, 6  ;;  %v94_v16 = vrot.slane %v79_v8, 4  ;;  %v95_v17 = vrot.slane %v80_v9, 2  ;;  %v27_v18 = vperm.slane %v18_v0, 5 }
   0x6   :  { %v51_v19 = vsel %vm50_vm0, %v22_v2, %v38_v10  ;;  %v53_v20 = vsel %vm52_vm1, %v39_v11, %v40_v12  ;;  %v28_v21 = vperm.slane %v18_v0, 6  ;;  %v29_v22 = vperm.slane %v18_v0, 7 }
   0x7   :  { %v55_v23 = vsel %vm54_vm2, %v51_v19, %v53_v20  ;;  %v105_v24 = vsel %vm50_vm0, %v77_v6, %v93_v15  ;;  %v106_v25 = vsel %vm52_vm1, %v94_v16, %v95_v17  ;;  %v41_v26 = vrot.slane %v27_v18, 6  ;;  %v17_v20 = vld [vmem:[%s219_s0 + $0x18] sm:$0xff] }
   0x8   :  { %v69_v27 = vmul.f32 %v55_v23, %v14_v14  ;;  %v107_v28 = vsel %vm54_vm2, %v105_v24, %v106_v25  ;;  %v42_v29 = vrot.slane %v28_v21, 4  ;;  %v43_v30 = vrot.slane %v29_v22, 2 }
   0x9   :  { %v56_v33 = vsel %vm50_vm0, %v26_v13, %v41_v26  ;;  %v81_v34 = vperm.slane %v73_v1, 4  ;;  %v82_v35 = vperm.slane %v73_v1, 5  ;;  %v83_v36 = vperm.slane %v73_v1, 6 }
   0xa   :  { %v121_v37 = vadd.f32 %v107_v28, %v69_v27  ;;  %v57_v38 = vsel %vm52_vm1, %v42_v29, %v43_v30  ;;  %v84_v39 = vperm.slane %v73_v1, 7  ;;  %v30_v40 = vperm.slane %v19_v31, 0 }
   0xb   :  { %v58_v41 = vsel %vm54_vm2, %v56_v33, %v57_v38  ;;  %v96_v42 = vrot.slane %v82_v35, 6  ;;  %v97_v43 = vrot.slane %v83_v36, 4  ;;  %v31_v44 = vperm.slane %v19_v31, 1 }
   0xc   :  { %v125_v46 = vmax.f32 %v121_v37, 0.0  ;;  %v70_v47 = vmul.f32 %v58_v41, %v15_v32  ;;  %v98_v48 = vrot.slane %v84_v39, 2  ;;  %v32_v49 = vperm.slane %v19_v31, 2 }
   0xd   :  { %v108_v50 = vsel %vm50_vm0, %v81_v34, %v96_v42  ;;  %v33_v51 = vperm.slane %v19_v31, 3  ;;  %v44_v52 = vrot.slane %v31_v44, 6  ;;  %v85_v53 = vperm.slane %v74_v45, 0 }
   0xe   :  { %129 = vst [vmem:[%s220_s3] sm:$0xff] %v125_v46  ;;  %v109_v54 = vsel %vm52_vm1, %v97_v43, %v98_v48  ;;  %v45_v55 = vrot.slane %v32_v49, 4  ;;  %v86_v56 = vperm.slane %v74_v45, 1  ;;  %v87_v57 = vperm.slane %v74_v45, 2 }
   0xf   :  { %v110_v58 = vsel %vm54_vm2, %v108_v50, %v109_v54  ;;  %v46_v59 = vrot.slane %v33_v51, 2  ;;  %v59_v60 = vsel %vm50_vm0, %v30_v40, %v44_v52  ;;  %v88_v61 = vperm.slane %v74_v45, 3 }
  0x10   :  { %v122_v62 = vadd.f32 %v110_v58, %v70_v47  ;;  %v99_v0 = vrot.slane %v86_v56, 6  ;;  %v100_v1 = vrot.slane %v87_v57, 4  ;;  %v34_v2 = vperm.slane %v19_v31, 4 }
  0x11   :  { %v60_v3 = vsel %vm52_vm1, %v45_v55, %v46_v59  ;;  %v101_v4 = vrot.slane %v88_v61, 2  ;;  %v35_v5 = vperm.slane %v19_v31, 5  ;;  %v36_v6 = vperm.slane %v19_v31, 6 }
  0x12   :  { %v126_v7 = vmax.f32 %v122_v62, 0.0  ;;  %v61_v8 = vsel %vm54_vm2, %v59_v60, %v60_v3  ;;  %v111_v9 = vsel %vm50_vm0, %v85_v53, %v99_v0  ;;  %v37_v10 = vperm.slane %v19_v31, 7 }
  0x13   :  { %v71_v11 = vmul.f32 %v61_v8, %v16_v63  ;;  %v112_v12 = vsel %vm52_vm1, %v100_v1, %v101_v4  ;;  %v47_v13 = vrot.slane %v35_v5, 6  ;;  %v48_v14 = vrot.slane %v36_v6, 4 }
  0x14   :  { %130 = vst [vmem:[%s220_s3 + $0x8] sm:$0xff] %v126_v7  ;;  %v113_v15 = vsel %vm54_vm2, %v111_v9, %v112_v12  ;;  %v49_v16 = vrot.slane %v37_v10, 2  ;;  %v89_v17 = vperm.slane %v74_v45, 4  ;;  %v90_v18 = vperm.slane %v74_v45, 5 }
  0x15   :  { %v123_v19 = vadd.f32 %v113_v15, %v71_v11  ;;  %v62_v21 = vsel %vm50_vm0, %v34_v2, %v47_v13  ;;  %v91_v22 = vperm.slane %v74_v45, 6  ;;  %v92_v23 = vperm.slane %v74_v45, 7 }
  0x16   :  { %v63_v24 = vsel %vm52_vm1, %v48_v14, %v49_v16  ;;  %v102_v25 = vrot.slane %v90_v18, 6 }
  0x17   :  { %v127_v26 = vmax.f32 %v123_v19, 0.0  ;;  %v64_v27 = vsel %vm54_vm2, %v62_v21, %v63_v24  ;;  %v103_v28 = vrot.slane %v91_v22, 4  ;;  %v104_v29 = vrot.slane %v92_v23, 2 }
  0x18   :  { %v72_v30 = vmul.f32 %v64_v27, %v17_v20  ;;  %v114_v31 = vsel %vm50_vm0, %v89_v17, %v102_v25 }
  0x19   :  { %131 = vst [vmem:[%s220_s3 + $0x10] sm:$0xff] %v127_v26  ;;  %v115_v32 = vsel %vm52_vm1, %v103_v28, %v104_v29 }
  0x1a   :  { %v116_v33 = vsel %vm54_vm2, %v114_v31, %v115_v32 }
  0x1b   :  { %v124_v34 = vadd.f32 %v116_v33, %v72_v30 }
  0x1d   :  { %v128_v35 = vmax.f32 %v124_v34, 0.0 }
  0x1f   :  { %132 = vst [vmem:[%s220_s3 + $0x18] sm:$0xff] %v128_v35 }

// kernel: basic_block_forward.7
= control target key start
LH: loop header
LB: loop body
LE: loop exit
PB: predicated region body
PF: predicated region fallthrough
CT: control target
= control target key end

     0   :  { %vm53_vm0 = vcmask 1041408   ;;  %vm55_vm1 = vcmask 1045508   ;;  %vm57_vm2 = vcmask 1043456   ;;  %s245_s2 = inlined_call_operand.vmem [shape: f32[1,2048], index: 2, kind: input, shape index: {}]   ;;  %s246_s3 = inlined_call_operand.vmem [shape: f32[1,2048], index: 3, kind: input, shape index: {}]   ;;  %s247_s0 = inlined_call_operand.vmem [shape: f32[2,2048], index: 0, kind: input, shape index: {}]   ;;  %s248_s1 = inlined_call_operand.vmem [shape: f32[2,2048], index: 1, kind: input, shape index: {}]   ;;  %s249_s4 = inlined_call_operand.vmem [shape: f32[2,2048], index: 4, kind: output, shape index: {}]  }
   0x1   :  { %v21_v0 = vld [vmem:[%s245_s2] sm:$0xff]  ;;  %v22_v31 = vld [vmem:[%s245_s2 + $0x8] sm:$0xff] }
   0x2   :  { %v76_v1 = vld [vmem:[%s246_s3] sm:$0xff]  ;;  %v25_v2 = vperm.slane %v21_v0, 0  ;;  %v26_v3 = vperm.slane %v21_v0, 1  ;;  %v27_v4 = vperm.slane %v21_v0, 2  ;;  %v28_v5 = vperm.slane %v21_v0, 3  ;;  %v18_v33 = vld [vmem:[%s247_s0 + $0x8] sm:$0xff] }
   0x3   :  { %v80_v6 = vperm.slane %v76_v1, 0  ;;  %v81_v7 = vperm.slane %v76_v1, 1  ;;  %v82_v8 = vperm.slane %v76_v1, 2  ;;  %v83_v9 = vperm.slane %v76_v1, 3  ;;  %v17_v14 = vld [vmem:[%s247_s0] sm:$0xff]  ;;  %v77_v46 = vld [vmem:[%s246_s3 + $0x8] sm:$0xff] }
   0x4   :  { %v41_v10 = vrot.slane %v26_v3, 6  ;;  %v42_v11 = vrot.slane %v27_v4, 4  ;;  %v43_v12 = vrot.slane %v28_v5, 2  ;;  %v29_v13 = vperm.slane %v21_v0, 4  ;;  %v128_v32 = vld [vmem:[%s248_s1] sm:$0xff]  ;;  %v129_v60 = vld [vmem:[%s248_s1 + $0x8] sm:$0xff] }
   0x5   :  { %v96_v15 = vrot.slane %v81_v7, 6  ;;  %v97_v16 = vrot.slane %v82_v8, 4  ;;  %v98_v17 = vrot.slane %v83_v9, 2  ;;  %v30_v18 = vperm.slane %v21_v0, 5 }
   0x6   :  { %v54_v19 = vsel %vm53_vm0, %v25_v2, %v41_v10  ;;  %v56_v20 = vsel %vm55_vm1, %v42_v11, %v43_v12  ;;  %v31_v21 = vperm.slane %v21_v0, 6  ;;  %v32_v22 = vperm.slane %v21_v0, 7 }
   0x7   :  { %v58_v23 = vsel %vm57_vm2, %v54_v19, %v56_v20  ;;  %v108_v24 = vsel %vm53_vm0, %v80_v6, %v96_v15  ;;  %v109_v25 = vsel %vm55_vm1, %v97_v16, %v98_v17  ;;  %v44_v26 = vrot.slane %v30_v18, 6 }
   0x8   :  { %v72_v27 = vmul.f32 %v58_v23, %v17_v14  ;;  %v110_v28 = vsel %vm57_vm2, %v108_v24, %v109_v25  ;;  %v45_v29 = vrot.slane %v31_v21, 4  ;;  %v46_v30 = vrot.slane %v32_v22, 2  ;;  %v130_v22 = vld [vmem:[%s248_s1 + $0x10] sm:$0xff] }
   0x9   :  { %v59_v34 = vsel %vm53_vm0, %v29_v13, %v44_v26  ;;  %v84_v35 = vperm.slane %v76_v1, 4  ;;  %v85_v36 = vperm.slane %v76_v1, 5  ;;  %v86_v37 = vperm.slane %v76_v1, 6 }
   0xa   :  { %v124_v38 = vadd.f32 %v110_v28, %v72_v27  ;;  %v60_v39 = vsel %vm55_vm1, %v45_v29, %v46_v30  ;;  %v87_v40 = vperm.slane %v76_v1, 7  ;;  %v33_v41 = vperm.slane %v22_v31, 0  ;;  %v19_v1 = vld [vmem:[%s247_s0 + $0x10] sm:$0xff]  ;;  %v20_v27 = vld [vmem:[%s247_s0 + $0x18] sm:$0xff] }
   0xb   :  { %v61_v42 = vsel %vm57_vm2, %v59_v34, %v60_v39  ;;  %v99_v43 = vrot.slane %v85_v36, 6  ;;  %v100_v44 = vrot.slane %v86_v37, 4  ;;  %v34_v45 = vperm.slane %v22_v31, 1 }
   0xc   :  { %v132_v47 = vadd.f32 %v128_v32, %v124_v38  ;;  %v73_v48 = vmul.f32 %v61_v42, %v18_v33  ;;  %v101_v49 = vrot.slane %v87_v40, 2  ;;  %v35_v50 = vperm.slane %v22_v31, 2  ;;  %v131_v40 = vld [vmem:[%s248_s1 + $0x18] sm:$0xff] }
   0xd   :  { %v111_v51 = vsel %vm53_vm0, %v84_v35, %v99_v43  ;;  %v36_v52 = vperm.slane %v22_v31, 3  ;;  %v47_v53 = vrot.slane %v34_v45, 6  ;;  %v88_v54 = vperm.slane %v77_v46, 0 }
   0xe   :  { %v136_v55 = vmax.f32 %v132_v47, 0.0  ;;  %v112_v56 = vsel %vm55_vm1, %v100_v44, %v101_v49  ;;  %v48_v57 = vrot.slane %v35_v50, 4  ;;  %v89_v58 = vperm.slane %v77_v46, 1 }
   0xf   :  { %v113_v59 = vsel %vm57_vm2, %v111_v51, %v112_v56  ;;  %v49_v61 = vrot.slane %v36_v52, 2  ;;  %v62_v62 = vsel %vm53_vm0, %v33_v41, %v47_v53  ;;  %v90_v63 = vperm.slane %v77_v46, 2 }
  0x10   :  { %140 = vst [vmem:[%s249_s4] sm:$0xff] %v136_v55  ;;  %v125_v0 = vadd.f32 %v113_v59, %v73_v48  ;;  %v91_v2 = vperm.slane %v77_v46, 3  ;;  %v102_v3 = vrot.slane %v89_v58, 6  ;;  %v37_v4 = vperm.slane %v22_v31, 4 }
  0x11   :  { %v63_v5 = vsel %vm55_vm1, %v48_v57, %v49_v61  ;;  %v103_v6 = vrot.slane %v90_v63, 4  ;;  %v38_v7 = vperm.slane %v22_v31, 5  ;;  %v39_v8 = vperm.slane %v22_v31, 6 }
  0x12   :  { %v133_v9 = vadd.f32 %v129_v60, %v125_v0  ;;  %v64_v10 = vsel %vm57_vm2, %v62_v62, %v63_v5  ;;  %v104_v11 = vrot.slane %v91_v2, 2  ;;  %v114_v12 = vsel %vm53_vm0, %v88_v54, %v102_v3 }
  0x13   :  { %v74_v13 = vmul.f32 %v64_v10, %v19_v1  ;;  %v40_v14 = vperm.slane %v22_v31, 7  ;;  %v50_v15 = vrot.slane %v38_v7, 6  ;;  %v51_v16 = vrot.slane %v39_v8, 4 }
  0x14   :  { %v137_v17 = vmax.f32 %v133_v9, 0.0  ;;  %v115_v18 = vsel %vm55_vm1, %v103_v6, %v104_v11  ;;  %v92_v19 = vperm.slane %v77_v46, 4  ;;  %v93_v20 = vperm.slane %v77_v46, 5 }
  0x15   :  { %v116_v21 = vsel %vm57_vm2, %v114_v12, %v115_v18  ;;  %v52_v23 = vrot.slane %v40_v14, 2  ;;  %v65_v24 = vsel %vm53_vm0, %v37_v4, %v50_v15  ;;  %v94_v25 = vperm.slane %v77_v46, 6 }
  0x16   :  { %141 = vst [vmem:[%s249_s4 + $0x8] sm:$0xff] %v137_v17  ;;  %v126_v26 = vadd.f32 %v116_v21, %v74_v13  ;;  %v95_v28 = vperm.slane %v77_v46, 7  ;;  %v105_v29 = vrot.slane %v93_v20, 6 }
  0x17   :  { %v66_v30 = vsel %vm55_vm1, %v51_v16, %v52_v23  ;;  %v106_v31 = vrot.slane %v94_v25, 4 }
  0x18   :  { %v134_v32 = vadd.f32 %v130_v22, %v126_v26  ;;  %v67_v33 = vsel %vm57_vm2, %v65_v24, %v66_v30  ;;  %v107_v34 = vrot.slane %v95_v28, 2  ;;  %v117_v35 = vsel %vm53_vm0, %v92_v19, %v105_v29 }
  0x19   :  { %v75_v36 = vmul.f32 %v67_v33, %v20_v27 }
  0x1a   :  { %v138_v37 = vmax.f32 %v134_v32, 0.0  ;;  %v118_v38 = vsel %vm55_vm1, %v106_v31, %v107_v34 }
  0x1b   :  { %v119_v39 = vsel %vm57_vm2, %v117_v35, %v118_v38 }
  0x1c   :  { %142 = vst [vmem:[%s249_s4 + $0x10] sm:$0xff] %v138_v37  ;;  %v127_v41 = vadd.f32 %v119_v39, %v75_v36 }
  0x1e   :  { %v135_v42 = vadd.f32 %v131_v40, %v127_v41 }
  0x20   :  { %v139_v43 = vmax.f32 %v135_v42, 0.0 }
  0x22   :  { %143 = vst [vmem:[%s249_s4 + $0x18] sm:$0xff] %v139_v43 }

// kernel: basic_block_forward.4
= control target key start
LH: loop header
LB: loop body
LE: loop exit
PB: predicated region body
PF: predicated region fallthrough
CT: control target
= control target key end

     0   :  { %s2708_s15 = smov 0   ;;  %s4104_s0 = inlined_call_operand.vmem [shape: f32[2,18,18,8], index: 0, kind: input, shape index: {}]   ;;  %s4105_s1 = inlined_call_operand.vmem [shape: f32[72,8], index: 1, kind: input, shape index: {}]   ;;  %s4106_s2 = inlined_call_operand.vmem [shape: f32[512,8], index: 2, kind: output, shape index: {0}]   ;;  %s4107_s3 = inlined_call_operand.vmem [shape: f32[2,1,8], index: 3, kind: output, shape index: {1}]   ;;  %s4108_s4 = inlined_call_operand.vmem [shape: f32[2,1,8], index: 4, kind: output, shape index: {2}]  }
   0x1 LB: > { %s2714_s16 = sadd.s32 4294967295, %s2673_s15   ;;  %p2393_p0 = scmp.ge.s32.totalorder %s2673_s15, 1  ;;  %s2673_s15 = sphi %s2708_s15, %s15_s15  }
   0x2   : > { %p167_p1 = scmp.lt.s32.totalorder %s2673_s15, 3 }
   0x4   : > { %p168_p2 = pnand %p2393_p0, %p167_p1 }
   0x6   : > { %171 = sbr.rel (%p168_p2) target bundleno = 972 (0x3cc), region = 28 }
   0xb   : > { %p199_p3 = scmp.lt.s32.totalorder %s2714_s16, 1  ;;  %s2675_s22 = smov 8   ;;  %vm248_vm0 = vcmask 64512   ;;  %vm441_vm1 = vcmask 130112   ;;  %vm634_vm2 = vcmask 195712   ;;  %vm828_vm3 = vcmask 261312  }
   0xc   : > { %s2676_s23 = smov 16   ;;  %s2677_s24 = smov 24   ;;  %vm1021_vm4 = vcmask 326912   ;;  %vm1214_vm5 = vcmask 392512   ;;  %vm1408_vm6 = vcmask 458112   ;;  %vm1601_vm7 = vcmask 523712  }
   0xd   : > { %s2720_s17 = scalar_select %p199_p3, %s2714_s16, 1  ;;  %vm1794_vm8 = vcmask 589312   ;;  %vm1868_vm9 = vcmask 588800   ;;  %vm2179_vm10 = vcmask 57344  }
   0xe   : > { %s2678_s25 = smov 32   ;;  %s2679_s26 = smov 40  }
   0xf   : > { %s2650_s18 = smul.u32 432, %s2720_s17  ;;  %s2680_s27 = smov 48  }
  0x10   : > { %s2681_s28 = smov 64   ;;  %s2682_s29 = smov 56  }
  0x11   : > { %s2726_s21 = scalar_lea.vmem %s4104_s0, %s2650_s18  ;;  %s2395_s30 = sshll.u32 %s2714_s16, 5 }
  0x12   : > { %v2729_v0 = vld [vmem:[%s2726_s21 + $0x19] sm:$0xff]  ;;  %v281_v1 = vld [vmem:[%s2726_s21 + $0x1] sm:$0xff]  ;;  %v2736_v2 = vld [vmem:[%s2726_s21 + $0x31] sm:$0xff]  ;;  %p205_p4 = scmp.lt.s32.totalorder %s2395_s30, 63  ;;  %s215_s8 = scalar_lea.vmem %s4108_s4, %s2720_s17 }
  0x13   : > { %349 = vrot.lane.b32.xlu1 %v2729_v0, %s2675_s22  ;;  %345 = vrot.lane.b32.xlu0 %v281_v1, %s2675_s22  ;;  %v2741_v3 = vld [vmem:[%s2726_s21 + $0x21] sm:$0xff]  ;;  %v282_v4 = vld [vmem:[%s2726_s21 + $0x9] sm:$0xff] }
  0x14   : > { %353 = vrot.lane.b32.xlu2 %v2736_v2, %s2675_s22  ;;  %v2745_v5 = vld [vmem:[%s2726_s21 + $0x39] sm:$0xff]  ;;  %v2753_v6 = vld [vmem:[%s2726_s21 + $0x51] sm:$0xff]  ;;  %v2756_v7 = vld [vmem:[%s2726_s21 + $0x49] sm:$0xff]  ;;  %s4200_s30 = smov (!%p205_p4, %s2395_s30), 63 }
  0x15   : > { %v2759_v8 = vld [vmem:[%s2726_s21 + $0x61] sm:$0xff]  ;;  %v2768_v9 = vld [vmem:[%s2726_s21 + $0x79] sm:$0xff]  ;;  %v2771_v10 = vld [vmem:[%s2726_s21 + $0x69] sm:$0xff]  ;;  %s2396_s16 = sshll.u32 %s4200_s30, 3 }
  0x16   : > { %v2774_v11 = vld [vmem:[%s2726_s21 + $0x81] sm:$0xff]  ;;  %v2783_v12 = vld [vmem:[%s2726_s21 + $0x99] sm:$0xff]  ;;  %v2786_v13 = vld [vmem:[%s2726_s21 + $0x91] sm:$0xff]  ;;  %s3823_s7 = scalar_lea.vmem %s4106_s2, %s2396_s16 }
  0x17   : > { %v2789_v14 = vld [vmem:[%s2726_s21 + $0xa9] sm:$0xff]  ;;  %v2798_v15 = vld [vmem:[%s2726_s21 + $0xc1] sm:$0xff]  ;;  %v2801_v16 = vld [vmem:[%s2726_s21 + $0xb1] sm:$0xff] }
  0x18   : > { %v2804_v17 = vld [vmem:[%s2726_s21 + $0xc9] sm:$0xff]  ;;  %v2813_v18 = vld [vmem:[%s2726_s21 + $0xe1] sm:$0xff]  ;;  %v2816_v19 = vld [vmem:[%s2726_s21 + $0xd9] sm:$0xff] }
  0x19   : > { %v2819_v20 = vld [vmem:[%s2726_s21 + $0xf1] sm:$0xff]  ;;  %v2828_v21 = vld [vmem:[%s2726_s21 + $0x109] sm:$0xff]  ;;  %v2831_v22 = vld [vmem:[%s2726_s21 + $0xf9] sm:$0xff] }
  0x1a   : > { %v2834_v23 = vld [vmem:[%s2726_s21 + $0x111] sm:$0xff]  ;;  %v2843_v24 = vld [vmem:[%s2726_s21 + $0x129] sm:$0xff]  ;;  %v2846_v25 = vld [vmem:[%s2726_s21 + $0x121] sm:$0xff] }
  0x1b   : > { %351 = vrot.lane.b32.xlu1 %v2741_v3, %s2675_s22  ;;  %347 = vrot.lane.b32.xlu0 %v282_v4, %s2675_s22  ;;  %v2849_v26 = vld [vmem:[%s2726_s21 + $0x139] sm:$0xff]  ;;  %v2858_v27 = vld [vmem:[%s2726_s21 + $0x151] sm:$0xff] }
  0x1c   : > { %355 = vrot.lane.b32.xlu2 %v2745_v5, %s2675_s22  ;;  %v2861_v28 = vld [vmem:[%s2726_s21 + $0x141] sm:$0xff]  ;;  %v2864_v29 = vld [vmem:[%s2726_s21 + $0x159] sm:$0xff]  ;;  %v2871_v30 = vld [vmem:[%s2726_s21 + $0x30] sm:$0xff] }
  0x1d   : > { %4139 = vst [vmem:[#allocation3_spill] sm:$0xff] %v2864_v29  ;;  %v2878_v31 = vld [vmem:[%s2726_s21 + $0x171] sm:$0xff]  ;;  %v2881_v32 = vld [vmem:[%s2726_s21 + $0x169] sm:$0xff]  ;;  %v216_v34 = vld [vmem:[%s2726_s21] sm:$0xff] }
  0x1e   : > { %253 = vst.msk [vmem:[#allocation2 + $0x20] sm:$0xff] %vm248_vm0, %v2871_v30  ;;  %v474_v33 = vld [vmem:[%s2726_s21 + $0x2] sm:$0xff]  ;;  %v2891_v35 = vld [vmem:[%s2726_s21 + $0x18] sm:$0xff]  ;;  %v475_v38 = vld [vmem:[%s2726_s21 + $0xa] sm:$0xff] }
  0x1f   : > { %4140 = vst [vmem:[#allocation4_spill] sm:$0xff] %v2878_v31  ;;  %v2897_v36 = vld [vmem:[%s2726_s21 + $0x38] sm:$0xff]  ;;  %v2906_v39 = vld [vmem:[%s2726_s21 + $0x22] sm:$0xff]  ;;  %v2933_v46 = vld [vmem:[%s2726_s21 + $0x4a] sm:$0xff] }
  0x20   : > { %4141 = vst [vmem:[#allocation5_spill] sm:$0xff] %v2881_v32  ;;  %v2900_v37 = vld [vmem:[%s2726_s21 + $0x1a] sm:$0xff]  ;;  %v217_v41 = vld [vmem:[%s2726_s21 + $0x8] sm:$0xff]  ;;  %v2927_v45 = vld [vmem:[%s2726_s21 + $0x32] sm:$0xff] }
  0x21   : > { %249 = vst.msk [vmem:[#allocation2] sm:$0xff] %vm248_vm0, %v216_v34  ;;  %v2914_v40 = vld [vmem:[%s2726_s21 + $0x20] sm:$0xff]  ;;  %v2942_v47 = vld [vmem:[%s2726_s21 + $0x50] sm:$0xff]  ;;  %v2945_v48 = vld [vmem:[%s2726_s21 + $0x48] sm:$0xff] }
  0x22   : > { %251 = vst.msk [vmem:[#allocation2 + $0x10] sm:$0xff] %vm248_vm0, %v2891_v35  ;;  %v2921_v43 = vld [vmem:[%s2726_s21 + $0x60] sm:$0xff]  ;;  %v2958_v52 = vld [vmem:[%s2726_s21 + $0x52] sm:$0xff]  ;;  %v2964_v53 = vld [vmem:[%s2726_s21 + $0x6a] sm:$0xff] }
  0x23   : > { %359 = vrot.lane.b32.xlu1 %v2753_v6, %s2675_s22  ;;  %357 = vrot.lane.b32.xlu0 %v2756_v7, %s2675_s22  ;;  %4142 = vst [vmem:[#allocation6_spill] sm:$0xff] %v2900_v37  ;;  %v2924_v44 = vld [vmem:[%s2726_s21 + $0x3a] sm:$0xff]  ;;  %v2955_v51 = vld [vmem:[%s2726_s21 + $0x62] sm:$0xff] }
  0x24   : > { %361 = vrot.lane.b32.xlu2 %v2759_v8, %s2675_s22  ;;  %254 = vst.msk [vmem:[#allocation2 + $0x28] sm:$0xff] %vm248_vm0, %v2897_v36  ;;  %v2952_v50 = vld [vmem:[%s2726_s21 + $0x80] sm:$0xff]  ;;  %v2973_v54 = vld [vmem:[%s2726_s21 + $0x78] sm:$0xff]  ;;  %v2976_v55 = vld [vmem:[%s2726_s21 + $0x68] sm:$0xff] }
  0x25   : > { %4143 = vst [vmem:[#allocation7_spill] sm:$0xff] %v2906_v39  ;;  %v2983_v57 = vld [vmem:[%s2726_s21 + $0xa8] sm:$0xff]  ;;  %v2989_v59 = vld [vmem:[%s2726_s21 + $0x7a] sm:$0xff]  ;;  %v2995_v60 = vld [vmem:[%s2726_s21 + $0x92] sm:$0xff] }
  0x26   : > { %252 = vst.msk [vmem:[#allocation2 + $0x18] sm:$0xff] %vm248_vm0, %v2914_v40  ;;  %v2986_v58 = vld [vmem:[%s2726_s21 + $0x82] sm:$0xff]  ;;  %v3005_v63 = vld [vmem:[%s2726_s21 + $0x98] sm:$0xff]  ;;  %v3009_v4 = vld [vmem:[%s2726_s21 + $0x90] sm:$0xff] }
  0x27   : > { %250 = vst.msk [vmem:[#allocation2 + $0x8] sm:$0xff] %vm248_vm0, %v217_v41  ;;  %v3015_v34 = vld [vmem:[%s2726_s21 + $0x9a] sm:$0xff]  ;;  %v3024_v41 = vld [vmem:[%s2726_s21 + $0xb2] sm:$0xff] }
  0x28   : > { %4144 = vst [vmem:[#allocation8_spill] sm:$0xff] %v2924_v44 }
  0x29   : > { %4145 = vst [vmem:[#allocation9_spill] sm:$0xff] %v2927_v45 }
  0x2a   : > { %257 = vst.msk [vmem:[#allocation2 + $0x40] sm:$0xff] %vm248_vm0, %v2921_v43 }
  0x2b   : > { %365 = vrot.lane.b32.xlu1 %v2768_v9, %s2675_s22  ;;  %363 = vrot.lane.b32.xlu0 %v2771_v10, %s2675_s22  ;;  %4146 = vst [vmem:[#allocation10_spill] sm:$0xff] %v2933_v46 }
  0x2c   : > { %367 = vrot.lane.b32.xlu2 %v2774_v11, %s2675_s22  ;;  %256 = vst.msk [vmem:[#allocation2 + $0x38] sm:$0xff] %vm248_vm0, %v2942_v47 }
  0x2d   : > { %255 = vst.msk [vmem:[#allocation2 + $0x30] sm:$0xff] %vm248_vm0, %v2945_v48 }
  0x2e   : > { %4147 = vst [vmem:[#allocation11_spill] sm:$0xff] %v2955_v51 }
  0x2f   : > { %4148 = vst [vmem:[#allocation12_spill] sm:$0xff] %v2958_v52 }
  0x30   : > { %260 = vst.msk [vmem:[#allocation2 + $0x58] sm:$0xff] %vm248_vm0, %v2952_v50 }
  0x31   : > { %4149 = vst [vmem:[#allocation13_spill] sm:$0xff] %v2964_v53 }
  0x32   : > { %259 = vst.msk [vmem:[#allocation2 + $0x50] sm:$0xff] %vm248_vm0, %v2973_v54 }
  0x33   : > { %371 = vrot.lane.b32.xlu1 %v2783_v12, %s2675_s22  ;;  %369 = vrot.lane.b32.xlu0 %v2786_v13, %s2675_s22  ;;  %258 = vst.msk [vmem:[#allocation2 + $0x48] sm:$0xff] %vm248_vm0, %v2976_v55 }
  0x34   : > { %373 = vrot.lane.b32.xlu2 %v2789_v14, %s2675_s22  ;;  %4150 = vst [vmem:[#allocation14_spill] sm:$0xff] %v2986_v58 }
  0x35   : > { %4151 = vst [vmem:[#allocation15_spill] sm:$0xff] %v2989_v59 }
  0x36   : > { %263 = vst.msk [vmem:[#allocation2 + $0x70] sm:$0xff] %vm248_vm0, %v2983_v57 }
  0x37   : > { %4152 = vst [vmem:[#allocation16_spill] sm:$0xff] %v2995_v60 }
  0x38   : > { %4154 = vst [vmem:[#allocation18_spill] sm:$0xff] %v3015_v34 }
  0x39   : > { %262 = vst.msk [vmem:[#allocation2 + $0x68] sm:$0xff] %vm248_vm0, %v3005_v63 }
  0x3a   : > { %4155 = vst [vmem:[#allocation19_spill] sm:$0xff] %v3024_v41 }
  0x3b   : > { %377 = vrot.lane.b32.xlu1 %v2798_v15, %s2675_s22  ;;  %375 = vrot.lane.b32.xlu0 %v2801_v16, %s2675_s22  ;;  %261 = vst.msk [vmem:[#allocation2 + $0x60] sm:$0xff] %vm248_vm0, %v3009_v4 }
  0x3c   : > { %379 = vrot.lane.b32.xlu2 %v2804_v17, %s2675_s22 }
  0x43   : > { %383 = vrot.lane.b32.xlu1 %v2813_v18, %s2675_s22  ;;  %381 = vrot.lane.b32.xlu0 %v2816_v19, %s2675_s22 }
  0x44   : > { %385 = vrot.lane.b32.xlu2 %v2819_v20, %s2675_s22 }
  0x4b   : > { %389 = vrot.lane.b32.xlu1 %v2828_v21, %s2675_s22  ;;  %387 = vrot.lane.b32.xlu0 %v2831_v22, %s2675_s22 }
  0x4c   : > { %391 = vrot.lane.b32.xlu2 %v2834_v23, %s2675_s22 }
  0x53   : > { %395 = vrot.lane.b32.xlu1 %v2843_v24, %s2675_s22  ;;  %393 = vrot.lane.b32.xlu0 %v2846_v25, %s2675_s22 }
  0x54   : > { %397 = vrot.lane.b32.xlu2 %v2849_v26, %s2675_s22 }
  0x5b   : > { %401 = vrot.lane.b32.xlu1 %v2858_v27, %s2675_s22  ;;  %399 = vrot.lane.b32.xlu0 %v2861_v28, %s2675_s22 }
  0x5c   : > { %403 = vrot.lane.b32.xlu2 %v2864_v29, %s2675_s22  ;;  %v3202_v29 = vld [vmem:[%s2726_s21 + $0x168] sm:$0xff] }
  0x5d   : > { %279 = vst.msk [vmem:[#allocation2 + $0xf0] sm:$0xff] %vm248_vm0, %v3202_v29 }
  0x63   : > { %407 = vrot.lane.b32.xlu1 %v2878_v31, %s2675_s22  ;;  %405 = vrot.lane.b32.xlu0 %v2881_v32, %s2675_s22  ;;  %v3205_v32 = vld [vmem:[%s2726_s21 + $0x172] sm:$0xff] }
  0x64   : > { %538 = vrot.lane.b32.xlu2 %v474_v33, %s2676_s23  ;;  %v3012_v33 = vld [vmem:[%s2726_s21 + $0xaa] sm:$0xff] }
  0x65   : > { %4153 = vst [vmem:[#allocation17_spill] sm:$0xff] %v3012_v33 }
  0x6b   : > { %542 = vrot.lane.b32.xlu1 %v2900_v37, %s2676_s23  ;;  %540 = vrot.lane.b32.xlu0 %v475_v38, %s2676_s23  ;;  %v3019_v38 = vld [vmem:[%s2726_s21 + $0xc8] sm:$0xff]  ;;  %v3180_v37 = vld [vmem:[%s2726_s21 + $0x152] sm:$0xff] }
  0x6c   : > { %544 = vrot.lane.b32.xlu2 %v2906_v39, %s2676_s23  ;;  %266 = vst.msk [vmem:[#allocation2 + $0x88] sm:$0xff] %vm248_vm0, %v3019_v38  ;;  %v3151_v39 = vld [vmem:[%s2726_s21 + $0x158] sm:$0xff] }
  0x6d   : > { %278 = vst.msk [vmem:[#allocation2 + $0xe8] sm:$0xff] %vm248_vm0, %v3151_v39 }
  0x6e   : > { %v354_v42 = vpop.permute.xlu2 %353 }
  0x6f   : > { %446 = vst.msk [vmem:[#allocation2 + $0x20] sm:$0xff] %vm441_vm1, %v354_v42 }
  0x73   : > { %548 = vrot.lane.b32.xlu1 %v2924_v44, %s2676_s23  ;;  %546 = vrot.lane.b32.xlu0 %v2927_v45, %s2676_s23  ;;  %v3144_v44 = vld [vmem:[%s2726_s21 + $0x13a] sm:$0xff] }
  0x74   : > { %550 = vrot.lane.b32.xlu2 %v2933_v46, %s2676_s23  ;;  %v3118_v46 = vld [vmem:[%s2726_s21 + $0x138] sm:$0xff]  ;;  %4165 = vst [vmem:[#allocation29_spill] sm:$0xff] %v3144_v44 }
  0x75   : > { %275 = vst.msk [vmem:[#allocation2 + $0xd0] sm:$0xff] %vm248_vm0, %v3118_v46 }
  0x76   : > { %v356_v49 = vpop.permute.xlu2 %355 }
  0x77   : > { %447 = vst.msk [vmem:[#allocation2 + $0x28] sm:$0xff] %vm441_vm1, %v356_v49 }
  0x7b   : > { %554 = vrot.lane.b32.xlu1 %v2955_v51, %s2676_s23  ;;  %552 = vrot.lane.b32.xlu0 %v2958_v52, %s2676_s23  ;;  %v3111_v51 = vld [vmem:[%s2726_s21 + $0x112] sm:$0xff] }
  0x7c   : > { %556 = vrot.lane.b32.xlu2 %v2964_v53, %s2676_s23  ;;  %v3085_v53 = vld [vmem:[%s2726_s21 + $0x110] sm:$0xff]  ;;  %4162 = vst [vmem:[#allocation26_spill] sm:$0xff] %v3111_v51 }
  0x7d   : > { %272 = vst.msk [vmem:[#allocation2 + $0xb8] sm:$0xff] %vm248_vm0, %v3085_v53 }
  0x7e   : > { %v362_v56 = vpop.permute.xlu2 %361 }
  0x7f   : > { %450 = vst.msk [vmem:[#allocation2 + $0x40] sm:$0xff] %vm441_vm1, %v362_v56  ;;  %v3038_v56 = vld [vmem:[%s2726_s21 + $0xc0] sm:$0xff] }
  0x80   : > { %265 = vst.msk [vmem:[#allocation2 + $0x80] sm:$0xff] %vm248_vm0, %v3038_v56 }
  0x83   : > { %560 = vrot.lane.b32.xlu1 %v2986_v58, %s2676_s23  ;;  %558 = vrot.lane.b32.xlu0 %v2989_v59, %s2676_s23  ;;  %v3078_v58 = vld [vmem:[%s2726_s21 + $0xf2] sm:$0xff] }
  0x84   : > { %562 = vrot.lane.b32.xlu2 %v2995_v60, %s2676_s23  ;;  %v3052_v60 = vld [vmem:[%s2726_s21 + $0xf0] sm:$0xff]  ;;  %4159 = vst [vmem:[#allocation23_spill] sm:$0xff] %v3078_v58 }
  0x85   : > { %v350_v61 = vpop.permute.xlu1 %349  ;;  %v346_v62 = vpop.permute.xlu0 %345  ;;  %269 = vst.msk [vmem:[#allocation2 + $0xa0] sm:$0xff] %vm248_vm0, %v3052_v60 }
  0x86   : > { %444 = vst.msk [vmem:[#allocation2 + $0x10] sm:$0xff] %vm441_vm1, %v350_v61  ;;  %v368_v1 = vpop.permute.xlu2 %367 }
  0x87   : > { %442 = vst.msk [vmem:[#allocation2] sm:$0xff] %vm441_vm1, %v346_v62  ;;  %v3042_v62 = vld [vmem:[%s2726_s21 + $0xb0] sm:$0xff] }
  0x88   : > { %453 = vst.msk [vmem:[#allocation2 + $0x58] sm:$0xff] %vm441_vm1, %v368_v1  ;;  %v3045_v1 = vld [vmem:[%s2726_s21 + $0xca] sm:$0xff] }
  0x89   : > { %4156 = vst [vmem:[#allocation20_spill] sm:$0xff] %v3045_v1 }
  0x8a   : > { %264 = vst.msk [vmem:[#allocation2 + $0x78] sm:$0xff] %vm248_vm0, %v3042_v62 }
  0x8b   : > { %566 = vrot.lane.b32.xlu1 %v3012_v33, %s2676_s23  ;;  %564 = vrot.lane.b32.xlu0 %v3015_v34, %s2676_s23  ;;  %v3048_v33 = vld [vmem:[%s2726_s21 + $0xc2] sm:$0xff] }
  0x8c   : > { %568 = vrot.lane.b32.xlu2 %v3024_v41, %s2676_s23  ;;  %4157 = vst [vmem:[#allocation21_spill] sm:$0xff] %v3048_v33  ;;  %v3071_v41 = vld [vmem:[%s2726_s21 + $0xe0] sm:$0xff] }
  0x8d   : > { %v352_v42 = vpop.permute.xlu1 %351  ;;  %v348_v49 = vpop.permute.xlu0 %347  ;;  %268 = vst.msk [vmem:[#allocation2 + $0x98] sm:$0xff] %vm248_vm0, %v3071_v41 }
  0x8e   : > { %445 = vst.msk [vmem:[#allocation2 + $0x18] sm:$0xff] %vm441_vm1, %v352_v42  ;;  %v374_v61 = vpop.permute.xlu2 %373  ;;  %v3057_v42 = vld [vmem:[%s2726_s21 + $0xda] sm:$0xff] }
  0x8f   : > { %443 = vst.msk [vmem:[#allocation2 + $0x8] sm:$0xff] %vm441_vm1, %v348_v49 }
  0x90   : > { %456 = vst.msk [vmem:[#allocation2 + $0x70] sm:$0xff] %vm441_vm1, %v374_v61 }
  0x91   : > { %4158 = vst [vmem:[#allocation22_spill] sm:$0xff] %v3057_v42 }
  0x93   : > { %572 = vrot.lane.b32.xlu1 %v3045_v1, %s2676_s23  ;;  %570 = vrot.lane.b32.xlu0 %v3048_v33, %s2676_s23  ;;  %v3075_v1 = vld [vmem:[%s2726_s21 + $0xd8] sm:$0xff]  ;;  %v3081_v33 = vld [vmem:[%s2726_s21 + $0xe2] sm:$0xff] }
  0x94   : > { %574 = vrot.lane.b32.xlu2 %v3057_v42, %s2676_s23  ;;  %4160 = vst [vmem:[#allocation24_spill] sm:$0xff] %v3081_v33  ;;  %v3104_v42 = vld [vmem:[%s2726_s21 + $0x108] sm:$0xff] }
  0x95   : > { %v360_v49 = vpop.permute.xlu1 %359  ;;  %v358_v61 = vpop.permute.xlu0 %357  ;;  %267 = vst.msk [vmem:[#allocation2 + $0x90] sm:$0xff] %vm248_vm0, %v3075_v1 }
  0x96   : > { %449 = vst.msk [vmem:[#allocation2 + $0x38] sm:$0xff] %vm441_vm1, %v360_v49  ;;  %v380_v34 = vpop.permute.xlu2 %379  ;;  %v3090_v49 = vld [vmem:[%s2726_s21 + $0xfa] sm:$0xff] }
  0x97   : > { %448 = vst.msk [vmem:[#allocation2 + $0x30] sm:$0xff] %vm441_vm1, %v358_v61 }
  0x98   : > { %459 = vst.msk [vmem:[#allocation2 + $0x88] sm:$0xff] %vm441_vm1, %v380_v34 }
  0x99   : > { %4161 = vst [vmem:[#allocation25_spill] sm:$0xff] %v3090_v49 }
  0x9a   : > { %271 = vst.msk [vmem:[#allocation2 + $0xb0] sm:$0xff] %vm248_vm0, %v3104_v42 }
  0x9b   : > { %578 = vrot.lane.b32.xlu1 %v3078_v58, %s2676_s23  ;;  %576 = vrot.lane.b32.xlu0 %v3081_v33, %s2676_s23  ;;  %v3108_v58 = vld [vmem:[%s2726_s21 + $0xf8] sm:$0xff]  ;;  %v3114_v33 = vld [vmem:[%s2726_s21 + $0x10a] sm:$0xff] }
  0x9c   : > { %580 = vrot.lane.b32.xlu2 %v3090_v49, %s2676_s23  ;;  %4163 = vst [vmem:[#allocation27_spill] sm:$0xff] %v3114_v33  ;;  %v3137_v49 = vld [vmem:[%s2726_s21 + $0x128] sm:$0xff] }
  0x9d   : > { %v366_v34 = vpop.permute.xlu1 %365  ;;  %v364_v61 = vpop.permute.xlu0 %363  ;;  %270 = vst.msk [vmem:[#allocation2 + $0xa8] sm:$0xff] %vm248_vm0, %v3108_v58 }
  0x9e   : > { %452 = vst.msk [vmem:[#allocation2 + $0x50] sm:$0xff] %vm441_vm1, %v366_v34  ;;  %v386_v59 = vpop.permute.xlu2 %385  ;;  %v3123_v34 = vld [vmem:[%s2726_s21 + $0x122] sm:$0xff] }
  0x9f   : > { %451 = vst.msk [vmem:[#allocation2 + $0x48] sm:$0xff] %vm441_vm1, %v364_v61 }
  0xa0   : > { %462 = vst.msk [vmem:[#allocation2 + $0xa0] sm:$0xff] %vm441_vm1, %v386_v59 }
  0xa1   : > { %4164 = vst [vmem:[#allocation28_spill] sm:$0xff] %v3123_v34 }
  0xa2   : > { %274 = vst.msk [vmem:[#allocation2 + $0xc8] sm:$0xff] %vm248_vm0, %v3137_v49 }
  0xa3   : > { %584 = vrot.lane.b32.xlu1 %v3111_v51, %s2676_s23  ;;  %582 = vrot.lane.b32.xlu0 %v3114_v33, %s2676_s23  ;;  %v3141_v51 = vld [vmem:[%s2726_s21 + $0x120] sm:$0xff]  ;;  %v3147_v33 = vld [vmem:[%s2726_s21 + $0x12a] sm:$0xff] }
  0xa4   : > { %586 = vrot.lane.b32.xlu2 %v3123_v34, %s2676_s23  ;;  %4166 = vst [vmem:[#allocation30_spill] sm:$0xff] %v3147_v33  ;;  %v3170_v34 = vld [vmem:[%s2726_s21 + $0x150] sm:$0xff] }
  0xa5   : > { %v372_v59 = vpop.permute.xlu1 %371  ;;  %v370_v61 = vpop.permute.xlu0 %369  ;;  %273 = vst.msk [vmem:[#allocation2 + $0xc0] sm:$0xff] %vm248_vm0, %v3141_v51 }
  0xa6   : > { %455 = vst.msk [vmem:[#allocation2 + $0x68] sm:$0xff] %vm441_vm1, %v372_v59  ;;  %v392_v52 = vpop.permute.xlu2 %391  ;;  %v3156_v59 = vld [vmem:[%s2726_s21 + $0x142] sm:$0xff] }
  0xa7   : > { %454 = vst.msk [vmem:[#allocation2 + $0x60] sm:$0xff] %vm441_vm1, %v370_v61 }
  0xa8   : > { %465 = vst.msk [vmem:[#allocation2 + $0xb8] sm:$0xff] %vm441_vm1, %v392_v52 }
  0xa9   : > { %4167 = vst [vmem:[#allocation31_spill] sm:$0xff] %v3156_v59 }
  0xaa   : > { %277 = vst.msk [vmem:[#allocation2 + $0xe0] sm:$0xff] %vm248_vm0, %v3170_v34 }
  0xab   : > { %590 = vrot.lane.b32.xlu1 %v3144_v44, %s2676_s23  ;;  %588 = vrot.lane.b32.xlu0 %v3147_v33, %s2676_s23  ;;  %v3174_v44 = vld [vmem:[%s2726_s21 + $0x140] sm:$0xff] }
  0xac   : > { %592 = vrot.lane.b32.xlu2 %v3156_v59, %s2676_s23  ;;  %v3177_v33 = vld [vmem:[%s2726_s21 + $0x15a] sm:$0xff]  ;;  %276 = vst.msk [vmem:[#allocation2 + $0xd8] sm:$0xff] %vm248_vm0, %v3174_v44 }
  0xad   : > { %v378_v52 = vpop.permute.xlu1 %377  ;;  %v376_v61 = vpop.permute.xlu0 %375 }
  0xae   : > { %458 = vst.msk [vmem:[#allocation2 + $0x80] sm:$0xff] %vm441_vm1, %v378_v52  ;;  %v398_v45 = vpop.permute.xlu2 %397  ;;  %v3186_v52 = vld [vmem:[%s2726_s21 + $0x16a] sm:$0xff] }
  0xaf   : > { %457 = vst.msk [vmem:[#allocation2 + $0x78] sm:$0xff] %vm441_vm1, %v376_v61 }
  0xb0   : > { %468 = vst.msk [vmem:[#allocation2 + $0xd0] sm:$0xff] %vm441_vm1, %v398_v45  ;;  %v3198_v45 = vld [vmem:[%s2726_s21 + $0x170] sm:$0xff] }
  0xb1   : > { %4168 = vst [vmem:[#allocation32_spill] sm:$0xff] %v3186_v52 }
  0xb2   : > { %280 = vst.msk [vmem:[#allocation2 + $0xf8] sm:$0xff] %vm248_vm0, %v3198_v45 }
  0xb3   : > { %596 = vrot.lane.b32.xlu1 %v3177_v33, %s2676_s23  ;;  %594 = vrot.lane.b32.xlu0 %v3180_v37, %s2676_s23 }
  0xb4   : > { %598 = vrot.lane.b32.xlu2 %v3186_v52, %s2676_s23 }
  0xb5   : > { %v384_v61 = vpop.permute.xlu1 %383  ;;  %v382_v59 = vpop.permute.xlu0 %381 }
  0xb6   : > { %461 = vst.msk [vmem:[#allocation2 + $0x98] sm:$0xff] %vm441_vm1, %v384_v61  ;;  %v404_v31 = vpop.permute.xlu2 %403 }
  0xb7   : > { %460 = vst.msk [vmem:[#allocation2 + $0x90] sm:$0xff] %vm441_vm1, %v382_v59 }
  0xb8   : > { %471 = vst.msk [vmem:[#allocation2 + $0xe8] sm:$0xff] %vm441_vm1, %v404_v31 }
  0xbb   : > { %732 = vrot.lane.b32.xlu1 %v2891_v35, %s2677_s24  ;;  %600 = vrot.lane.b32.xlu0 %v3205_v32, %s2676_s23 }
  0xbc   : > { %734 = vrot.lane.b32.xlu2 %v2914_v40, %s2677_s24 }
  0xbd   : > { %v390_v59 = vpop.permute.xlu1 %389  ;;  %v388_v61 = vpop.permute.xlu0 %387 }
  0xbe   : > { %464 = vst.msk [vmem:[#allocation2 + $0xb0] sm:$0xff] %vm441_vm1, %v390_v59  ;;  %v539_v31 = vpop.permute.xlu2 %538 }
  0xbf   : > { %463 = vst.msk [vmem:[#allocation2 + $0xa8] sm:$0xff] %vm441_vm1, %v388_v61 }
  0xc0   : > { %635 = vst.msk [vmem:[#allocation2] sm:$0xff] %vm634_vm2, %v539_v31 }
  0xc3   : > { %738 = vrot.lane.b32.xlu1 %v2897_v36, %s2677_s24  ;;  %736 = vrot.lane.b32.xlu0 %v2871_v30, %s2677_s24 }
  0xc4   : > { %740 = vrot.lane.b32.xlu2 %v2945_v48, %s2677_s24 }
  0xc5   : > { %v396_v35 = vpop.permute.xlu1 %395  ;;  %v394_v52 = vpop.permute.xlu0 %393 }
  0xc6   : > { %467 = vst.msk [vmem:[#allocation2 + $0xc8] sm:$0xff] %vm441_vm1, %v396_v35  ;;  %v545_v40 = vpop.permute.xlu2 %544  ;;  %v2427_v35 = vld [vmem:[%s2726_s21 + $0x180] sm:$0xff] }
  0xc7   : > { %466 = vst.msk [vmem:[#allocation2 + $0xc0] sm:$0xff] %vm441_vm1, %v394_v52 }
  0xc8   : > { %638 = vst.msk [vmem:[#allocation2 + $0x18] sm:$0xff] %vm634_vm2, %v545_v40  ;;  %v2428_v40 = vld [vmem:[%s2726_s21 + $0x188] sm:$0xff] }
  0xcb   : > { %744 = vrot.lane.b32.xlu1 %v2921_v43, %s2677_s24  ;;  %742 = vrot.lane.b32.xlu0 %v2942_v47, %s2677_s24 }
  0xcc   : > { %746 = vrot.lane.b32.xlu2 %v2976_v55, %s2677_s24 }
  0xcd   : > { %v402_v36 = vpop.permute.xlu1 %401  ;;  %v400_v30 = vpop.permute.xlu0 %399 }
  0xce   : > { %470 = vst.msk [vmem:[#allocation2 + $0xe0] sm:$0xff] %vm441_vm1, %v402_v36  ;;  %v551_v48 = vpop.permute.xlu2 %550 }
  0xcf   : > { %469 = vst.msk [vmem:[#allocation2 + $0xd8] sm:$0xff] %vm441_vm1, %v400_v30 }
  0xd0   : > { %641 = vst.msk [vmem:[#allocation2 + $0x30] sm:$0xff] %vm634_vm2, %v551_v48 }
  0xd3   : > { %750 = vrot.lane.b32.xlu1 %v2952_v50, %s2677_s24  ;;  %748 = vrot.lane.b32.xlu0 %v2973_v54, %s2677_s24 }
  0xd4   : > { %752 = vrot.lane.b32.xlu2 %v3009_v4, %s2677_s24 }
  0xd5   : > { %v408_v43 = vpop.permute.xlu1 %407  ;;  %v406_v47 = vpop.permute.xlu0 %405 }
  0xd6   : > { %473 = vst.msk [vmem:[#allocation2 + $0xf8] sm:$0xff] %vm441_vm1, %v408_v43  ;;  %v557_v55 = vpop.permute.xlu2 %556  ;;  %v4169_v43 = vld [vmem:[#allocation5_spill] sm:$0xff] }
  0xd7   : > { %472 = vst.msk [vmem:[#allocation2 + $0xf0] sm:$0xff] %vm441_vm1, %v406_v47 }
  0xd8   : > { %644 = vst.msk [vmem:[#allocation2 + $0x48] sm:$0xff] %vm634_vm2, %v557_v55  ;;  %v4171_v55 = vld [vmem:[#allocation4_spill] sm:$0xff] }
  0xdb   : > { %756 = vrot.lane.b32.xlu1 %v2983_v57, %s2677_s24  ;;  %754 = vrot.lane.b32.xlu0 %v3005_v63, %s2677_s24 }
  0xdc   : > { %758 = vrot.lane.b32.xlu2 %v3042_v62, %s2677_s24 }
  0xdd   : > { %v543_v50 = vpop.permute.xlu1 %542  ;;  %v541_v54 = vpop.permute.xlu0 %540 }
  0xde   : > { %637 = vst.msk [vmem:[#allocation2 + $0x10] sm:$0xff] %vm634_vm2, %v543_v50  ;;  %v563_v52 = vpop.permute.xlu2 %562  ;;  %v2460_v50 = vld [vmem:[%s2726_s21 + $0x189] sm:$0xff] }
  0xdf   : > { %636 = vst.msk [vmem:[#allocation2 + $0x8] sm:$0xff] %vm634_vm2, %v541_v54  ;;  %v2459_v54 = vld [vmem:[%s2726_s21 + $0x181] sm:$0xff] }
  0xe0   : > { %647 = vst.msk [vmem:[#allocation2 + $0x60] sm:$0xff] %vm634_vm2, %v563_v52 }
  0xe3   : > { %762 = vrot.lane.b32.xlu1 %v3019_v38, %s2677_s24  ;;  %760 = vrot.lane.b32.xlu0 %v3038_v56, %s2677_s24 }
  0xe4   : > { %764 = vrot.lane.b32.xlu2 %v3075_v1, %s2677_s24 }
  0xe5   : > { %v549_v57 = vpop.permute.xlu1 %548  ;;  %v547_v59 = vpop.permute.xlu0 %546 }
  0xe6   : > { %640 = vst.msk [vmem:[#allocation2 + $0x28] sm:$0xff] %vm634_vm2, %v549_v57  ;;  %v569_v62 = vpop.permute.xlu2 %568 }
  0xe7   : > { %639 = vst.msk [vmem:[#allocation2 + $0x20] sm:$0xff] %vm634_vm2, %v547_v59  ;;  %v4172_v59 = vld [vmem:[#allocation6_spill] sm:$0xff] }
  0xe8   : > { %650 = vst.msk [vmem:[#allocation2 + $0x78] sm:$0xff] %vm634_vm2, %v569_v62 }
  0xeb   : > { %768 = vrot.lane.b32.xlu1 %v3052_v60, %s2677_s24  ;;  %766 = vrot.lane.b32.xlu0 %v3071_v41, %s2677_s24 }
  0xec   : > { %770 = vrot.lane.b32.xlu2 %v3108_v58, %s2677_s24 }
  0xed   : > { %v555_v38 = vpop.permute.xlu1 %554  ;;  %v553_v56 = vpop.permute.xlu0 %552 }
  0xee   : > { %643 = vst.msk [vmem:[#allocation2 + $0x40] sm:$0xff] %vm634_vm2, %v555_v38  ;;  %v575_v1 = vpop.permute.xlu2 %574  ;;  %v4173_v38 = vld [vmem:[#allocation9_spill] sm:$0xff] }
  0xef   : > { %642 = vst.msk [vmem:[#allocation2 + $0x38] sm:$0xff] %vm634_vm2, %v553_v56  ;;  %v4174_v56 = vld [vmem:[#allocation7_spill] sm:$0xff] }
  0xf0   : > { %653 = vst.msk [vmem:[#allocation2 + $0x90] sm:$0xff] %vm634_vm2, %v575_v1 }
  0xf3   : > { %774 = vrot.lane.b32.xlu1 %v3085_v53, %s2677_s24  ;;  %772 = vrot.lane.b32.xlu0 %v3104_v42, %s2677_s24 }
  0xf4   : > { %776 = vrot.lane.b32.xlu2 %v3141_v51, %s2677_s24 }
  0xf5   : > { %v561_v61 = vpop.permute.xlu1 %560  ;;  %v559_v41 = vpop.permute.xlu0 %558 }
  0xf6   : > { %646 = vst.msk [vmem:[#allocation2 + $0x58] sm:$0xff] %vm634_vm2, %v561_v61  ;;  %v581_v31 = vpop.permute.xlu2 %580 }
  0xf7   : > { %645 = vst.msk [vmem:[#allocation2 + $0x50] sm:$0xff] %vm634_vm2, %v559_v41  ;;  %v4175_v41 = vld [vmem:[#allocation8_spill] sm:$0xff] }
  0xf8   : > { %656 = vst.msk [vmem:[#allocation2 + $0xa8] sm:$0xff] %vm634_vm2, %v581_v31 }
  0xfb   : > { %780 = vrot.lane.b32.xlu1 %v3118_v46, %s2677_s24  ;;  %778 = vrot.lane.b32.xlu0 %v3137_v49, %s2677_s24 }
  0xfc   : > { %782 = vrot.lane.b32.xlu2 %v3174_v44, %s2677_s24 }
  0xfd   : > { %v567_v53 = vpop.permute.xlu1 %566  ;;  %v565_v42 = vpop.permute.xlu0 %564 }
  0xfe   : > { %649 = vst.msk [vmem:[#allocation2 + $0x70] sm:$0xff] %vm634_vm2, %v567_v53  ;;  %v587_v51 = vpop.permute.xlu2 %586  ;;  %v4176_v53 = vld [vmem:[#allocation12_spill] sm:$0xff] }
  0xff   : > { %648 = vst.msk [vmem:[#allocation2 + $0x68] sm:$0xff] %vm634_vm2, %v565_v42  ;;  %v4177_v42 = vld [vmem:[#allocation10_spill] sm:$0xff] }
 0x100   : > { %659 = vst.msk [vmem:[#allocation2 + $0xc0] sm:$0xff] %vm634_vm2, %v587_v51 }
 0x103   : > { %786 = vrot.lane.b32.xlu1 %v3151_v39, %s2677_s24  ;;  %784 = vrot.lane.b32.xlu0 %v3170_v34, %s2677_s24 }
 0x104   : > { %788 = vrot.lane.b32.xlu2 %v3202_v29, %s2677_s24 }
 0x105   : > { %v573_v46 = vpop.permute.xlu1 %572  ;;  %v571_v49 = vpop.permute.xlu0 %570 }
 0x106   : > { %652 = vst.msk [vmem:[#allocation2 + $0x88] sm:$0xff] %vm634_vm2, %v573_v46  ;;  %v593_v44 = vpop.permute.xlu2 %592 }
 0x107   : > { %651 = vst.msk [vmem:[#allocation2 + $0x80] sm:$0xff] %vm634_vm2, %v571_v49  ;;  %v4178_v49 = vld [vmem:[#allocation11_spill] sm:$0xff] }
 0x108   : > { %662 = vst.msk [vmem:[#allocation2 + $0xd8] sm:$0xff] %vm634_vm2, %v593_v44 }
 0x10b   : > { %792 = vrot.lane.b32.xlu1 %v2427_v35, %s2677_s24  ;;  %790 = vrot.lane.b32.xlu0 %v3198_v45, %s2677_s24  ;;  %v4179_v35 = vld [vmem:[#allocation15_spill] sm:$0xff] }
 0x10c   : > { %794 = vrot.lane.b32.xlu2 %v2428_v40, %s2677_s24  ;;  %v4180_v40 = vld [vmem:[#allocation13_spill] sm:$0xff] }
 0x10d   : > { %v579_v39 = vpop.permute.xlu1 %578  ;;  %v577_v36 = vpop.permute.xlu0 %576 }
 0x10e   : > { %655 = vst.msk [vmem:[#allocation2 + $0xa0] sm:$0xff] %vm634_vm2, %v579_v39  ;;  %v599_v29 = vpop.permute.xlu2 %598 }
 0x10f   : > { %654 = vst.msk [vmem:[#allocation2 + $0x98] sm:$0xff] %vm634_vm2, %v577_v36 }
 0x110   : > { %665 = vst.msk [vmem:[#allocation2 + $0xf0] sm:$0xff] %vm634_vm2, %v599_v29  ;;  %v4181_v29 = vld [vmem:[#allocation14_spill] sm:$0xff] }
 0x113   : > { %927 = vrot.lane.b32.xlu1 %v2741_v3, %s2678_s25  ;;  %925 = vrot.lane.b32.xlu0 %v2729_v0, %s2678_s25 }
 0x114   : > { %929 = vrot.lane.b32.xlu2 %v2736_v2, %s2678_s25 }
 0x115   : > { %v585_v30 = vpop.permute.xlu1 %584  ;;  %v583_v45 = vpop.permute.xlu0 %582 }
 0x116   : > { %658 = vst.msk [vmem:[#allocation2 + $0xb8] sm:$0xff] %vm634_vm2, %v585_v30  ;;  %v735_v48 = vpop.permute.xlu2 %734 }
 0x117   : > { %657 = vst.msk [vmem:[#allocation2 + $0xb0] sm:$0xff] %vm634_vm2, %v583_v45  ;;  %v4182_v45 = vld [vmem:[#allocation18_spill] sm:$0xff] }
 0x118   : > { %830 = vst.msk [vmem:[#allocation2 + $0x8] sm:$0xff] %vm828_vm3, %v735_v48  ;;  %v4183_v48 = vld [vmem:[#allocation16_spill] sm:$0xff] }
 0x11b   : > { %933 = vrot.lane.b32.xlu1 %v2756_v7, %s2678_s25  ;;  %931 = vrot.lane.b32.xlu0 %v2745_v5, %s2678_s25 }
 0x11c   : > { %935 = vrot.lane.b32.xlu2 %v2753_v6, %s2678_s25 }
 0x11d   : > { %v591_v0 = vpop.permute.xlu1 %590  ;;  %v589_v3 = vpop.permute.xlu0 %588 }
 0x11e   : > { %661 = vst.msk [vmem:[#allocation2 + $0xd0] sm:$0xff] %vm634_vm2, %v591_v0  ;;  %v741_v2 = vpop.permute.xlu2 %740 }
 0x11f   : > { %660 = vst.msk [vmem:[#allocation2 + $0xc8] sm:$0xff] %vm634_vm2, %v589_v3 }
 0x120   : > { %833 = vst.msk [vmem:[#allocation2 + $0x20] sm:$0xff] %vm828_vm3, %v741_v2  ;;  %v4184_v2 = vld [vmem:[#allocation17_spill] sm:$0xff] }
 0x123   : > { %939 = vrot.lane.b32.xlu1 %v2771_v10, %s2678_s25  ;;  %937 = vrot.lane.b32.xlu0 %v2759_v8, %s2678_s25 }
 0x124   : > { %941 = vrot.lane.b32.xlu2 %v2768_v9, %s2678_s25 }
 0x125   : > { %v597_v7 = vpop.permute.xlu1 %596  ;;  %v595_v5 = vpop.permute.xlu0 %594 }
 0x126   : > { %664 = vst.msk [vmem:[#allocation2 + $0xe8] sm:$0xff] %vm634_vm2, %v597_v7  ;;  %v747_v6 = vpop.permute.xlu2 %746 }
 0x127   : > { %663 = vst.msk [vmem:[#allocation2 + $0xe0] sm:$0xff] %vm634_vm2, %v595_v5  ;;  %v4185_v5 = vld [vmem:[#allocation21_spill] sm:$0xff] }
 0x128   : > { %836 = vst.msk [vmem:[#allocation2 + $0x38] sm:$0xff] %vm828_vm3, %v747_v6  ;;  %v4186_v6 = vld [vmem:[#allocation19_spill] sm:$0xff] }
 0x12b   : > { %945 = vrot.lane.b32.xlu1 %v2786_v13, %s2678_s25  ;;  %943 = vrot.lane.b32.xlu0 %v2774_v11, %s2678_s25 }
 0x12c   : > { %947 = vrot.lane.b32.xlu2 %v2783_v12, %s2678_s25 }
 0x12d   : > { %v733_v10 = vpop.permute.xlu1 %732  ;;  %v601_v8 = vpop.permute.xlu0 %600 }
 0x12e   : > { %829 = vst.msk [vmem:[#allocation2] sm:$0xff] %vm828_vm3, %v733_v10  ;;  %v753_v9 = vpop.permute.xlu2 %752 }
 0x12f   : > { %666 = vst.msk [vmem:[#allocation2 + $0xf8] sm:$0xff] %vm634_vm2, %v601_v8 }
 0x130   : > { %839 = vst.msk [vmem:[#allocation2 + $0x50] sm:$0xff] %vm828_vm3, %v753_v9  ;;  %v4187_v9 = vld [vmem:[#allocation20_spill] sm:$0xff] }
 0x133   : > { %951 = vrot.lane.b32.xlu1 %v2801_v16, %s2678_s25  ;;  %949 = vrot.lane.b32.xlu0 %v2789_v14, %s2678_s25 }
 0x134   : > { %953 = vrot.lane.b32.xlu2 %v2798_v15, %s2678_s25 }
 0x135   : > { %v739_v13 = vpop.permute.xlu1 %738  ;;  %v737_v11 = vpop.permute.xlu0 %736 }
 0x136   : > { %832 = vst.msk [vmem:[#allocation2 + $0x18] sm:$0xff] %vm828_vm3, %v739_v13  ;;  %v759_v12 = vpop.permute.xlu2 %758 }
 0x137   : > { %831 = vst.msk [vmem:[#allocation2 + $0x10] sm:$0xff] %vm828_vm3, %v737_v11  ;;  %v4188_v11 = vld [vmem:[#allocation24_spill] sm:$0xff] }
 0x138   : > { %842 = vst.msk [vmem:[#allocation2 + $0x68] sm:$0xff] %vm828_vm3, %v759_v12  ;;  %v4189_v12 = vld [vmem:[#allocation22_spill] sm:$0xff] }
 0x13b   : > { %957 = vrot.lane.b32.xlu1 %v2816_v19, %s2678_s25  ;;  %955 = vrot.lane.b32.xlu0 %v2804_v17, %s2678_s25 }
 0x13c   : > { %959 = vrot.lane.b32.xlu2 %v2813_v18, %s2678_s25 }
 0x13d   : > { %v745_v16 = vpop.permute.xlu1 %744  ;;  %v743_v14 = vpop.permute.xlu0 %742 }
 0x13e   : > { %835 = vst.msk [vmem:[#allocation2 + $0x30] sm:$0xff] %vm828_vm3, %v745_v16  ;;  %v765_v15 = vpop.permute.xlu2 %764 }
 0x13f   : > { %834 = vst.msk [vmem:[#allocation2 + $0x28] sm:$0xff] %vm828_vm3, %v743_v14 }
 0x140   : > { %845 = vst.msk [vmem:[#allocation2 + $0x80] sm:$0xff] %vm828_vm3, %v765_v15  ;;  %v4190_v15 = vld [vmem:[#allocation23_spill] sm:$0xff] }
 0x143   : > { %963 = vrot.lane.b32.xlu1 %v2831_v22, %s2678_s25  ;;  %961 = vrot.lane.b32.xlu0 %v2819_v20, %s2678_s25 }
 0x144   : > { %965 = vrot.lane.b32.xlu2 %v2828_v21, %s2678_s25 }
 0x145   : > { %v751_v19 = vpop.permute.xlu1 %750  ;;  %v749_v17 = vpop.permute.xlu0 %748 }
 0x146   : > { %838 = vst.msk [vmem:[#allocation2 + $0x48] sm:$0xff] %vm828_vm3, %v751_v19  ;;  %v771_v18 = vpop.permute.xlu2 %770 }
 0x147   : > { %837 = vst.msk [vmem:[#allocation2 + $0x40] sm:$0xff] %vm828_vm3, %v749_v17  ;;  %v4191_v17 = vld [vmem:[#allocation27_spill] sm:$0xff] }
 0x148   : > { %848 = vst.msk [vmem:[#allocation2 + $0x98] sm:$0xff] %vm828_vm3, %v771_v18  ;;  %v4192_v18 = vld [vmem:[#allocation25_spill] sm:$0xff] }
 0x14b   : > { %969 = vrot.lane.b32.xlu1 %v2846_v25, %s2678_s25  ;;  %967 = vrot.lane.b32.xlu0 %v2834_v23, %s2678_s25 }
 0x14c   : > { %971 = vrot.lane.b32.xlu2 %v2843_v24, %s2678_s25 }
 0x14d   : > { %v757_v22 = vpop.permute.xlu1 %756  ;;  %v755_v20 = vpop.permute.xlu0 %754 }
 0x14e   : > { %841 = vst.msk [vmem:[#allocation2 + $0x60] sm:$0xff] %vm828_vm3, %v757_v22  ;;  %v777_v21 = vpop.permute.xlu2 %776 }
 0x14f   : > { %840 = vst.msk [vmem:[#allocation2 + $0x58] sm:$0xff] %vm828_vm3, %v755_v20 }
 0x150   : > { %851 = vst.msk [vmem:[#allocation2 + $0xb0] sm:$0xff] %vm828_vm3, %v777_v21  ;;  %v4193_v21 = vld [vmem:[#allocation26_spill] sm:$0xff] }
 0x153   : > { %975 = vrot.lane.b32.xlu1 %v2861_v28, %s2678_s25  ;;  %973 = vrot.lane.b32.xlu0 %v2849_v26, %s2678_s25  ;;  %v4170_v28 = vld [vmem:[#allocation3_spill] sm:$0xff] }
 0x154   : > { %977 = vrot.lane.b32.xlu2 %v2858_v27, %s2678_s25 }
 0x155   : > { %v763_v23 = vpop.permute.xlu1 %762  ;;  %v761_v25 = vpop.permute.xlu0 %760 }
 0x156   : > { %844 = vst.msk [vmem:[#allocation2 + $0x78] sm:$0xff] %vm828_vm3, %v763_v23  ;;  %v783_v24 = vpop.permute.xlu2 %782 }
 0x157   : > { %843 = vst.msk [vmem:[#allocation2 + $0x70] sm:$0xff] %vm828_vm3, %v761_v25  ;;  %v4194_v25 = vld [vmem:[#allocation30_spill] sm:$0xff] }
 0x158   : > { %854 = vst.msk [vmem:[#allocation2 + $0xc8] sm:$0xff] %vm828_vm3, %v783_v24  ;;  %v4195_v24 = vld [vmem:[#allocation28_spill] sm:$0xff] }
 0x15b   : > { %981 = vrot.lane.b32.xlu1 %v4169_v43, %s2678_s25  ;;  %979 = vrot.lane.b32.xlu0 %v4170_v28, %s2678_s25 }
 0x15c   : > { %983 = vrot.lane.b32.xlu2 %v4171_v55, %s2678_s25  ;;  %v4197_v55 = vld [vmem:[#allocation31_spill] sm:$0xff] }
 0x15d   : > { %v769_v26 = vpop.permute.xlu1 %768  ;;  %v767_v47 = vpop.permute.xlu0 %766 }
 0x15e   : > { %847 = vst.msk [vmem:[#allocation2 + $0x90] sm:$0xff] %vm828_vm3, %v769_v26  ;;  %v789_v27 = vpop.permute.xlu2 %788  ;;  %v4196_v26 = vld [vmem:[#allocation29_spill] sm:$0xff] }
 0x15f   : > { %846 = vst.msk [vmem:[#allocation2 + $0x88] sm:$0xff] %vm828_vm3, %v767_v47 }
 0x160   : > { %857 = vst.msk [vmem:[#allocation2 + $0xe0] sm:$0xff] %vm828_vm3, %v789_v27 }
 0x163   : > { %987 = vrot.lane.b32.xlu1 %v2460_v50, %s2678_s25  ;;  %985 = vrot.lane.b32.xlu0 %v2459_v54, %s2678_s25 }
 0x164   : > { %1118 = vrot.lane.b32.xlu2 %v4172_v59, %s2679_s26 }
 0x165   : > { %v775_v52 = vpop.permute.xlu1 %774  ;;  %v773_v57 = vpop.permute.xlu0 %772 }
 0x166   : > { %850 = vst.msk [vmem:[#allocation2 + $0xa8] sm:$0xff] %vm828_vm3, %v775_v52  ;;  %v795_v62 = vpop.permute.xlu2 %794  ;;  %v2493_v52 = vld [vmem:[%s2726_s21 + $0x30] sm:$0xff] }
 0x167   : > { %849 = vst.msk [vmem:[#allocation2 + $0xa0] sm:$0xff] %vm828_vm3, %v773_v57 }
 0x168   : > { %860 = vst.msk [vmem:[#allocation2 + $0xf8] sm:$0xff] %vm828_vm3, %v795_v62  ;;  %v2557_v62 = vld [vmem:[%s2726_s21 + $0x32] sm:$0xff] }
 0x16b   : > { %1122 = vrot.lane.b32.xlu1 %v4173_v38, %s2679_s26  ;;  %1120 = vrot.lane.b32.xlu0 %v4174_v56, %s2679_s26  ;;  %v2525_v38 = vld [vmem:[%s2726_s21 + $0x31] sm:$0xff] }
 0x16c   : > { %1124 = vrot.lane.b32.xlu2 %v4175_v41, %s2679_s26  ;;  %v2558_v41 = vld [vmem:[%s2726_s21 + $0x3a] sm:$0xff] }
 0x16d   : > { %v781_v1 = vpop.permute.xlu1 %780  ;;  %v779_v61 = vpop.permute.xlu0 %778 }
 0x16e   : > { %853 = vst.msk [vmem:[#allocation2 + $0xc0] sm:$0xff] %vm828_vm3, %v781_v1  ;;  %v930_v31 = vpop.permute.xlu2 %929 }
 0x16f   : > { %852 = vst.msk [vmem:[#allocation2 + $0xb8] sm:$0xff] %vm828_vm3, %v779_v61 }
 0x170   : > { %1024 = vst.msk [vmem:[#allocation2 + $0x10] sm:$0xff] %vm1021_vm4, %v930_v31  ;;  %v2526_v31 = vld [vmem:[%s2726_s21 + $0x39] sm:$0xff] }
 0x173   : > { %1128 = vrot.lane.b32.xlu1 %v4176_v53, %s2679_s26  ;;  %1126 = vrot.lane.b32.xlu0 %v4177_v42, %s2679_s26  ;;  %v2495_v53 = vld [vmem:[%s2726_s21 + $0x48] sm:$0xff] }
 0x174   : > { %1130 = vrot.lane.b32.xlu2 %v4178_v49, %s2679_s26  ;;  %v2527_v49 = vld [vmem:[%s2726_s21 + $0x49] sm:$0xff] }
 0x175   : > { %v787_v51 = vpop.permute.xlu1 %786  ;;  %v785_v46 = vpop.permute.xlu0 %784 }
 0x176   : > { %856 = vst.msk [vmem:[#allocation2 + $0xd8] sm:$0xff] %vm828_vm3, %v787_v51  ;;  %v936_v44 = vpop.permute.xlu2 %935 }
 0x177   : > { %855 = vst.msk [vmem:[#allocation2 + $0xd0] sm:$0xff] %vm828_vm3, %v785_v46 }
 0x178   : > { %1027 = vst.msk [vmem:[#allocation2 + $0x28] sm:$0xff] %vm1021_vm4, %v936_v44  ;;  %v2533_v44 = vld [vmem:[%s2726_s21 + $0x91] sm:$0xff] }
 0x17b   : > { %1134 = vrot.lane.b32.xlu1 %v4179_v35, %s2679_s26  ;;  %1132 = vrot.lane.b32.xlu0 %v4180_v40, %s2679_s26 }
 0x17c   : > { %1136 = vrot.lane.b32.xlu2 %v4181_v29, %s2679_s26  ;;  %v2559_v29 = vld [vmem:[%s2726_s21 + $0x4a] sm:$0xff] }
 0x17d   : > { %v793_v39 = vpop.permute.xlu1 %792  ;;  %v791_v36 = vpop.permute.xlu0 %790 }
 0x17e   : > { %859 = vst.msk [vmem:[#allocation2 + $0xf0] sm:$0xff] %vm828_vm3, %v793_v39  ;;  %v942_v30 = vpop.permute.xlu2 %941 }
 0x17f   : > { %858 = vst.msk [vmem:[#allocation2 + $0xe8] sm:$0xff] %vm828_vm3, %v791_v36  ;;  %v2565_v36 = vld [vmem:[%s2726_s21 + $0x92] sm:$0xff] }
 0x180   : > { %1030 = vst.msk [vmem:[#allocation2 + $0x40] sm:$0xff] %vm1021_vm4, %v942_v30  ;;  %v2496_v30 = vld [vmem:[%s2726_s21 + $0x50] sm:$0xff] }
 0x183   : > { %1140 = vrot.lane.b32.xlu1 %v4182_v45, %s2679_s26  ;;  %1138 = vrot.lane.b32.xlu0 %v4183_v48, %s2679_s26 }
 0x184   : > { %1142 = vrot.lane.b32.xlu2 %v4184_v2, %s2679_s26 }
 0x185   : > { %v928_v0 = vpop.permute.xlu1 %927  ;;  %v926_v3 = vpop.permute.xlu0 %925 }
 0x186   : > { %1023 = vst.msk [vmem:[#allocation2 + $0x8] sm:$0xff] %vm1021_vm4, %v928_v0  ;;  %v948_v7 = vpop.permute.xlu2 %947  ;;  %v2528_v0 = vld [vmem:[%s2726_s21 + $0x51] sm:$0xff] }
 0x187   : > { %1022 = vst.msk [vmem:[#allocation2] sm:$0xff] %vm1021_vm4, %v926_v3  ;;  %v2534_v3 = vld [vmem:[%s2726_s21 + $0x99] sm:$0xff] }
 0x188   : > { %1033 = vst.msk [vmem:[#allocation2 + $0x58] sm:$0xff] %vm1021_vm4, %v948_v7 }
 0x18b   : > { %1146 = vrot.lane.b32.xlu1 %v4185_v5, %s2679_s26  ;;  %1144 = vrot.lane.b32.xlu0 %v4186_v6, %s2679_s26  ;;  %v2560_v6 = vld [vmem:[%s2726_s21 + $0x52] sm:$0xff] }
 0x18c   : > { %1148 = vrot.lane.b32.xlu2 %v4187_v9, %s2679_s26 }
 0x18d   : > { %v934_v10 = vpop.permute.xlu1 %933  ;;  %v932_v8 = vpop.permute.xlu0 %931 }
 0x18e   : > { %1026 = vst.msk [vmem:[#allocation2 + $0x20] sm:$0xff] %vm1021_vm4, %v934_v10  ;;  %v954_v13 = vpop.permute.xlu2 %953  ;;  %v2566_v10 = vld [vmem:[%s2726_s21 + $0x9a] sm:$0xff] }
 0x18f   : > { %1025 = vst.msk [vmem:[#allocation2 + $0x18] sm:$0xff] %vm1021_vm4, %v932_v8 }
 0x190   : > { %1036 = vst.msk [vmem:[#allocation2 + $0x70] sm:$0xff] %vm1021_vm4, %v954_v13  ;;  %v2573_v13 = vld [vmem:[%s2726_s21 + $0xf2] sm:$0xff] }
 0x193   : > { %1152 = vrot.lane.b32.xlu1 %v4188_v11, %s2679_s26  ;;  %1150 = vrot.lane.b32.xlu0 %v4189_v12, %s2679_s26  ;;  %v2541_v11 = vld [vmem:[%s2726_s21 + $0xf1] sm:$0xff]  ;;  %v2497_v12 = vld [vmem:[%s2726_s21 + $0x60] sm:$0xff] }
 0x194   : > { %1154 = vrot.lane.b32.xlu2 %v4190_v15, %s2679_s26  ;;  %v2529_v15 = vld [vmem:[%s2726_s21 + $0x61] sm:$0xff] }
 0x195   : > { %v940_v16 = vpop.permute.xlu1 %939  ;;  %v938_v14 = vpop.permute.xlu0 %937 }
 0x196   : > { %1029 = vst.msk [vmem:[#allocation2 + $0x38] sm:$0xff] %vm1021_vm4, %v940_v16  ;;  %v960_v19 = vpop.permute.xlu2 %959 }
 0x197   : > { %1028 = vst.msk [vmem:[#allocation2 + $0x30] sm:$0xff] %vm1021_vm4, %v938_v14 }
 0x198   : > { %1039 = vst.msk [vmem:[#allocation2 + $0x88] sm:$0xff] %vm1021_vm4, %v960_v19  ;;  %v2503_v19 = vld [vmem:[%s2726_s21 + $0xa8] sm:$0xff] }
 0x19b   : > { %1158 = vrot.lane.b32.xlu1 %v4191_v17, %s2679_s26  ;;  %1156 = vrot.lane.b32.xlu0 %v4192_v18, %s2679_s26  ;;  %v2535_v17 = vld [vmem:[%s2726_s21 + $0xa9] sm:$0xff] }
 0x19c   : > { %1160 = vrot.lane.b32.xlu2 %v4193_v21, %s2679_s26  ;;  %v2561_v21 = vld [vmem:[%s2726_s21 + $0x62] sm:$0xff] }
 0x19d   : > { %v946_v22 = vpop.permute.xlu1 %945  ;;  %v944_v20 = vpop.permute.xlu0 %943 }
 0x19e   : > { %1032 = vst.msk [vmem:[#allocation2 + $0x50] sm:$0xff] %vm1021_vm4, %v946_v22  ;;  %v966_v23 = vpop.permute.xlu2 %965 }
 0x19f   : > { %1031 = vst.msk [vmem:[#allocation2 + $0x48] sm:$0xff] %vm1021_vm4, %v944_v20 }
 0x1a0   : > { %1042 = vst.msk [vmem:[#allocation2 + $0xa0] sm:$0xff] %vm1021_vm4, %v966_v23  ;;  %v2567_v23 = vld [vmem:[%s2726_s21 + $0xaa] sm:$0xff] }
 0x1a3   : > { %1164 = vrot.lane.b32.xlu1 %v4194_v25, %s2679_s26  ;;  %1162 = vrot.lane.b32.xlu0 %v4195_v24, %s2679_s26 }
 0x1a4   : > { %1166 = vrot.lane.b32.xlu2 %v4196_v26, %s2679_s26  ;;  %v2542_v26 = vld [vmem:[%s2726_s21 + $0xf9] sm:$0xff] }
 0x1a5   : > { %v952_v43 = vpop.permute.xlu1 %951  ;;  %v950_v28 = vpop.permute.xlu0 %949 }
 0x1a6   : > { %1035 = vst.msk [vmem:[#allocation2 + $0x68] sm:$0xff] %vm1021_vm4, %v952_v43  ;;  %v972_v47 = vpop.permute.xlu2 %971 }
 0x1a7   : > { %1034 = vst.msk [vmem:[#allocation2 + $0x60] sm:$0xff] %vm1021_vm4, %v950_v28  ;;  %v2574_v28 = vld [vmem:[%s2726_s21 + $0xfa] sm:$0xff] }
 0x1a8   : > { %1045 = vst.msk [vmem:[#allocation2 + $0xb8] sm:$0xff] %vm1021_vm4, %v972_v47  ;;  %v2498_v47 = vld [vmem:[%s2726_s21 + $0x68] sm:$0xff] }
 0x1ab   : > { %1170 = vrot.lane.b32.xlu1 %v3180_v37, %s2679_s26  ;;  %1168 = vrot.lane.b32.xlu0 %v4197_v55, %s2679_s26  ;;  %v4198_v37 = vld [vmem:[#allocation32_spill] sm:$0xff] }
 0x1ac   : > { %1172 = vrot.lane.b32.xlu2 %v3177_v33, %s2679_s26 }
 0x1ad   : > { %v958_v27 = vpop.permute.xlu1 %957  ;;  %v956_v50 = vpop.permute.xlu0 %955 }
 0x1ae   : > { %1038 = vst.msk [vmem:[#allocation2 + $0x80] sm:$0xff] %vm1021_vm4, %v958_v27  ;;  %v978_v54 = vpop.permute.xlu2 %977  ;;  %v1867_v27 = vld [vmem:[%s4105_s1 + $0x40] sm:$0xff] }
 0x1af   : > { %1037 = vst.msk [vmem:[#allocation2 + $0x78] sm:$0xff] %vm1021_vm4, %v956_v50  ;;  %1972 = vmatpush.msra.mxu0 %v1867_v27  ;;  %2623 = vmatpush.msra.mxu1 %v1867_v27 }
 0x1b0   : > { %1048 = vst.msk [vmem:[#allocation2 + $0xd0] sm:$0xff] %vm1021_vm4, %v978_v54  ;;  %v1866_v54 = vld [vmem:[%s4105_s1 + $0x38] sm:$0xff]  ;;  %2624 = vmatpush.msra.mxu2 %v1867_v27  ;;  %2625 = vmatpush.msra.mxu3 %v1867_v27 }
 0x1b1   : > { %1973 = vmatpush.msra.mxu0 %v1866_v54  ;;  %2626 = vmatpush.msra.mxu1 %v1866_v54 }
 0x1b2   : > { %2627 = vmatpush.msra.mxu2 %v1866_v54  ;;  %2628 = vmatpush.msra.mxu3 %v1866_v54 }
 0x1b3   : > { %1176 = vrot.lane.b32.xlu1 %v3205_v32, %s2679_s26  ;;  %1174 = vrot.lane.b32.xlu0 %v4198_v37, %s2679_s26  ;;  %v2494_v32 = vld [vmem:[%s2726_s21 + $0x38] sm:$0xff]  ;;  %v2504_v37 = vld [vmem:[%s2726_s21 + $0xb0] sm:$0xff] }
 0x1b4   : > { %1312 = vrot.lane.b32.xlu2 %v2493_v52, %s2680_s27  ;;  %v2530_v52 = vld [vmem:[%s2726_s21 + $0x69] sm:$0xff] }
 0x1b5   : > { %v964_v57 = vpop.permute.xlu1 %963  ;;  %v962_v59 = vpop.permute.xlu0 %961 }
 0x1b6   : > { %1041 = vst.msk [vmem:[#allocation2 + $0x98] sm:$0xff] %vm1021_vm4, %v964_v57  ;;  %v984_v33 = vpop.permute.xlu2 %983  ;;  %v1865_v57 = vld [vmem:[%s4105_s1 + $0x30] sm:$0xff] }
 0x1b7   : > { %1040 = vst.msk [vmem:[#allocation2 + $0x90] sm:$0xff] %vm1021_vm4, %v962_v59  ;;  %v2536_v59 = vld [vmem:[%s2726_s21 + $0xb1] sm:$0xff]  ;;  %1974 = vmatpush.msra.mxu0 %v1865_v57  ;;  %2629 = vmatpush.msra.mxu1 %v1865_v57 }
 0x1b8   : > { %1051 = vst.msk [vmem:[#allocation2 + $0xe8] sm:$0xff] %vm1021_vm4, %v984_v33  ;;  %v1864_v33 = vld [vmem:[%s4105_s1 + $0x28] sm:$0xff]  ;;  %2630 = vmatpush.msra.mxu2 %v1865_v57  ;;  %2631 = vmatpush.msra.mxu3 %v1865_v57 }
 0x1b9   : > { %1975 = vmatpush.msra.mxu0 %v1864_v33  ;;  %2632 = vmatpush.msra.mxu1 %v1864_v33  ;;  %v2564_v57 = vld [vmem:[%s2726_s21 + $0x82] sm:$0xff] }
 0x1ba   : > { %2633 = vmatpush.msra.mxu2 %v1864_v33  ;;  %2634 = vmatpush.msra.mxu3 %v1864_v33 }
 0x1bb   : > { %1698 = vrot.lane.b32.xlu1 %v2557_v62, %s2681_s28  ;;  %1505 = vrot.lane.b32.xlu0 %v2525_v38, %s2682_s29 }
 0x1bc   : > { %1314 = vrot.lane.b32.xlu2 %v2494_v32, %s2680_s27  ;;  %v1863_v32 = vld [vmem:[%s4105_s1 + $0x20] sm:$0xff] }
 0x1bd   : > { %v970_v56 = vpop.permute.xlu1 %969  ;;  %v968_v1 = vpop.permute.xlu0 %967  ;;  %1976 = vmatpush.msra.mxu0 %v1863_v32  ;;  %2635 = vmatpush.msra.mxu1 %v1863_v32 }
 0x1be   : > { %1044 = vst.msk [vmem:[#allocation2 + $0xb0] sm:$0xff] %vm1021_vm4, %v970_v56  ;;  %v1119_v61 = vpop.permute.xlu2 %1118  ;;  %2636 = vmatpush.msra.mxu2 %v1863_v32  ;;  %2637 = vmatpush.msra.mxu3 %v1863_v32  ;;  %v2545_v32 = vld [vmem:[%s2726_s21 + $0x121] sm:$0xff] }
 0x1bf   : > { %1043 = vst.msk [vmem:[#allocation2 + $0xa8] sm:$0xff] %vm1021_vm4, %v968_v1  ;;  %v1862_v1 = vld [vmem:[%s4105_s1 + $0x18] sm:$0xff] }
 0x1c0   : > { %1215 = vst.msk [vmem:[#allocation2] sm:$0xff] %vm1214_vm5, %v1119_v61  ;;  %v2511_v61 = vld [vmem:[%s2726_s21 + $0x108] sm:$0xff]  ;;  %1977 = vmatpush.msra.mxu0 %v1862_v1  ;;  %2638 = vmatpush.msra.mxu1 %v1862_v1 }
 0x1c1   : > { %2639 = vmatpush.msra.mxu2 %v1862_v1  ;;  %2640 = vmatpush.msra.mxu3 %v1862_v1  ;;  %v2551_v1 = vld [vmem:[%s2726_s21 + $0x169] sm:$0xff] }
 0x1c3   : > { %1700 = vrot.lane.b32.xlu1 %v2558_v41, %s2681_s28  ;;  %1507 = vrot.lane.b32.xlu0 %v2526_v31, %s2682_s29  ;;  %v1861_v41 = vld [vmem:[%s4105_s1 + $0x10] sm:$0xff] }
 0x1c4   : > { %1316 = vrot.lane.b32.xlu2 %v2495_v53, %s2680_s27  ;;  %v2562_v31 = vld [vmem:[%s2726_s21 + $0x6a] sm:$0xff]  ;;  %1978 = vmatpush.msra.mxu0 %v1861_v41 }
 0x1c5   : > { %v976_v42 = vpop.permute.xlu1 %975  ;;  %v974_v51 = vpop.permute.xlu0 %973  ;;  %v1860_v53 = vld [vmem:[%s4105_s1 + $0x8] sm:$0xff]  ;;  %2641 = vmatpush.msra.mxu1 %v1861_v41  ;;  %2642 = vmatpush.msra.mxu2 %v1861_v41 }
 0x1c6   : > { %1047 = vst.msk [vmem:[#allocation2 + $0xc8] sm:$0xff] %vm1021_vm4, %v976_v42  ;;  %v1125_v46 = vpop.permute.xlu2 %1124  ;;  %1979 = vmatpush.msra.mxu0 %v1860_v53  ;;  %2643 = vmatpush.msra.mxu3 %v1861_v41 }
 0x1c7   : > { %1046 = vst.msk [vmem:[#allocation2 + $0xc0] sm:$0xff] %vm1021_vm4, %v974_v51  ;;  %2644 = vmatpush.msra.mxu1 %v1860_v53  ;;  %2645 = vmatpush.msra.mxu2 %v1860_v53 }
 0x1c8   : > { %1218 = vst.msk [vmem:[#allocation2 + $0x18] sm:$0xff] %vm1214_vm5, %v1125_v46  ;;  %2646 = vmatpush.msra.mxu3 %v1860_v53 }
 0x1cb   : > { %1509 = vrot.lane.b32.xlu1 %v2527_v49, %s2682_s29  ;;  %1328 = vrot.lane.b32.xlu0 %v3009_v4, %s2680_s27  ;;  %v2543_v49 = vld [vmem:[%s2726_s21 + $0x109] sm:$0xff] }
 0x1cc   : > { %1521 = vrot.lane.b32.xlu2 %v2533_v44, %s2682_s29  ;;  %v2568_v44 = vld [vmem:[%s2726_s21 + $0xb2] sm:$0xff] }
 0x1cd   : > { %v982_v35 = vpop.permute.xlu1 %981  ;;  %v980_v40 = vpop.permute.xlu0 %979 }
 0x1ce   : > { %1050 = vst.msk [vmem:[#allocation2 + $0xe0] sm:$0xff] %vm1021_vm4, %v982_v35  ;;  %v1131_v39 = vpop.permute.xlu2 %1130  ;;  %v2549_v35 = vld [vmem:[%s2726_s21 + $0x151] sm:$0xff] }
 0x1cf   : > { %1049 = vst.msk [vmem:[#allocation2 + $0xd8] sm:$0xff] %vm1021_vm4, %v980_v40 }
 0x1d0   : > { %1221 = vst.msk [vmem:[#allocation2 + $0x30] sm:$0xff] %vm1214_vm5, %v1131_v39 }
 0x1d3   : > { %1714 = vrot.lane.b32.xlu1 %v2565_v36, %s2681_s28  ;;  %1702 = vrot.lane.b32.xlu0 %v2559_v29, %s2681_s28  ;;  %v2581_v29 = vld [vmem:[%s2726_s21 + $0x152] sm:$0xff] }
 0x1d4   : > { %1318 = vrot.lane.b32.xlu2 %v2496_v30, %s2680_s27  ;;  %v2575_v30 = vld [vmem:[%s2726_s21 + $0x10a] sm:$0xff] }
 0x1d5   : > { %v988_v4 = vpop.permute.xlu1 %987  ;;  %v986_v45 = vpop.permute.xlu0 %985 }
 0x1d6   : > { %1053 = vst.msk [vmem:[#allocation2 + $0xf8] sm:$0xff] %vm1021_vm4, %v988_v4  ;;  %v1137_v48 = vpop.permute.xlu2 %1136  ;;  %v2499_v4 = vld [vmem:[%s2726_s21 + $0x78] sm:$0xff] }
 0x1d7   : > { %1052 = vst.msk [vmem:[#allocation2 + $0xf0] sm:$0xff] %vm1021_vm4, %v986_v45 }
 0x1d8   : > { %1224 = vst.msk [vmem:[#allocation2 + $0x48] sm:$0xff] %vm1214_vm5, %v1137_v48 }
 0x1db   : > { %1511 = vrot.lane.b32.xlu1 %v2528_v0, %s2682_s29  ;;  %1330 = vrot.lane.b32.xlu0 %v3005_v63, %s2680_s27 }
 0x1dc   : > { %1523 = vrot.lane.b32.xlu2 %v2534_v3, %s2682_s29  ;;  %v2531_v3 = vld [vmem:[%s2726_s21 + $0x79] sm:$0xff] }
 0x1dd   : > { %v1123_v2 = vpop.permute.xlu1 %1122  ;;  %v1121_v7 = vpop.permute.xlu0 %1120 }
 0x1de   : > { %1217 = vst.msk [vmem:[#allocation2 + $0x10] sm:$0xff] %vm1214_vm5, %v1123_v2  ;;  %v1143_v5 = vpop.permute.xlu2 %1142  ;;  %v2505_v2 = vld [vmem:[%s2726_s21 + $0xc0] sm:$0xff] }
 0x1df   : > { %1216 = vst.msk [vmem:[#allocation2 + $0x8] sm:$0xff] %vm1214_vm5, %v1121_v7  ;;  %v2537_v7 = vld [vmem:[%s2726_s21 + $0xc1] sm:$0xff] }
 0x1e0   : > { %1227 = vst.msk [vmem:[#allocation2 + $0x60] sm:$0xff] %vm1214_vm5, %v1143_v5 }
 0x1e3   : > { %1704 = vrot.lane.b32.xlu1 %v2560_v6, %s2681_s28  ;;  %1344 = vrot.lane.b32.xlu0 %v3052_v60, %s2680_s27 }
 0x1e4   : > { %1716 = vrot.lane.b32.xlu2 %v2566_v10, %s2681_s28 }
 0x1e5   : > { %v1129_v63 = vpop.permute.xlu1 %1128  ;;  %v1127_v8 = vpop.permute.xlu0 %1126 }
 0x1e6   : > { %1220 = vst.msk [vmem:[#allocation2 + $0x28] sm:$0xff] %vm1214_vm5, %v1129_v63  ;;  %v1149_v9 = vpop.permute.xlu2 %1148  ;;  %v2518_v63 = vld [vmem:[%s2726_s21 + $0x158] sm:$0xff] }
 0x1e7   : > { %1219 = vst.msk [vmem:[#allocation2 + $0x20] sm:$0xff] %vm1214_vm5, %v1127_v8  ;;  %v2512_v8 = vld [vmem:[%s2726_s21 + $0x110] sm:$0xff] }
 0x1e8   : > { %1230 = vst.msk [vmem:[#allocation2 + $0x78] sm:$0xff] %vm1214_vm5, %v1149_v9  ;;  %v2563_v9 = vld [vmem:[%s2726_s21 + $0x7a] sm:$0xff] }
 0x1eb   : > { %1730 = vrot.lane.b32.xlu1 %v2573_v13, %s2681_s28  ;;  %1537 = vrot.lane.b32.xlu0 %v2541_v11, %s2682_s29 }
 0x1ec   : > { %1320 = vrot.lane.b32.xlu2 %v2497_v12, %s2680_s27 }
 0x1ed   : > { %v1135_v60 = vpop.permute.xlu1 %1134  ;;  %v1133_v16 = vpop.permute.xlu0 %1132 }
 0x1ee   : > { %1223 = vst.msk [vmem:[#allocation2 + $0x40] sm:$0xff] %vm1214_vm5, %v1135_v60  ;;  %v1155_v14 = vpop.permute.xlu2 %1154 }
 0x1ef   : > { %1222 = vst.msk [vmem:[#allocation2 + $0x38] sm:$0xff] %vm1214_vm5, %v1133_v16  ;;  %v2544_v16 = vld [vmem:[%s2726_s21 + $0x111] sm:$0xff] }
 0x1f0   : > { %1233 = vst.msk [vmem:[#allocation2 + $0x90] sm:$0xff] %vm1214_vm5, %v1155_v14  ;;  %v2569_v14 = vld [vmem:[%s2726_s21 + $0xc2] sm:$0xff] }
 0x1f3   : > { %1513 = vrot.lane.b32.xlu1 %v2529_v15, %s2682_s29  ;;  %1332 = vrot.lane.b32.xlu0 %v2503_v19, %s2680_s27  ;;  %v2550_v15 = vld [vmem:[%s2726_s21 + $0x159] sm:$0xff] }
 0x1f4   : > { %1525 = vrot.lane.b32.xlu2 %v2535_v17, %s2682_s29 }
 0x1f5   : > { %v1141_v18 = vpop.permute.xlu1 %1140  ;;  %v1139_v22 = vpop.permute.xlu0 %1138 }
 0x1f6   : > { %1226 = vst.msk [vmem:[#allocation2 + $0x58] sm:$0xff] %vm1214_vm5, %v1141_v18  ;;  %v1161_v20 = vpop.permute.xlu2 %1160 }
 0x1f7   : > { %1225 = vst.msk [vmem:[#allocation2 + $0x50] sm:$0xff] %vm1214_vm5, %v1139_v22 }
 0x1f8   : > { %1236 = vst.msk [vmem:[#allocation2 + $0xa8] sm:$0xff] %vm1214_vm5, %v1161_v20  ;;  %v2582_v20 = vld [vmem:[%s2726_s21 + $0x15a] sm:$0xff] }
 0x1fb   : > { %1706 = vrot.lane.b32.xlu1 %v2561_v21, %s2681_s28  ;;  %1346 = vrot.lane.b32.xlu0 %v3108_v58, %s2680_s27  ;;  %v2576_v21 = vld [vmem:[%s2726_s21 + $0x112] sm:$0xff] }
 0x1fc   : > { %1718 = vrot.lane.b32.xlu2 %v2567_v23, %s2681_s28  ;;  %v2500_v23 = vld [vmem:[%s2726_s21 + $0x80] sm:$0xff] }
 0x1fd   : > { %v1147_v25 = vpop.permute.xlu1 %1146  ;;  %v1145_v24 = vpop.permute.xlu0 %1144 }
 0x1fe   : > { %1229 = vst.msk [vmem:[#allocation2 + $0x70] sm:$0xff] %vm1214_vm5, %v1147_v25  ;;  %v1167_v43 = vpop.permute.xlu2 %1166 }
 0x1ff   : > { %1228 = vst.msk [vmem:[#allocation2 + $0x68] sm:$0xff] %vm1214_vm5, %v1145_v24 }
 0x200   : > { %1239 = vst.msk [vmem:[#allocation2 + $0xc0] sm:$0xff] %vm1214_vm5, %v1167_v43 }
 0x203   : > { %1732 = vrot.lane.b32.xlu1 %v2574_v28, %s2681_s28  ;;  %1539 = vrot.lane.b32.xlu0 %v2542_v26, %s2682_s29  ;;  %v2532_v28 = vld [vmem:[%s2726_s21 + $0x81] sm:$0xff] }
 0x204   : > { %1322 = vrot.lane.b32.xlu2 %v2498_v47, %s2680_s27  ;;  %v2506_v26 = vld [vmem:[%s2726_s21 + $0xc8] sm:$0xff] }
 0x205   : > { %v1153_v58 = vpop.permute.xlu1 %1152  ;;  %v1151_v55 = vpop.permute.xlu0 %1150  ;;  %v2538_v47 = vld [vmem:[%s2726_s21 + $0xc9] sm:$0xff] }
 0x206   : > { %1232 = vst.msk [vmem:[#allocation2 + $0x88] sm:$0xff] %vm1214_vm5, %v1153_v58  ;;  %v1173_v50 = vpop.permute.xlu2 %1172 }
 0x207   : > { %1231 = vst.msk [vmem:[#allocation2 + $0x80] sm:$0xff] %vm1214_vm5, %v1151_v55 }
 0x208   : > { %1242 = vst.msk [vmem:[#allocation2 + $0xd8] sm:$0xff] %vm1214_vm5, %v1173_v50 }
 0x20b   : > { %1515 = vrot.lane.b32.xlu1 %v2530_v52, %s2682_s29  ;;  %1334 = vrot.lane.b32.xlu0 %v2504_v37, %s2680_s27  ;;  %v2513_v52 = vld [vmem:[%s2726_s21 + $0x120] sm:$0xff]  ;;  %v2519_v37 = vld [vmem:[%s2726_s21 + $0x168] sm:$0xff] }
 0x20c   : > { %1527 = vrot.lane.b32.xlu2 %v2536_v59, %s2682_s29 }
 0x20d   : > { %v1159_v62 = vpop.permute.xlu1 %1158  ;;  %v1157_v38 = vpop.permute.xlu0 %1156 }
 0x20e   : > { %1235 = vst.msk [vmem:[#allocation2 + $0xa0] sm:$0xff] %vm1214_vm5, %v1159_v62  ;;  %v1313_v56 = vpop.permute.xlu2 %1312 }
 0x20f   : > { %1234 = vst.msk [vmem:[#allocation2 + $0x98] sm:$0xff] %vm1214_vm5, %v1157_v38  ;;  %v2570_v38 = vld [vmem:[%s2726_s21 + $0xca] sm:$0xff] }
 0x210   : > { %1409 = vst.msk [vmem:[#allocation2] sm:$0xff] %vm1408_vm6, %v1313_v56 }
 0x213   : > { %1360 = vrot.lane.b32.xlu1 %v3170_v34, %s2680_s27  ;;  %1348 = vrot.lane.b32.xlu0 %v2511_v61, %s2680_s27  ;;  %v1859_v34 = vld [vmem:[%s4105_s1] sm:$0xff] }
 0x214   : > { %1708 = vrot.lane.b32.xlu2 %v2562_v31, %s2681_s28  ;;  %1980 = vmatpush.msra.mxu0 %v1859_v34 }
 0x215   : > { %v1165_v42 = vpop.permute.xlu1 %1164  ;;  %v1163_v51 = vpop.permute.xlu0 %1162  ;;  %2647 = vmatpush.msra.mxu1 %v1859_v34  ;;  %2648 = vmatpush.msra.mxu2 %v1859_v34 }
 0x216   : > { %1238 = vst.msk [vmem:[#allocation2 + $0xb8] sm:$0xff] %vm1214_vm5, %v1165_v42  ;;  %v1315_v46 = vpop.permute.xlu2 %1314  ;;  %2649 = vmatpush.msra.mxu3 %v1859_v34  ;;  %v2577_v42 = vld [vmem:[%s2726_s21 + $0x122] sm:$0xff]  ;;  %v2507_v34 = vld [vmem:[%s2726_s21 + $0xd8] sm:$0xff] }
 0x217   : > { %1237 = vst.msk [vmem:[#allocation2 + $0xb0] sm:$0xff] %vm1214_vm5, %v1163_v51  ;;  %v2583_v51 = vld [vmem:[%s2726_s21 + $0x16a] sm:$0xff] }
 0x218   : > { %1410 = vst.msk [vmem:[#allocation2 + $0x8] sm:$0xff] %vm1408_vm6, %v1315_v46 }
 0x21b   : > { %1541 = vrot.lane.b32.xlu1 %v2543_v49, %s2682_s29  ;;  %1720 = vrot.lane.b32.xlu0 %v2568_v44, %s2681_s28 }
 0x21c   : > { %1553 = vrot.lane.b32.xlu2 %v2549_v35, %s2682_s29 }
 0x21d   : > { %v1171_v40 = vpop.permute.xlu1 %1170  ;;  %v1169_v39 = vpop.permute.xlu0 %1168 }
 0x21e   : > { %1241 = vst.msk [vmem:[#allocation2 + $0xd0] sm:$0xff] %vm1214_vm5, %v1171_v40  ;;  %v1317_v36 = vpop.permute.xlu2 %1316  ;;  %v2539_v40 = vld [vmem:[%s2726_s21 + $0xd9] sm:$0xff] }
 0x21f   : > { %1240 = vst.msk [vmem:[#allocation2 + $0xc8] sm:$0xff] %vm1214_vm5, %v1169_v39  ;;  %v2514_v39 = vld [vmem:[%s2726_s21 + $0x128] sm:$0xff] }
 0x220   : > { %1411 = vst.msk [vmem:[#allocation2 + $0x10] sm:$0xff] %vm1408_vm6, %v1317_v36  ;;  %v2520_v36 = vld [vmem:[%s2726_s21 + $0x170] sm:$0xff] }
 0x223   : > { %1746 = vrot.lane.b32.xlu1 %v2581_v29, %s2681_s28  ;;  %1734 = vrot.lane.b32.xlu0 %v2575_v30, %s2681_s28 }
 0x224   : > { %1324 = vrot.lane.b32.xlu2 %v2499_v4, %s2680_s27 }
 0x225   : > { %v1177_v45 = vpop.permute.xlu1 %1176  ;;  %v1175_v48 = vpop.permute.xlu0 %1174 }
 0x226   : > { %1244 = vst.msk [vmem:[#allocation2 + $0xe8] sm:$0xff] %vm1214_vm5, %v1177_v45  ;;  %v1522_v0 = vpop.permute.xlu2 %1521  ;;  %v2571_v45 = vld [vmem:[%s2726_s21 + $0xda] sm:$0xff] }
 0x227   : > { %1243 = vst.msk [vmem:[#allocation2 + $0xe0] sm:$0xff] %vm1214_vm5, %v1175_v48  ;;  %v2546_v48 = vld [vmem:[%s2726_s21 + $0x129] sm:$0xff] }
 0x22b   : > { %1517 = vrot.lane.b32.xlu1 %v2531_v3, %s2682_s29  ;;  %1336 = vrot.lane.b32.xlu0 %v2505_v2, %s2680_s27  ;;  %v2552_v3 = vld [vmem:[%s2726_s21 + $0x171] sm:$0xff] }
 0x22c   : > { %1529 = vrot.lane.b32.xlu2 %v2537_v7, %s2682_s29 }
 0x22d   : > { %v1699_v5 = vpop.permute.xlu1 %1698  ;;  %v1506_v6 = vpop.permute.xlu0 %1505 }
 0x22e   : > { %1602 = vst.msk [vmem:[#allocation2] sm:$0xff] %vm1601_vm7, %v1506_v6  ;;  %v1319_v10 = vpop.permute.xlu2 %1318 }
 0x22f   : > { %1795 = vst.msk [vmem:[#allocation2] sm:$0xff] %vm1794_vm8, %v1699_v5 }
 0x230   : > { %1412 = vst.msk [vmem:[#allocation2 + $0x18] sm:$0xff] %vm1408_vm6, %v1319_v10  ;;  %v2578_v10 = vld [vmem:[%s2726_s21 + $0x12a] sm:$0xff] }
 0x233   : > { %1362 = vrot.lane.b32.xlu1 %v2518_v63, %s2680_s27  ;;  %1350 = vrot.lane.b32.xlu0 %v2512_v8, %s2680_s27  ;;  %v2584_v63 = vld [vmem:[%s2726_s21 + $0x172] sm:$0xff]  ;;  %v2508_v8 = vld [vmem:[%s2726_s21 + $0xe0] sm:$0xff] }
 0x234   : > { %1710 = vrot.lane.b32.xlu2 %v2563_v9, %s2681_s28 }
 0x235   : > { %v1701_v13 = vpop.permute.xlu1 %1700  ;;  %v1508_v11 = vpop.permute.xlu0 %1507 }
 0x236   : > { %1603 = vst.msk [vmem:[#allocation2 + $0x8] sm:$0xff] %vm1601_vm7, %v1508_v11  ;;  %v1827_v12 = vld [vmem:[#allocation2] sm:$0xff]  ;;  %v1524_v60 = vpop.permute.xlu2 %1523 }
 0x237   : > { %1796 = vst.msk [vmem:[#allocation2 + $0x8] sm:$0xff] %vm1794_vm8, %v1701_v13  ;;  %2589 = vmatmul.msk.f32.vlgmr.msra.gmra.mxu0 %vm1868_vm9, %v1827_v12 }
 0x23b   : > { %1543 = vrot.lane.b32.xlu1 %v2544_v16, %s2682_s29  ;;  %1722 = vrot.lane.b32.xlu0 %v2569_v14, %s2681_s28  ;;  %v2515_v16 = vld [vmem:[%s2726_s21 + $0x138] sm:$0xff]  ;;  %v2521_v14 = vld [vmem:[%s2726_s21 + $0x180] sm:$0xff] }
 0x23c   : > { %1555 = vrot.lane.b32.xlu2 %v2550_v15, %s2682_s29 }
 0x23d   : > { %v1510_v19 = vpop.permute.xlu1 %1509  ;;  %v1329_v17 = vpop.permute.xlu0 %1328 }
 0x23e   : > { %1604 = vst.msk [vmem:[#allocation2 + $0x10] sm:$0xff] %vm1601_vm7, %v1510_v19  ;;  %v1828_v18 = vld [vmem:[#allocation2 + $0x8] sm:$0xff]  ;;  %v1717_v22 = vpop.permute.xlu2 %1716 }
 0x23f   : > { %1417 = vst.msk [vmem:[#allocation2 + $0x40] sm:$0xff] %vm1408_vm6, %v1329_v17  ;;  %2590 = vmatmul.msk.f32.gmra.mxu0 %vm1868_vm9, %v1828_v18 }
 0x240   : > { %1610 = vst.msk [vmem:[#allocation2 + $0x40] sm:$0xff] %vm1601_vm7, %v1522_v0 }
 0x243   : > { %1748 = vrot.lane.b32.xlu1 %v2582_v20, %s2681_s28  ;;  %1736 = vrot.lane.b32.xlu0 %v2576_v21, %s2681_s28  ;;  %v2547_v20 = vld [vmem:[%s2726_s21 + $0x139] sm:$0xff]  ;;  %v2553_v21 = vld [vmem:[%s2726_s21 + $0x181] sm:$0xff] }
 0x244   : > { %1326 = vrot.lane.b32.xlu2 %v2500_v23, %s2680_s27 }
 0x245   : > { %v1715_v25 = vpop.permute.xlu1 %1714  ;;  %v1703_v24 = vpop.permute.xlu0 %1702 }
 0x246   : > { %1803 = vst.msk [vmem:[#allocation2 + $0x40] sm:$0xff] %vm1794_vm8, %v1715_v25  ;;  %v1321_v43 = vpop.permute.xlu2 %1320 }
 0x247   : > { %1797 = vst.msk [vmem:[#allocation2 + $0x10] sm:$0xff] %vm1794_vm8, %v1703_v24 }
 0x248   : > { %1413 = vst.msk [vmem:[#allocation2 + $0x20] sm:$0xff] %vm1408_vm6, %v1321_v43  ;;  %v2579_v43 = vld [vmem:[%s2726_s21 + $0x13a] sm:$0xff] }
 0x24b   : > { %1519 = vrot.lane.b32.xlu1 %v2532_v28, %s2682_s29  ;;  %1338 = vrot.lane.b32.xlu0 %v2506_v26, %s2680_s27  ;;  %v2585_v28 = vld [vmem:[%s2726_s21 + $0x182] sm:$0xff] }
 0x24c   : > { %1531 = vrot.lane.b32.xlu2 %v2538_v47, %s2682_s29  ;;  %v2516_v26 = vld [vmem:[%s2726_s21 + $0x140] sm:$0xff] }
 0x24d   : > { %v1512_v58 = vpop.permute.xlu1 %1511  ;;  %v1331_v55 = vpop.permute.xlu0 %1330  ;;  %v1835_v27 = vld [vmem:[#allocation2 + $0x40] sm:$0xff] }
 0x24e   : > { %1605 = vst.msk [vmem:[#allocation2 + $0x18] sm:$0xff] %vm1601_vm7, %v1512_v58  ;;  %v1829_v50 = vld [vmem:[#allocation2 + $0x10] sm:$0xff]  ;;  %2597 = vmatmul.msk.f32.vlgmr.msra.gmra.mxu1 %vm1868_vm9, %v1835_v27  ;;  %v1526_v54 = vpop.permute.xlu2 %1525 }
 0x24f   : > { %1418 = vst.msk [vmem:[#allocation2 + $0x48] sm:$0xff] %vm1408_vm6, %v1331_v55  ;;  %2591 = vmatmul.msk.f32.gmra.mxu0 %vm1868_vm9, %v1829_v50  ;;  %v2522_v50 = vld [vmem:[%s2726_s21 + $0x188] sm:$0xff] }
 0x250   : > { %1611 = vst.msk [vmem:[#allocation2 + $0x48] sm:$0xff] %vm1601_vm7, %v1524_v60  ;;  %v2540_v60 = vld [vmem:[%s2726_s21 + $0xe1] sm:$0xff] }
 0x251   : > { %1804 = vst.msk [vmem:[#allocation2 + $0x48] sm:$0xff] %vm1794_vm8, %v1717_v22  ;;  %v2572_v22 = vld [vmem:[%s2726_s21 + $0xe2] sm:$0xff] }
 0x253   : > { %1352 = vrot.lane.b32.xlu0 %v2513_v52, %s2680_s27  ;;  %1364 = vrot.lane.b32.xlu1 %v2519_v37, %s2680_s27  ;;  %v2554_v52 = vld [vmem:[%s2726_s21 + $0x189] sm:$0xff] }
 0x254   : > { %1712 = vrot.lane.b32.xlu2 %v2564_v57, %s2681_s28 }
 0x255   : > { %v1705_v59 = vpop.permute.xlu1 %1704  ;;  %v1345_v33 = vpop.permute.xlu0 %1344 }
 0x256   : > { %1798 = vst.msk [vmem:[#allocation2 + $0x18] sm:$0xff] %vm1794_vm8, %v1705_v59  ;;  %v1719_v62 = vpop.permute.xlu2 %1718 }
 0x257   : > { %1425 = vst.msk [vmem:[#allocation2 + $0x80] sm:$0xff] %vm1408_vm6, %v1345_v33 }
 0x258   : > { %v1836_v56 = vld [vmem:[#allocation2 + $0x48] sm:$0xff] }
 0x259   : > { %2598 = vmatmul.msk.f32.gmra.mxu1 %vm1868_vm9, %v1836_v56 }
 0x25b   : > { %1724 = vrot.lane.b32.xlu0 %v2570_v38, %s2681_s28  ;;  %1545 = vrot.lane.b32.xlu1 %v2545_v32, %s2682_s29  ;;  %v2580_v38 = vld [vmem:[%s2726_s21 + $0x142] sm:$0xff]  ;;  %v2586_v32 = vld [vmem:[%s2726_s21 + $0x18a] sm:$0xff] }
 0x25c   : > { %1557 = vrot.lane.b32.xlu2 %v2551_v1, %s2682_s29 }
 0x25d   : > { %v1731_v61 = vpop.permute.xlu1 %1730  ;;  %v1538_v41 = vpop.permute.xlu0 %1537  ;;  %v1830_v31 = vld [vmem:[#allocation2 + $0x18] sm:$0xff] }
 0x25e   : > { %1618 = vst.msk [vmem:[#allocation2 + $0x80] sm:$0xff] %vm1601_vm7, %v1538_v41  ;;  %2592 = vmatmul.msk.f32.gmra.mxu0 %vm1868_vm9, %v1830_v31  ;;  %v1323_v53 = vpop.permute.xlu2 %1322  ;;  %v2523_v31 = vld [vmem:[%s2726_s21 + $0x198] sm:$0xff] }
 0x25f   : > { %1811 = vst.msk [vmem:[#allocation2 + $0x80] sm:$0xff] %vm1794_vm8, %v1731_v61 }
 0x260   : > { %1414 = vst.msk [vmem:[#allocation2 + $0x28] sm:$0xff] %vm1408_vm6, %v1323_v53  ;;  %v2555_v53 = vld [vmem:[%s2726_s21 + $0x199] sm:$0xff] }
 0x263   : > { %1738 = vrot.lane.b32.xlu0 %v2577_v42, %s2681_s28  ;;  %1750 = vrot.lane.b32.xlu1 %v2583_v51, %s2681_s28  ;;  %v2587_v42 = vld [vmem:[%s2726_s21 + $0x19a] sm:$0xff] }
 0x264   : > { %1340 = vrot.lane.b32.xlu2 %v2507_v34, %s2680_s27 }
 0x265   : > { %v1514_v46 = vpop.permute.xlu1 %1513  ;;  %v1333_v49 = vpop.permute.xlu0 %1332 }
 0x266   : > { %1606 = vst.msk [vmem:[#allocation2 + $0x20] sm:$0xff] %vm1601_vm7, %v1514_v46  ;;  %v1843_v44 = vld [vmem:[#allocation2 + $0x80] sm:$0xff]  ;;  %v1528_v35 = vpop.permute.xlu2 %1527 }
 0x267   : > { %1419 = vst.msk [vmem:[#allocation2 + $0x50] sm:$0xff] %vm1408_vm6, %v1333_v49  ;;  %2605 = vmatmul.msk.f32.vlgmr.msra.gmra.mxu2 %vm1868_vm9, %v1843_v44  ;;  %v2524_v49 = vld [vmem:[%s2726_s21 + $0x1a0] sm:$0xff] }
 0x268   : > { %1612 = vst.msk [vmem:[#allocation2 + $0x50] sm:$0xff] %vm1601_vm7, %v1526_v54  ;;  %v2548_v54 = vld [vmem:[%s2726_s21 + $0x141] sm:$0xff] }
 0x269   : > { %1805 = vst.msk [vmem:[#allocation2 + $0x50] sm:$0xff] %vm1794_vm8, %v1719_v62  ;;  %v2556_v44 = vld [vmem:[%s2726_s21 + $0x1a1] sm:$0xff] }
 0x26b   : > { %1533 = vrot.lane.b32.xlu0 %v2539_v40, %s2682_s29  ;;  %1354 = vrot.lane.b32.xlu1 %v2514_v39, %s2680_s27 }
 0x26c   : > { %1366 = vrot.lane.b32.xlu2 %v2520_v36, %s2680_s27 }
 0x26d   : > { %v1707_v29 = vpop.permute.xlu1 %1706  ;;  %v1347_v30 = vpop.permute.xlu0 %1346 }
 0x26e   : > { %1799 = vst.msk [vmem:[#allocation2 + $0x20] sm:$0xff] %vm1794_vm8, %v1707_v29  ;;  %v1709_v4 = vpop.permute.xlu2 %1708 }
 0x26f   : > { %1426 = vst.msk [vmem:[#allocation2 + $0x88] sm:$0xff] %vm1408_vm6, %v1347_v30  ;;  %v2588_v30 = vld [vmem:[%s2726_s21 + $0x1a2] sm:$0xff] }
 0x270   : > { %v1837_v0 = vld [vmem:[#allocation2 + $0x50] sm:$0xff] }
 0x271   : > { %2599 = vmatmul.msk.f32.gmra.mxu1 %vm1868_vm9, %v1837_v0 }
 0x273   : > { %1726 = vrot.lane.b32.xlu0 %v2571_v45, %s2681_s28  ;;  %1547 = vrot.lane.b32.xlu1 %v2546_v48, %s2682_s29 }
 0x274   : > { %1559 = vrot.lane.b32.xlu2 %v2552_v3, %s2682_s29 }
 0x275   : > { %v1733_v2 = vpop.permute.xlu1 %1732  ;;  %v1540_v7 = vpop.permute.xlu0 %1539  ;;  %v1831_v5 = vld [vmem:[#allocation2 + $0x20] sm:$0xff] }
 0x276   : > { %1619 = vst.msk [vmem:[#allocation2 + $0x88] sm:$0xff] %vm1601_vm7, %v1540_v7  ;;  %2593 = vmatmul.msk.f32.gmra.mxu0 %vm1868_vm9, %v1831_v5  ;;  %v1554_v6 = vpop.permute.xlu2 %1553 }
 0x277   : > { %1812 = vst.msk [vmem:[#allocation2 + $0x88] sm:$0xff] %vm1794_vm8, %v1733_v2 }
 0x27b   : > { %1740 = vrot.lane.b32.xlu0 %v2578_v10, %s2681_s28  ;;  %1752 = vrot.lane.b32.xlu1 %v2584_v63, %s2681_s28 }
 0x27c   : > { %1342 = vrot.lane.b32.xlu2 %v2508_v8, %s2680_s27 }
 0x27d   : > { %v1516_v9 = vpop.permute.xlu1 %1515  ;;  %v1335_v13 = vpop.permute.xlu0 %1334 }
 0x27e   : > { %1607 = vst.msk [vmem:[#allocation2 + $0x28] sm:$0xff] %vm1601_vm7, %v1516_v9  ;;  %v1844_v11 = vld [vmem:[#allocation2 + $0x88] sm:$0xff]  ;;  %v1325_v12 = vpop.permute.xlu2 %1324 }
 0x27f   : > { %1420 = vst.msk [vmem:[#allocation2 + $0x58] sm:$0xff] %vm1408_vm6, %v1335_v13  ;;  %2606 = vmatmul.msk.f32.gmra.mxu2 %vm1868_vm9, %v1844_v11 }
 0x280   : > { %1613 = vst.msk [vmem:[#allocation2 + $0x58] sm:$0xff] %vm1601_vm7, %v1528_v35 }
 0x281   : > { %1800 = vst.msk [vmem:[#allocation2 + $0x28] sm:$0xff] %vm1794_vm8, %v1709_v4 }
 0x282   : > { %1415 = vst.msk [vmem:[#allocation2 + $0x30] sm:$0xff] %vm1408_vm6, %v1325_v12 }
 0x283   : > { %1535 = vrot.lane.b32.xlu0 %v2540_v60, %s2682_s29  ;;  %1356 = vrot.lane.b32.xlu1 %v2515_v16, %s2680_s27 }
 0x284   : > { %1368 = vrot.lane.b32.xlu2 %v2521_v14, %s2680_s27 }
 0x285   : > { %v1361_v15 = vpop.permute.xlu1 %1360  ;;  %v1349_v19 = vpop.permute.xlu0 %1348 }
 0x286   : > { %1433 = vst.msk [vmem:[#allocation2 + $0xc0] sm:$0xff] %vm1408_vm6, %v1361_v15  ;;  %v1530_v17 = vpop.permute.xlu2 %1529 }
 0x287   : > { %1427 = vst.msk [vmem:[#allocation2 + $0x90] sm:$0xff] %vm1408_vm6, %v1349_v19 }
 0x288   : > { %1626 = vst.msk [vmem:[#allocation2 + $0xc0] sm:$0xff] %vm1601_vm7, %v1554_v6  ;;  %v1832_v18 = vld [vmem:[#allocation2 + $0x28] sm:$0xff] }
 0x289   : > { %2594 = vmatmul.msk.f32.gmra.mxu0 %vm1868_vm9, %v1832_v18 }
 0x28b   : > { %1728 = vrot.lane.b32.xlu0 %v2572_v22, %s2681_s28  ;;  %1549 = vrot.lane.b32.xlu1 %v2547_v20, %s2682_s29 }
 0x28c   : > { %1561 = vrot.lane.b32.xlu2 %v2553_v21, %s2682_s29 }
 0x28d   : > { %v1542_v23 = vpop.permute.xlu1 %1541  ;;  %v1721_v25 = vpop.permute.xlu0 %1720 }
 0x28e   : > { %1620 = vst.msk [vmem:[#allocation2 + $0x90] sm:$0xff] %vm1601_vm7, %v1542_v23  ;;  %v1711_v24 = vpop.permute.xlu2 %1710 }
 0x28f   : > { %1806 = vst.msk [vmem:[#allocation2 + $0x58] sm:$0xff] %vm1794_vm8, %v1721_v25 }
 0x293   : > { %1742 = vrot.lane.b32.xlu0 %v2579_v43, %s2681_s28  ;;  %1754 = vrot.lane.b32.xlu1 %v2585_v28, %s2681_s28 }
 0x294   : > { %1358 = vrot.lane.b32.xlu2 %v2516_v26, %s2680_s27 }
 0x295   : > { %v1747_v47 = vpop.permute.xlu1 %1746  ;;  %v1735_v58 = vpop.permute.xlu0 %1734 }
 0x296   : > { %1819 = vst.msk [vmem:[#allocation2 + $0xc0] sm:$0xff] %vm1794_vm8, %v1747_v47  ;;  %v1838_v55 = vld [vmem:[#allocation2 + $0x58] sm:$0xff]  ;;  %v1556_v27 = vpop.permute.xlu2 %1555 }
 0x297   : > { %1813 = vst.msk [vmem:[#allocation2 + $0x90] sm:$0xff] %vm1794_vm8, %v1735_v58  ;;  %2600 = vmatmul.msk.f32.gmra.mxu1 %vm1868_vm9, %v1838_v55 }
 0x29b   : > { %1370 = vrot.lane.b32.xlu0 %v2522_v50, %s2680_s27  ;;  %1551 = vrot.lane.b32.xlu1 %v2548_v54, %s2682_s29 }
 0x29c   : > { %1563 = vrot.lane.b32.xlu2 %v2554_v52, %s2682_s29 }
 0x29d   : > { %v1518_v37 = vpop.permute.xlu1 %1517  ;;  %v1337_v57 = vpop.permute.xlu0 %1336  ;;  %v1851_v59 = vld [vmem:[#allocation2 + $0xc0] sm:$0xff] }
 0x29e   : > { %1608 = vst.msk [vmem:[#allocation2 + $0x30] sm:$0xff] %vm1601_vm7, %v1518_v37  ;;  %v1845_v33 = vld [vmem:[#allocation2 + $0x90] sm:$0xff]  ;;  %2613 = vmatmul.msk.f32.vlgmr.msra.gmra.mxu3 %vm1868_vm9, %v1851_v59  ;;  %v1327_v62 = vpop.permute.xlu2 %1326 }
 0x29f   : > { %1421 = vst.msk [vmem:[#allocation2 + $0x60] sm:$0xff] %vm1408_vm6, %v1337_v57  ;;  %2607 = vmatmul.msk.f32.gmra.mxu2 %vm1868_vm9, %v1845_v33 }
 0x2a0   : > { %1614 = vst.msk [vmem:[#allocation2 + $0x60] sm:$0xff] %vm1601_vm7, %v1530_v17 }
 0x2a1   : > { %1801 = vst.msk [vmem:[#allocation2 + $0x30] sm:$0xff] %vm1794_vm8, %v1711_v24 }
 0x2a2   : > { %1416 = vst.msk [vmem:[#allocation2 + $0x38] sm:$0xff] %vm1408_vm6, %v1327_v62 }
 0x2a3   : > { %1744 = vrot.lane.b32.xlu0 %v2580_v38, %s2681_s28  ;;  %1756 = vrot.lane.b32.xlu1 %v2586_v32, %s2681_s28 }
 0x2a4   : > { %1178 = vrot.lane.b32.xlu2 %v2585_v28, %s2679_s26 }
 0x2a5   : > { %v1363_v56 = vpop.permute.xlu1 %1362  ;;  %v1351_v1 = vpop.permute.xlu0 %1350 }
 0x2a6   : > { %1434 = vst.msk [vmem:[#allocation2 + $0xc8] sm:$0xff] %vm1408_vm6, %v1363_v56  ;;  %v1532_v61 = vpop.permute.xlu2 %1531 }
 0x2a7   : > { %1428 = vst.msk [vmem:[#allocation2 + $0x98] sm:$0xff] %vm1408_vm6, %v1351_v1 }
 0x2a8   : > { %1627 = vst.msk [vmem:[#allocation2 + $0xc8] sm:$0xff] %vm1601_vm7, %v1556_v27  ;;  %v1833_v41 = vld [vmem:[#allocation2 + $0x30] sm:$0xff] }
 0x2a9   : > { %2595 = vmatmul.msk.f32.gmra.mxu0 %vm1868_vm9, %v1833_v41 }
 0x2ab   : > { %1372 = vrot.lane.b32.xlu0 %v2523_v31, %s2680_s27  ;;  %1565 = vrot.lane.b32.xlu1 %v2555_v53, %s2682_s29 }
 0x2ac   : > { %1758 = vrot.lane.b32.xlu2 %v2587_v42, %s2681_s28 }
 0x2ad   : > { %v1544_v51 = vpop.permute.xlu1 %1543  ;;  %v1723_v34 = vpop.permute.xlu0 %1722 }
 0x2ae   : > { %1621 = vst.msk [vmem:[#allocation2 + $0x98] sm:$0xff] %vm1601_vm7, %v1544_v51  ;;  %v1713_v46 = vpop.permute.xlu2 %1712 }
 0x2af   : > { %1807 = vst.msk [vmem:[#allocation2 + $0x60] sm:$0xff] %vm1794_vm8, %v1723_v34 }
 0x2b3   : > { %1180 = vrot.lane.b32.xlu0 %v2586_v32, %s2679_s26  ;;  %1374 = vrot.lane.b32.xlu1 %v2524_v49, %s2680_s27  ;;  %s212_s27 = scalar_lea.vmem %s4107_s3, %s2720_s17 }
 0x2b4   : > { %v1982_v35 = vpop.f32.mrf.mxu0  ;;  %1567 = vrot.lane.b32.xlu2 %v2556_v44, %s2682_s29 }
 0x2b5   : > { %2078 = vst.msk [vmem:[%s3823_s7] sm:$0xff] %vm248_vm0, %v1982_v35  ;;  %v1749_v40 = vpop.permute.xlu1 %1748  ;;  %v1737_v39 = vpop.permute.xlu0 %1736  ;;  %v2181_v4 = vmul.f32 %v1982_v35, %v1982_v35  ;;  %v2110_v48 = vsel %vm248_vm0, %v1982_v35, 0.0 }
 0x2b6   : > { %1820 = vst.msk [vmem:[#allocation2 + $0xc8] sm:$0xff] %vm1794_vm8, %v1749_v40  ;;  %v1839_v36 = vld [vmem:[#allocation2 + $0x60] sm:$0xff]  ;;  %v1558_v29 = vpop.permute.xlu2 %1557 }
 0x2b7   : > { %1814 = vst.msk [vmem:[#allocation2 + $0x98] sm:$0xff] %vm1794_vm8, %v1737_v39  ;;  %2601 = vmatmul.msk.f32.gmra.mxu1 %vm1868_vm9, %v1839_v36  ;;  %v2213_v63 = vsel %vm248_vm0, %v2181_v4, 0.0 }
 0x2bb   : > { %1760 = vrot.lane.b32.xlu0 %v2588_v30, %s2681_s28 }
 0x2bc   : > { %v1985_v45 = vpop.f32.mrf.mxu0 }
 0x2bd   : > { %2079 = vst.msk [vmem:[%s3823_s7 + $0x8] sm:$0xff] %vm248_vm0, %v1985_v45  ;;  %v2111_v0 = vsel %vm248_vm0, %v1985_v45, 0.0  ;;  %v2182_v3 = vmul.f32 %v1985_v45, %v1985_v45  ;;  %v1520_v2 = vpop.permute.xlu1 %1519  ;;  %v1339_v7 = vpop.permute.xlu0 %1338  ;;  %v1852_v5 = vld [vmem:[#allocation2 + $0xc8] sm:$0xff] }
 0x2be   : > { %v2112_v6 = vadd.f32 %v2111_v0, %v2110_v48  ;;  %1609 = vst.msk [vmem:[#allocation2 + $0x38] sm:$0xff] %vm1601_vm7, %v1520_v2  ;;  %v1846_v10 = vld [vmem:[#allocation2 + $0x98] sm:$0xff]  ;;  %2614 = vmatmul.msk.f32.gmra.mxu3 %vm1868_vm9, %v1852_v5  ;;  %v1341_v9 = vpop.permute.xlu2 %1340 }
 0x2bf   : > { %v2214_v8 = vsel %vm248_vm0, %v2182_v3, 0.0  ;;  %1422 = vst.msk [vmem:[#allocation2 + $0x68] sm:$0xff] %vm1408_vm6, %v1339_v7  ;;  %2608 = vmatmul.msk.f32.gmra.mxu2 %vm1868_vm9, %v1846_v10 }
 0x2c0   : > { %v2215_v13 = vadd.f32 %v2214_v8, %v2213_v63  ;;  %1615 = vst.msk [vmem:[#allocation2 + $0x68] sm:$0xff] %vm1601_vm7, %v1532_v61 }
 0x2c1   : > { %1802 = vst.msk [vmem:[#allocation2 + $0x38] sm:$0xff] %vm1794_vm8, %v1713_v46 }
 0x2c2   : > { %1423 = vst.msk [vmem:[#allocation2 + $0x70] sm:$0xff] %vm1408_vm6, %v1341_v9 }
 0x2c5   : > { %v1353_v11 = vpop.permute.xlu0 %1352  ;;  %v1365_v12 = vpop.permute.xlu1 %1364 }
 0x2c6   : > { %1429 = vst.msk [vmem:[#allocation2 + $0xa0] sm:$0xff] %vm1408_vm6, %v1353_v11  ;;  %v1367_v60 = vpop.permute.xlu2 %1366 }
 0x2c7   : > { %1435 = vst.msk [vmem:[#allocation2 + $0xd0] sm:$0xff] %vm1408_vm6, %v1365_v12 }
 0x2c8   : > { %v1834_v16 = vld [vmem:[#allocation2 + $0x38] sm:$0xff]  ;;  %1628 = vst.msk [vmem:[#allocation2 + $0xd0] sm:$0xff] %vm1601_vm7, %v1558_v29 }
 0x2c9   : > { %2596 = vmatmul.msk.f32.gmra.mxu0 %vm1868_vm9, %v1834_v16  ;;  %1436 = vst.msk [vmem:[#allocation2 + $0xd8] sm:$0xff] %vm1408_vm6, %v1367_v60 }
 0x2cb   : > { %v3854_v14 = vpop.f32.mrf.mxu1 }
 0x2cc   : > { %v1988_v15 = vpop.f32.mrf.mxu0  ;;  %2086 = vst.msk [vmem:[%s3823_s7 + $0x40] sm:$0xff] %vm248_vm0, %v3854_v14 }
 0x2cd   : > { %2080 = vst.msk [vmem:[%s3823_s7 + $0x10] sm:$0xff] %vm248_vm0, %v1988_v15  ;;  %v2113_v19 = vsel %vm248_vm0, %v1988_v15, 0.0  ;;  %v2183_v17 = vmul.f32 %v1988_v15, %v1988_v15  ;;  %v1725_v18 = vpop.permute.xlu0 %1724  ;;  %v1546_v22 = vpop.permute.xlu1 %1545 }
 0x2ce   : > { %v2114_v20 = vadd.f32 %v2113_v19, %v2112_v6  ;;  %1808 = vst.msk [vmem:[#allocation2 + $0x68] sm:$0xff] %vm1794_vm8, %v1725_v18  ;;  %v1560_v23 = vpop.permute.xlu2 %1559 }
 0x2cf   : > { %v2216_v21 = vsel %vm248_vm0, %v2183_v17, 0.0  ;;  %1622 = vst.msk [vmem:[#allocation2 + $0xa0] sm:$0xff] %vm1601_vm7, %v1546_v22 }
 0x2d0   : > { %v2217_v25 = vadd.f32 %v2216_v21, %v2215_v13  ;;  %1629 = vst.msk [vmem:[#allocation2 + $0xd8] sm:$0xff] %vm1601_vm7, %v1560_v23 }
 0x2d5   : > { %v1739_v24 = vpop.permute.xlu0 %1738  ;;  %v1840_v43 = vld [vmem:[#allocation2 + $0x68] sm:$0xff]  ;;  %v1751_v28 = vpop.permute.xlu1 %1750 }
 0x2d6   : > { %1815 = vst.msk [vmem:[#allocation2 + $0xa0] sm:$0xff] %vm1794_vm8, %v1739_v24  ;;  %2602 = vmatmul.msk.f32.gmra.mxu1 %vm1868_vm9, %v1840_v43  ;;  %v3868_v26 = vpop.f32.mrf.mxu1  ;;  %v1343_v47 = vpop.permute.xlu2 %1342 }
 0x2d7   : > { %1821 = vst.msk [vmem:[#allocation2 + $0xd0] sm:$0xff] %vm1794_vm8, %v1751_v28 }
 0x2d8   : > { %2087 = vst.msk [vmem:[%s3823_s7 + $0x48] sm:$0xff] %vm248_vm0, %v3868_v26 }
 0x2d9   : > { %1424 = vst.msk [vmem:[#allocation2 + $0x78] sm:$0xff] %vm1408_vm6, %v1343_v47 }
 0x2db   : > { %v1991_v58 = vpop.f32.mrf.mxu0 }
 0x2dc   : > { %2081 = vst.msk [vmem:[%s3823_s7 + $0x18] sm:$0xff] %vm248_vm0, %v1991_v58  ;;  %v2115_v55 = vsel %vm248_vm0, %v1991_v58, 0.0  ;;  %v2184_v27 = vmul.f32 %v1991_v58, %v1991_v58 }
 0x2dd   : > { %v2116_v50 = vadd.f32 %v2115_v55, %v2114_v20  ;;  %v1534_v54 = vpop.permute.xlu0 %1533  ;;  %v1847_v52 = vld [vmem:[#allocation2 + $0xa0] sm:$0xff]  ;;  %v1355_v37 = vpop.permute.xlu1 %1354 }
 0x2de   : > { %v2218_v57 = vsel %vm248_vm0, %v2184_v27, 0.0  ;;  %1616 = vst.msk [vmem:[#allocation2 + $0x70] sm:$0xff] %vm1601_vm7, %v1534_v54  ;;  %2609 = vmatmul.msk.f32.gmra.mxu2 %vm1868_vm9, %v1847_v52  ;;  %v1853_v59 = vld [vmem:[#allocation2 + $0xd0] sm:$0xff]  ;;  %v1369_v62 = vpop.permute.xlu2 %1368 }
 0x2df   : > { %v2219_v33 = vadd.f32 %v2218_v57, %v2217_v25  ;;  %1430 = vst.msk [vmem:[#allocation2 + $0xa8] sm:$0xff] %vm1408_vm6, %v1355_v37  ;;  %2615 = vmatmul.msk.f32.gmra.mxu3 %vm1868_vm9, %v1853_v59 }
 0x2e0   : > { %1437 = vst.msk [vmem:[#allocation2 + $0xe0] sm:$0xff] %vm1408_vm6, %v1369_v62 }
 0x2e5   : > { %v1727_v38 = vpop.permute.xlu0 %1726  ;;  %v1548_v32 = vpop.permute.xlu1 %1547 }
 0x2e6   : > { %1809 = vst.msk [vmem:[#allocation2 + $0x70] sm:$0xff] %vm1794_vm8, %v1727_v38  ;;  %v1562_v56 = vpop.permute.xlu2 %1561 }
 0x2e7   : > { %1623 = vst.msk [vmem:[#allocation2 + $0xa8] sm:$0xff] %vm1601_vm7, %v1548_v32  ;;  %v2189_v32 = vmul.f32 %v3854_v14, %v3854_v14 }
 0x2e8   : > { %1630 = vst.msk [vmem:[#allocation2 + $0xe0] sm:$0xff] %vm1601_vm7, %v1562_v56 }
 0x2ea   : > { %v3887_v1 = vpop.f32.mrf.mxu2 }
 0x2eb   : > { %2094 = vst.msk [vmem:[%s3823_s7 + $0x80] sm:$0xff] %vm248_vm0, %v3887_v1 }
 0x2ed   : > { %v1741_v61 = vpop.permute.xlu0 %1740  ;;  %v1841_v41 = vld [vmem:[#allocation2 + $0x70] sm:$0xff]  ;;  %v1753_v31 = vpop.permute.xlu1 %1752 }
 0x2ee   : > { %1816 = vst.msk [vmem:[#allocation2 + $0xa8] sm:$0xff] %vm1794_vm8, %v1741_v61  ;;  %2603 = vmatmul.msk.f32.gmra.mxu1 %vm1868_vm9, %v1841_v41  ;;  %v3894_v53 = vpop.f32.mrf.mxu1  ;;  %v1359_v42 = vpop.permute.xlu2 %1358 }
 0x2ef   : > { %1822 = vst.msk [vmem:[#allocation2 + $0xd8] sm:$0xff] %vm1794_vm8, %v1753_v31  ;;  %v2125_v31 = vsel %vm248_vm0, %v3854_v14, 0.0  ;;  %v2129_v14 = vsel %vm248_vm0, %v3894_v53, 0.0 }
 0x2f0   : > { %2088 = vst.msk [vmem:[%s3823_s7 + $0x50] sm:$0xff] %vm248_vm0, %v3894_v53 }
 0x2f1   : > { %1432 = vst.msk [vmem:[#allocation2 + $0xb8] sm:$0xff] %vm1408_vm6, %v1359_v42  ;;  %v2190_v42 = vmul.f32 %v3868_v26, %v3868_v26 }
 0x2f3   : > { %v1994_v51 = vpop.f32.mrf.mxu0 }
 0x2f4   : > { %2082 = vst.msk [vmem:[%s3823_s7 + $0x20] sm:$0xff] %vm248_vm0, %v1994_v51  ;;  %v2117_v34 = vsel %vm248_vm0, %v1994_v51, 0.0  ;;  %v2185_v46 = vmul.f32 %v1994_v51, %v1994_v51 }
 0x2f5   : > { %v2118_v49 = vadd.f32 %v2117_v34, %v2116_v50  ;;  %v1536_v44 = vpop.permute.xlu0 %1535  ;;  %v1848_v35 = vld [vmem:[#allocation2 + $0xa8] sm:$0xff]  ;;  %v1357_v40 = vpop.permute.xlu1 %1356 }
 0x2f6   : > { %v2220_v39 = vsel %vm248_vm0, %v2185_v46, 0.0  ;;  %1617 = vst.msk [vmem:[#allocation2 + $0x78] sm:$0xff] %vm1601_vm7, %v1536_v44  ;;  %2610 = vmatmul.msk.f32.gmra.mxu2 %vm1868_vm9, %v1848_v35  ;;  %v1854_v36 = vld [vmem:[#allocation2 + $0xd8] sm:$0xff]  ;;  %v1564_v30 = vpop.permute.xlu2 %1563  ;;  %v2127_v44 = vsel %vm248_vm0, %v3868_v26, 0.0  ;;  %v2191_v35 = vmul.f32 %v3894_v53, %v3894_v53 }
 0x2f7   : > { %v2221_v29 = vadd.f32 %v2220_v39, %v2219_v33  ;;  %1431 = vst.msk [vmem:[#allocation2 + $0xb0] sm:$0xff] %vm1408_vm6, %v1357_v40  ;;  %2616 = vmatmul.msk.f32.gmra.mxu3 %vm1868_vm9, %v1854_v36  ;;  %v2230_v36 = vsel %vm248_vm0, %v2190_v42, 0.0 }
 0x2fd   : > { %v1729_v4 = vpop.permute.xlu0 %1728  ;;  %v1550_v45 = vpop.permute.xlu1 %1549 }
 0x2fe   : > { %1810 = vst.msk [vmem:[#allocation2 + $0x78] sm:$0xff] %vm1794_vm8, %v1729_v4  ;;  %v1179_v48 = vpop.permute.xlu2 %1178 }
 0x2ff   : > { %1624 = vst.msk [vmem:[#allocation2 + $0xb0] sm:$0xff] %vm1601_vm7, %v1550_v45  ;;  %v2232_v45 = vsel %vm248_vm0, %v2191_v35, 0.0 }
 0x300   : > { %1245 = vst.msk [vmem:[#allocation2 + $0xf0] sm:$0xff] %vm1214_vm5, %v1179_v48 }
 0x302   : > { %v3912_v0 = vpop.f32.mrf.mxu2 }
 0x303   : > { %2095 = vst.msk [vmem:[%s3823_s7 + $0x88] sm:$0xff] %vm248_vm0, %v3912_v0 }
 0x305   : > { %v1743_v3 = vpop.permute.xlu0 %1742  ;;  %v1842_v2 = vld [vmem:[#allocation2 + $0x78] sm:$0xff]  ;;  %v1755_v7 = vpop.permute.xlu1 %1754 }
 0x306   : > { %v1997_v5 = vpop.f32.mrf.mxu0  ;;  %1817 = vst.msk [vmem:[#allocation2 + $0xb0] sm:$0xff] %vm1794_vm8, %v1743_v3  ;;  %2604 = vmatmul.msk.f32.gmra.mxu1 %vm1868_vm9, %v1842_v2  ;;  %v1759_v17 = vpop.permute.xlu2 %1758 }
 0x307   : > { %2083 = vst.msk [vmem:[%s3823_s7 + $0x28] sm:$0xff] %vm248_vm0, %v1997_v5  ;;  %v2119_v6 = vsel %vm248_vm0, %v1997_v5, 0.0  ;;  %v2186_v10 = vmul.f32 %v1997_v5, %v1997_v5 }
 0x308   : > { %v2120_v63 = vadd.f32 %v2119_v6, %v2118_v49  ;;  %1823 = vst.msk [vmem:[#allocation2 + $0xe0] sm:$0xff] %vm1794_vm8, %v1755_v7  ;;  %v2228_v49 = vsel %vm248_vm0, %v2189_v32, 0.0 }
 0x309   : > { %v2222_v8 = vsel %vm248_vm0, %v2186_v10, 0.0 }
 0x30a   : > { %v2223_v9 = vadd.f32 %v2222_v8, %v2221_v29 }
 0x30d   : > { %v1371_v13 = vpop.permute.xlu0 %1370  ;;  %v1849_v11 = vld [vmem:[#allocation2 + $0xb0] sm:$0xff]  ;;  %v1552_v12 = vpop.permute.xlu1 %1551 }
 0x30e   : > { %1438 = vst.msk [vmem:[#allocation2 + $0xe8] sm:$0xff] %vm1408_vm6, %v1371_v13  ;;  %2611 = vmatmul.msk.f32.gmra.mxu2 %vm1868_vm9, %v1849_v11  ;;  %v1568_v47 = vpop.permute.xlu2 %1567 }
 0x30f   : > { %1625 = vst.msk [vmem:[#allocation2 + $0xb8] sm:$0xff] %vm1601_vm7, %v1552_v12  ;;  %v1855_v60 = vld [vmem:[#allocation2 + $0xe0] sm:$0xff] }
 0x310   : > { %1631 = vst.msk [vmem:[#allocation2 + $0xe8] sm:$0xff] %vm1601_vm7, %v1564_v30  ;;  %2617 = vmatmul.msk.f32.gmra.mxu3 %vm1868_vm9, %v1855_v60 }
 0x314   : > { %v3929_v16 = vpop.f32.mrf.mxu1 }
 0x315   : > { %2089 = vst.msk [vmem:[%s3823_s7 + $0x58] sm:$0xff] %vm248_vm0, %v3929_v16  ;;  %v1745_v15 = vpop.permute.xlu0 %1744  ;;  %v1757_v19 = vpop.permute.xlu1 %1756  ;;  %v2192_v29 = vmul.f32 %v3929_v16, %v3929_v16  ;;  %v2131_v26 = vsel %vm248_vm0, %v3929_v16, 0.0 }
 0x316   : > { %1818 = vst.msk [vmem:[#allocation2 + $0xb8] sm:$0xff] %vm1794_vm8, %v1745_v15 }
 0x317   : > { %1824 = vst.msk [vmem:[#allocation2 + $0xe8] sm:$0xff] %vm1794_vm8, %v1757_v19  ;;  %v2234_v7 = vsel %vm248_vm0, %v2192_v29, 0.0 }
 0x31d   : > { %v1373_v18 = vpop.permute.xlu0 %1372  ;;  %v1850_v22 = vld [vmem:[#allocation2 + $0xb8] sm:$0xff]  ;;  %v1566_v20 = vpop.permute.xlu1 %1565 }
 0x31e   : > { %1439 = vst.msk [vmem:[#allocation2 + $0xf0] sm:$0xff] %vm1408_vm6, %v1373_v18  ;;  %2612 = vmatmul.msk.f32.gmra.mxu2 %vm1868_vm9, %v1850_v22  ;;  %v1856_v21 = vld [vmem:[#allocation2 + $0xe8] sm:$0xff] }
 0x31f   : > { %1632 = vst.msk [vmem:[#allocation2 + $0xf0] sm:$0xff] %vm1601_vm7, %v1566_v20  ;;  %2618 = vmatmul.msk.f32.gmra.mxu3 %vm1868_vm9, %v1856_v21 }
 0x320   : > { %1825 = vst.msk [vmem:[#allocation2 + $0xf0] sm:$0xff] %vm1794_vm8, %v1759_v17 }
 0x321   : > { %v3941_v23 = vpop.f32.mrf.mxu3 }
 0x322   : > { %v3943_v25 = vpop.f32.mrf.mxu2  ;;  %2102 = vst.msk [vmem:[%s3823_s7 + $0xc0] sm:$0xff] %vm248_vm0, %v3941_v23 }
 0x323   : > { %2096 = vst.msk [vmem:[%s3823_s7 + $0x90] sm:$0xff] %vm248_vm0, %v3943_v25  ;;  %v2199_v32 = vmul.f32 %v3943_v25, %v3943_v25 }
 0x325   : > { %v1181_v24 = vpop.permute.xlu0 %1180  ;;  %v1375_v43 = vpop.permute.xlu1 %1374 }
 0x326   : > { %v2000_v28 = vpop.f32.mrf.mxu0  ;;  %1246 = vst.msk [vmem:[#allocation2 + $0xf8] sm:$0xff] %vm1214_vm5, %v1181_v24 }
 0x327   : > { %2084 = vst.msk [vmem:[%s3823_s7 + $0x30] sm:$0xff] %vm248_vm0, %v2000_v28  ;;  %v2121_v58 = vsel %vm248_vm0, %v2000_v28, 0.0  ;;  %v2187_v55 = vmul.f32 %v2000_v28, %v2000_v28  ;;  %v1857_v27 = vld [vmem:[#allocation2 + $0xf0] sm:$0xff]  ;;  %v2197_v28 = vmul.f32 %v3887_v1, %v3887_v1 }
 0x328   : > { %v2122_v50 = vadd.f32 %v2121_v58, %v2120_v63  ;;  %1440 = vst.msk [vmem:[#allocation2 + $0xf8] sm:$0xff] %vm1408_vm6, %v1375_v43  ;;  %2619 = vmatmul.msk.f32.gmra.mxu3 %vm1868_vm9, %v1857_v27 }
 0x329   : > { %v2224_v54 = vsel %vm248_vm0, %v2187_v55, 0.0  ;;  %1633 = vst.msk [vmem:[#allocation2 + $0xf8] sm:$0xff] %vm1601_vm7, %v1568_v47 }
 0x32a   : > { %v2225_v52 = vadd.f32 %v2224_v54, %v2223_v9  ;;  %v2198_v54 = vmul.f32 %v3912_v0, %v3912_v0 }
 0x32d   : > { %v1761_v37 = vpop.permute.xlu0 %1760 }
 0x32e   : > { %1826 = vst.msk [vmem:[#allocation2 + $0xf8] sm:$0xff] %vm1794_vm8, %v1761_v37 }
 0x334   : > { %v2018_v57 = vpop.f32.mrf.mxu1 }
 0x335   : > { %2090 = vst.msk [vmem:[%s3823_s7 + $0x60] sm:$0xff] %vm248_vm0, %v2018_v57  ;;  %v1858_v59 = vld [vmem:[#allocation2 + $0xf8] sm:$0xff]  ;;  %v2193_v48 = vmul.f32 %v2018_v57, %v2018_v57  ;;  %v2133_v5 = vsel %vm248_vm0, %v2018_v57, 0.0 }
 0x336   : > { %2620 = vmatmul.msk.f32.gmra.mxu3 %vm1868_vm9, %v1858_v59  ;;  %v2244_v59 = vsel %vm248_vm0, %v2197_v28, 0.0 }
 0x337   : > { %v2236_v10 = vsel %vm248_vm0, %v2193_v48, 0.0 }
 0x341   : > { %v3963_v33 = vpop.f32.mrf.mxu3 }
 0x342   : > { %v3965_v62 = vpop.f32.mrf.mxu2  ;;  %2103 = vst.msk [vmem:[%s3823_s7 + $0xc8] sm:$0xff] %vm248_vm0, %v3963_v33 }
 0x343   : > { %2097 = vst.msk [vmem:[%s3823_s7 + $0x98] sm:$0xff] %vm248_vm0, %v3965_v62 }
 0x346   : > { %v2003_v38 = vpop.f32.mrf.mxu0 }
 0x347   : > { %2085 = vst.msk [vmem:[%s3823_s7 + $0x38] sm:$0xff] %vm248_vm0, %v2003_v38  ;;  %v2123_v56 = vsel %vm248_vm0, %v2003_v38, 0.0  ;;  %v2188_v61 = vmul.f32 %v2003_v38, %v2003_v38  ;;  %v2143_v38 = vsel %vm248_vm0, %v3912_v0, 0.0  ;;  %v2147_v0 = vsel %vm248_vm0, %v3965_v62, 0.0 }
 0x348   : > { %v2124_v41 = vadd.f32 %v2123_v56, %v2122_v50  ;;  %v2141_v50 = vsel %vm248_vm0, %v3887_v1, 0.0  ;;  %v2145_v1 = vsel %vm248_vm0, %v3943_v25, 0.0 }
 0x349   : > { %v2226_v51 = vsel %vm248_vm0, %v2188_v61, 0.0 }
 0x34a   : > { %v2126_v34 = vadd.f32 %v2125_v31, %v2124_v41  ;;  %v2227_v46 = vadd.f32 %v2226_v51, %v2225_v52  ;;  %v2246_v41 = vsel %vm248_vm0, %v2198_v54, 0.0  ;;  %v2200_v31 = vmul.f32 %v3965_v62, %v3965_v62 }
 0x34c   : > { %v2128_v40 = vadd.f32 %v2127_v44, %v2126_v34  ;;  %v2229_v39 = vadd.f32 %v2228_v49, %v2227_v46  ;;  %v2248_v34 = vsel %vm248_vm0, %v2199_v32, 0.0  ;;  %v2250_v35 = vsel %vm248_vm0, %v2200_v31, 0.0 }
 0x34e   : > { %v2130_v30 = vadd.f32 %v2129_v14, %v2128_v40  ;;  %v2231_v4 = vadd.f32 %v2230_v36, %v2229_v39 }
 0x350   : > { %v2233_v3 = vadd.f32 %v2232_v45, %v2231_v4  ;;  %v2132_v2 = vadd.f32 %v2131_v26, %v2130_v30 }
 0x352   : > { %v2134_v53 = vadd.f32 %v2133_v5, %v2132_v2  ;;  %v2235_v6 = vadd.f32 %v2234_v7, %v2233_v3 }
 0x353   : > { %v2021_v63 = vpop.f32.mrf.mxu1 }
 0x354   : > { %2091 = vst.msk [vmem:[%s3823_s7 + $0x68] sm:$0xff] %vm248_vm0, %v2021_v63  ;;  %v2135_v8 = vsel %vm248_vm0, %v2021_v63, 0.0  ;;  %v2194_v9 = vmul.f32 %v2021_v63, %v2021_v63  ;;  %v2237_v13 = vadd.f32 %v2236_v10, %v2235_v6  ;;  %v2205_v6 = vmul.f32 %v3941_v23, %v3941_v23 }
 0x355   : > { %v2136_v11 = vadd.f32 %v2135_v8, %v2134_v53 }
 0x356   : > { %v2238_v12 = vsel %vm248_vm0, %v2194_v9, 0.0 }
 0x357   : > { %v2239_v60 = vadd.f32 %v2238_v12, %v2237_v13  ;;  %v2206_v12 = vmul.f32 %v3963_v33, %v3963_v33 }
 0x361   : > { %v2042_v16 = vpop.f32.mrf.mxu2 }
 0x362   : > { %2098 = vst.msk [vmem:[%s3823_s7 + $0xa0] sm:$0xff] %vm248_vm0, %v2042_v16  ;;  %v4005_v15 = vpop.f32.mrf.mxu3  ;;  %v2201_v46 = vmul.f32 %v2042_v16, %v2042_v16  ;;  %v2149_v40 = vsel %vm248_vm0, %v2042_v16, 0.0 }
 0x363   : > { %2104 = vst.msk [vmem:[%s3823_s7 + $0xd0] sm:$0xff] %vm248_vm0, %v4005_v15 }
 0x364   : > { %v2252_v36 = vsel %vm248_vm0, %v2201_v46, 0.0 }
 0x36b   : > { %v2024_v19 = vpop.f32.mrf.mxu1 }
 0x36c   : > { %2092 = vst.msk [vmem:[%s3823_s7 + $0x70] sm:$0xff] %vm248_vm0, %v2024_v19  ;;  %v2195_v22 = vmul.f32 %v2024_v19, %v2024_v19  ;;  %v2137_v20 = vsel %vm248_vm0, %v2024_v19, 0.0 }
 0x36d   : > { %v2138_v24 = vadd.f32 %v2137_v20, %v2136_v11  ;;  %v2157_v11 = vsel %vm248_vm0, %v3941_v23, 0.0  ;;  %v2207_v20 = vmul.f32 %v4005_v15, %v4005_v15  ;;  %v2262_v23 = vsel %vm248_vm0, %v2206_v12, 0.0 }
 0x36e   : > { %v2240_v21 = vsel %vm248_vm0, %v2195_v22, 0.0  ;;  %v2159_v22 = vsel %vm248_vm0, %v3963_v33, 0.0 }
 0x36f   : > { %v2241_v55 = vadd.f32 %v2240_v21, %v2239_v60 }
 0x379   : > { %v2045_v17 = vpop.f32.mrf.mxu2 }
 0x37a   : > { %2099 = vst.msk [vmem:[%s3823_s7 + $0xa8] sm:$0xff] %vm248_vm0, %v2045_v17  ;;  %v4014_v18 = vpop.f32.mrf.mxu3  ;;  %v2202_v62 = vmul.f32 %v2045_v17, %v2045_v17  ;;  %v2151_v4 = vsel %vm248_vm0, %v2045_v17, 0.0  ;;  %v2260_v17 = vsel %vm248_vm0, %v2205_v6, 0.0 }
 0x37b   : > { %2105 = vst.msk [vmem:[%s3823_s7 + $0xd8] sm:$0xff] %vm248_vm0, %v4014_v18  ;;  %v2163_v33 = vsel %vm248_vm0, %v4014_v18, 0.0 }
 0x37c   : > { %v2254_v48 = vsel %vm248_vm0, %v2202_v62, 0.0 }
 0x383   : > { %v2027_v43 = vpop.f32.mrf.mxu1 }
 0x384   : > { %2093 = vst.msk [vmem:[%s3823_s7 + $0x78] sm:$0xff] %vm248_vm0, %v2027_v43  ;;  %v2139_v47 = vsel %vm248_vm0, %v2027_v43, 0.0  ;;  %v2196_v58 = vmul.f32 %v2027_v43, %v2027_v43  ;;  %v2161_v43 = vsel %vm248_vm0, %v4005_v15, 0.0 }
 0x385   : > { %v2140_v27 = vadd.f32 %v2139_v47, %v2138_v24 }
 0x386   : > { %v2242_v52 = vsel %vm248_vm0, %v2196_v58, 0.0  ;;  %v2264_v58 = vsel %vm248_vm0, %v2207_v20, 0.0 }
 0x387   : > { %v2142_v37 = vadd.f32 %v2141_v50, %v2140_v27  ;;  %v2243_v57 = vadd.f32 %v2242_v52, %v2241_v55  ;;  %v2208_v55 = vmul.f32 %v4014_v18, %v4014_v18 }
 0x389   : > { %v2144_v56 = vadd.f32 %v2143_v38, %v2142_v37  ;;  %v2245_v61 = vadd.f32 %v2244_v59, %v2243_v57  ;;  %v2266_v52 = vsel %vm248_vm0, %v2208_v55, 0.0 }
 0x38b   : > { %v2146_v42 = vadd.f32 %v2145_v1, %v2144_v56  ;;  %v2247_v51 = vadd.f32 %v2246_v41, %v2245_v61 }
 0x38d   : > { %v2249_v49 = vadd.f32 %v2248_v34, %v2247_v51  ;;  %v2148_v44 = vadd.f32 %v2147_v0, %v2146_v42 }
 0x38f   : > { %v2150_v25 = vadd.f32 %v2149_v40, %v2148_v44  ;;  %v2251_v39 = vadd.f32 %v2250_v35, %v2249_v49 }
 0x391   : > { %v2048_v14 = vpop.f32.mrf.mxu2  ;;  %v2253_v29 = vadd.f32 %v2252_v36, %v2251_v39  ;;  %v2152_v26 = vadd.f32 %v2151_v4, %v2150_v25 }
 0x392   : > { %2100 = vst.msk [vmem:[%s3823_s7 + $0xb0] sm:$0xff] %vm248_vm0, %v2048_v14  ;;  %v2203_v45 = vmul.f32 %v2048_v14, %v2048_v14  ;;  %v2153_v3 = vsel %vm248_vm0, %v2048_v14, 0.0 }
 0x393   : > { %v2066_v30 = vpop.f32.mrf.mxu3  ;;  %v2255_v2 = vadd.f32 %v2254_v48, %v2253_v29  ;;  %v2154_v5 = vadd.f32 %v2153_v3, %v2152_v26 }
 0x394   : > { %2106 = vst.msk [vmem:[%s3823_s7 + $0xe0] sm:$0xff] %vm248_vm0, %v2066_v30  ;;  %v2256_v7 = vsel %vm248_vm0, %v2203_v45, 0.0  ;;  %v2209_v37 = vmul.f32 %v2066_v30, %v2066_v30  ;;  %v2165_v57 = vsel %vm248_vm0, %v2066_v30, 0.0 }
 0x395   : > { %v2257_v9 = vadd.f32 %v2256_v7, %v2255_v2 }
 0x396   : > { %v2268_v38 = vsel %vm248_vm0, %v2209_v37, 0.0 }
 0x3a1   : > { %v2051_v53 = vpop.f32.mrf.mxu2 }
 0x3a2   : > { %2101 = vst.msk [vmem:[%s3823_s7 + $0xb8] sm:$0xff] %vm248_vm0, %v2051_v53  ;;  %v2155_v10 = vsel %vm248_vm0, %v2051_v53, 0.0  ;;  %v2204_v63 = vmul.f32 %v2051_v53, %v2051_v53  ;;  %v2069_v8 = vpop.f32.mrf.mxu3 }
 0x3a3   : > { %v2156_v13 = vadd.f32 %v2155_v10, %v2154_v5  ;;  %2107 = vst.msk [vmem:[%s3823_s7 + $0xe8] sm:$0xff] %vm248_vm0, %v2069_v8  ;;  %v2210_v32 = vmul.f32 %v2069_v8, %v2069_v8  ;;  %v2167_v61 = vsel %vm248_vm0, %v2069_v8, 0.0 }
 0x3a4   : > { %v2258_v60 = vsel %vm248_vm0, %v2204_v63, 0.0 }
 0x3a5   : > { %v2158_v16 = vadd.f32 %v2157_v11, %v2156_v13  ;;  %v2259_v19 = vadd.f32 %v2258_v60, %v2257_v9  ;;  %v2270_v18 = vsel %vm248_vm0, %v2210_v32, 0.0 }
 0x3a7   : > { %v2160_v21 = vadd.f32 %v2159_v22, %v2158_v16  ;;  %v2261_v24 = vadd.f32 %v2260_v17, %v2259_v19 }
 0x3a9   : > { %v2162_v28 = vadd.f32 %v2161_v43, %v2160_v21  ;;  %v2263_v47 = vadd.f32 %v2262_v23, %v2261_v24 }
 0x3ab   : > { %v2265_v27 = vadd.f32 %v2264_v58, %v2263_v47  ;;  %v2072_v50 = vpop.f32.mrf.mxu3  ;;  %v2164_v54 = vadd.f32 %v2163_v33, %v2162_v28 }
 0x3ac   : > { %2108 = vst.msk [vmem:[%s3823_s7 + $0xf0] sm:$0xff] %vm248_vm0, %v2072_v50  ;;  %v2211_v41 = vmul.f32 %v2072_v50, %v2072_v50  ;;  %v2169_v31 = vsel %vm248_vm0, %v2072_v50, 0.0 }
 0x3ad   : > { %v2267_v15 = vadd.f32 %v2266_v52, %v2265_v27  ;;  %v2166_v59 = vadd.f32 %v2165_v57, %v2164_v54 }
 0x3ae   : > { %v2272_v51 = vsel %vm248_vm0, %v2211_v41, 0.0 }
 0x3af   : > { %v2269_v56 = vadd.f32 %v2268_v38, %v2267_v15  ;;  %v2168_v1 = vadd.f32 %v2167_v61, %v2166_v59 }
 0x3b1   : > { %v2271_v42 = vadd.f32 %v2270_v18, %v2269_v56  ;;  %v2170_v34 = vadd.f32 %v2169_v31, %v2168_v1 }
 0x3b3   : > { %v2273_v44 = vadd.f32 %v2272_v51, %v2271_v42 }
 0x3b9   : > { %v2075_v0 = vpop.f32.mrf.mxu3 }
 0x3ba   : > { %2109 = vst.msk [vmem:[%s3823_s7 + $0xf8] sm:$0xff] %vm248_vm0, %v2075_v0  ;;  %v2171_v46 = vsel %vm248_vm0, %v2075_v0, 0.0  ;;  %v2212_v49 = vmul.f32 %v2075_v0, %v2075_v0 }
 0x3bb   : > { %v2172_v35 = vadd.f32 %v2171_v46, %v2170_v34 }
 0x3bc   : > { %v2274_v40 = vsel %vm248_vm0, %v2212_v49, 0.0 }
 0x3bd   : > { %v2173_v25 = vrot.slane %v2172_v35, 4  ;;  %v2275_v39 = vadd.f32 %v2274_v40, %v2273_v44 }
 0x3bf   : > { %v2174_v36 = vadd.f32 %v2173_v25, %v2172_v35  ;;  %v2276_v14 = vrot.slane %v2275_v39, 4 }
 0x3c1   : > { %v2175_v29 = vrot.slane %v2174_v36, 2  ;;  %v2277_v30 = vadd.f32 %v2276_v14, %v2275_v39 }
 0x3c3   : > { %v2176_v62 = vadd.f32 %v2175_v29, %v2174_v36  ;;  %v2278_v4 = vrot.slane %v2277_v30, 2 }
 0x3c5   : > { %v2177_v45 = vrot.slane %v2176_v62, 1  ;;  %v2279_v26 = vadd.f32 %v2278_v4, %v2277_v30 }
 0x3c7   : > { %v2178_v48 = vadd.f32 %v2177_v45, %v2176_v62  ;;  %v2280_v3 = vrot.slane %v2279_v26, 1 }
 0x3c9   : > { %2180 = vst.msk [vmem:[%s212_s27] sm:$0x1] %vm2179_vm10, %v2178_v48  ;;  %v2281_v2 = vadd.f32 %v2280_v3, %v2279_v26 }
 0x3cb   : > { %2282 = vst.msk [vmem:[%s215_s8] sm:$0x1] %vm2179_vm10, %v2281_v2 }
 0x3cc PF: > { %s15_s15 = sadd.s32 1, %s2673_s15  }
 0x3cd   : > { %p12_p5 = scmp.ge.s32.totalorder %s15_s15, 4  }
 0x3cf   :  { %14 = sbr.rel (!%p12_p5) target bundleno = 1 (0x1), region = 84 }

</bundles_post_ra>
